<compile_context>
chip_gen: v5e
topology: v5e:2x2
jax: 0.10.0
libtpu: 0.0.40
codegen_flags: <defaults>
</compile_context>

<pallas_src>
import jax
import jax.numpy as jnp
from jax.experimental import pallas as pl
from jax.experimental.pallas import tpu as pltpu


def lndnet_kernel(shots_ref, mass_ref, evals_ref, evecs_ref, evecs_t_ref, g_ref,
                  w_first_ref, b_first_ref, diff_t_ref, a_pack_ref,
                  w0a_ref, w0b_ref, w0c_ref, b0_ref,
                  w1_ref, b1_ref, w2_ref, b2_ref,
                  w_comb_ref, b_comb_ref,
                  out_ref):
    f32 = jnp.float32
    bf16 = jnp.bfloat16

    x_in = shots_ref[0]                 # (V, C_in)  f32
    mass = mass_ref[0]                  # (V, 1)     f32
    evals = evals_ref[0]                # (K, 1)     f32
    evecs = evecs_ref[0]                # (V, K)     bf16
    evecs_t = evecs_t_ref[0]            # (K, V)     bf16
    G = g_ref[0]                        # (2V, V)    bf16  (= [gradX; gradY])

    V = shots_ref.shape[1]
    W = w_first_ref.shape[-1]
    n_block = a_pack_ref.shape[0]

    # ---- DiffusionNet.first_lin ----
    x = jnp.dot(x_in, w_first_ref[...], preferred_element_type=f32) + b_first_ref[...]

    # N_block is small (2); keep the loop unrolled.  For N_block > 4 switch to
    # lax.fori_loop with dynamic ref slices to bound vreg live ranges.
    for blk in range(n_block):
        # ---- LearnedTimeDiffusion (spectral) ----
        t = jnp.maximum(diff_t_ref[blk], 1e-8)                             # (1, W)
        xm = (x * mass).astype(bf16)                                       # (V, W)
        # to_basis: evecs^T @ (x * mass) -> (K, W)   (MXU-native, no XLU transpose)
        x_spec = jnp.dot(evecs_t, xm, preferred_element_type=f32)
        coefs = jnp.exp(-evals * t)                                        # (K, W)
        # from_basis: evecs @ (coefs * x_spec) -> (V, W)
        x_diffuse = jnp.dot(evecs, (coefs * x_spec).astype(bf16),
                            preferred_element_type=f32)

        # ---- SpatialGradientFeatures (with gradient rotations) ----
        # One push for both gradient operators: [x_gX; x_gY] = [gX; gY] @ x_diffuse
        gxy = jnp.dot(G, x_diffuse.astype(bf16), preferred_element_type=f32)  # (2V, W)
        x_gX = gxy[:V]                                                     # (V, W)
        x_gY = gxy[V:]                                                     # (V, W)
        xg = jnp.concatenate([x_gX, x_gY], axis=-1)                        # (V, 2W)
        # [b_re | b_im] = [x_gX | x_gY] @ [[a_re, a_im], [-a_im, a_re]]  (one 2Wx2W matmul)
        bb = jnp.dot(xg, a_pack_ref[blk], preferred_element_type=f32)      # (V, 2W)
        prod = xg * bb                                                     # (V, 2W)
        # x_gX*b_re + x_gY*b_im  ==  prod[:, :W] + prod[:, W:]
        x_grad_feat = jnp.tanh(prod[:, :W] + prod[:, W:])                  # (V, W)

        # ---- MiniMLP([3W, W, W, W]) + residual ----  (Dropout = identity at eval)
        # concat([x, x_diffuse, x_grad_feat]) @ w0  ->  three accumulated dots.
        h = (jnp.dot(x, w0a_ref[blk], preferred_element_type=f32)
             + jnp.dot(x_diffuse, w0b_ref[blk], preferred_element_type=f32)
             + jnp.dot(x_grad_feat, w0c_ref[blk], preferred_element_type=f32)
             + b0_ref[blk])
        h = jnp.maximum(h, 0.0)
        h = jnp.dot(h, w1_ref[blk], preferred_element_type=f32) + b1_ref[blk]
        h = jnp.maximum(h, 0.0)
        h = jnp.dot(h, w2_ref[blk], preferred_element_type=f32) + b2_ref[blk]
        x = x + h

    # ---- last_lin folded with fc:  y = x @ (w_last @ w_fc) + (b_last @ w_fc + b_fc) ----
    y = jnp.dot(x, w_comb_ref[...], preferred_element_type=f32)            # (V, 1)
    # Lane-dense store: out block is (1, 1, V), last dim = V = 128 lanes.
    out_ref[0, 0] = y[:, 0] + b_comb_ref[0]


def lndnet_forward(shots, mass, L, evals, evecs, gradX, gradY, params):
    del L  # spectral diffusion path never touches the Laplacian (same as reference)
    f32, bf16 = jnp.float32, jnp.bfloat16
    B, V, _ = shots.shape
    K = evals.shape[-1]
    W = params["w_first"].shape[-1]

    # ---- wrapper-side repacking (cheap XLA ops, done once) ----
    mass_c = mass.reshape(B, V, 1).astype(f32)
    evals_c = evals.reshape(B, K, 1).astype(f32)
    evecs_b = evecs.astype(bf16)                                   # (B, V, K)
    evecs_t = jnp.swapaxes(evecs, 1, 2).astype(bf16)               # (B, K, V)
    G = jnp.concatenate([gradX, gradY], axis=1).astype(bf16)       # (B, 2V, V)

    a_re, a_im = params["a_re"], params["a_im"]
    a_pack = jnp.concatenate(
        [jnp.concatenate([a_re, a_im], axis=-1),
         jnp.concatenate([-a_im, a_re], axis=-1)], axis=-2)        # (N_block, 2W, 2W)

    w0 = params["w0"]
    w0a, w0b, w0c = w0[:, :W], w0[:, W:2 * W], w0[:, 2 * W:]       # (N_block, W, W) x3

    w_comb = (params["w_last"] @ params["w_fc"]).astype(f32)                      # (W, 1)
    b_comb = (params["b_last"] @ params["w_fc"] + params["b_fc"]).reshape(1).astype(f32)

    batched_arrays = [shots.astype(f32), mass_c, evals_c, evecs_b, evecs_t, G]
    param_arrays = [params["w_first"], params["b_first"], params["diff_t"], a_pack,
                    w0a, w0b, w0c, params["b0"],
                    params["w1"], params["b1"], params["w2"], params["b2"],
                    w_comb]

    def batched_spec(shape):
        nd = len(shape)
        return pl.BlockSpec((1,) + tuple(shape[1:]),
                            lambda b, _nd=nd: (b,) + (0,) * (_nd - 1))

    def full_spec(shape):
        nd = len(shape)
        return pl.BlockSpec(tuple(shape), lambda b, _nd=nd: (0,) * _nd)

    in_specs = ([batched_spec(a.shape) for a in batched_arrays]
                + [full_spec(a.shape) for a in param_arrays]
                + [pl.BlockSpec(memory_space=pltpu.MemorySpace.SMEM)])   # b_comb scalar

    out_spec = pl.BlockSpec((1, 1, V), lambda b: (b, 0, 0))

    out = pl.pallas_call(
        lndnet_kernel,
        out_shape=jax.ShapeDtypeStruct((B, 1, V), f32),
        grid_spec=pltpu.PrefetchScalarGridSpec(
            num_scalar_prefetch=0,
            grid=(B,),
            in_specs=in_specs,
            out_specs=out_spec,
        ),
        compiler_params=pltpu.CompilerParams(
            dimension_semantics=("parallel",),          # shard batch across TCs on v7x
            vmem_limit_bytes=32 * 1024 * 1024),          # explicit budget; tiny here.
        # NOTE: for large V, row-tile the (2V, V) operator (extra grid axis) so the
        # per-step VMEM footprint stays under the v7x 64 MiB physical limit.
    )(*batched_arrays, *param_arrays, b_comb)

    return out.reshape(B, V, 1)


def lndnet_reference(shots, mass, L, evals, evecs, gradX, gradY, params):
    """Plain-JAX f32 reference of the same forward (for validation)."""
    del L
    x = shots @ params["w_first"] + params["b_first"]
    n_block = params["a_re"].shape[0]
    for blk in range(n_block):
        t = jnp.maximum(params["diff_t"][blk], 1e-8)                       # (1, W)
        x_spec = jnp.einsum("bvk,bvw->bkw", evecs, x * mass[..., None])
        coefs = jnp.exp(-evals[..., None] * t)                             # (B, K, W)
        x_diff = jnp.einsum("bvk,bkw->bvw", evecs, coefs * x_spec)
        x_gX = jnp.einsum("buv,bvw->buw", gradX, x_diff)
        x_gY = jnp.einsum("buv,bvw->buw", gradY, x_diff)
        b_re = x_gX @ params["a_re"][blk] - x_gY @ params["a_im"][blk]
        b_im = x_gY @ params["a_re"][blk] + x_gX @ params["a_im"][blk]
        x_gf = jnp.tanh(x_gX * b_re + x_gY * b_im)
        feat = jnp.concatenate([x, x_diff, x_gf], axis=-1)
        h = jax.nn.relu(feat @ params["w0"][blk] + params["b0"][blk])
        h = jax.nn.relu(h @ params["w1"][blk] + params["b1"][blk])
        h = h @ params["w2"][blk] + params["b2"][blk]
        x = x + h
    x_out = x @ params["w_last"] + params["b_last"]
    return x_out @ params["w_fc"] + params["b_fc"]


def init_params(key, C_in, C_width, C_out, N_block):
    ks = jax.random.split(key, 16)

    def dense(k, shape, fan_in):
        return (jax.random.normal(k, shape, jnp.float32) / jnp.sqrt(fan_in)).astype(jnp.float32)

    def bias(k, shape):
        return (jax.random.normal(k, shape, jnp.float32) * 0.01).astype(jnp.float32)

    p = {}
    p["w_first"] = dense(ks[0], (C_in, C_width), C_in)
    p["b_first"] = bias(ks[1], (1, C_width))
    # learned diffusion times (clamped to >=1e-8 in the kernel, as in the reference)
    p["diff_t"] = (jnp.abs(jax.random.normal(ks[2], (N_block, 1, C_width), jnp.float32))
                   * 0.1).astype(jnp.float32)
    p["a_re"] = dense(ks[3], (N_block, C_width, C_width), C_width)
    p["a_im"] = dense(ks[4], (N_block, C_width, C_width), C_width)
    p["w0"] = dense(ks[5], (N_block, 3 * C_width, C_width), 3 * C_width)
    p["b0"] = bias(ks[6], (N_block, 1, C_width))
    p["w1"] = dense(ks[7], (N_block, C_width, C_width), C_width)
    p["b1"] = bias(ks[8], (N_block, 1, C_width))
    p["w2"] = dense(ks[9], (N_block, C_width, C_width), C_width)
    p["b2"] = bias(ks[10], (N_block, 1, C_width))
    p["w_last"] = dense(ks[11], (C_width, C_out), C_width)
    p["b_last"] = bias(ks[12], (1, C_out))
    p["w_fc"] = dense(ks[13], (C_out, 1), C_out)
    p["b_fc"] = bias(ks[14], (1, 1))
    return p


if __name__ == "__main__":
    key = jax.random.PRNGKey(0)
    B, V, K = 2, 128, 16              # batch, vertices, eigenbasis size
    C_in, C_width, C_out, N_block = 16, 32, 4, 2

    k = jax.random.split(key, 8)
    shots = jax.random.normal(k[0], (B, V, C_in), jnp.float32)
    mass = jnp.abs(jax.random.normal(k[1], (B, V), jnp.float32)) + 0.1
    L = jax.random.normal(k[2], (B, V, V), jnp.float32)        # unused (spectral diffusion)
    evals = jnp.abs(jax.random.normal(k[3], (B, K), jnp.float32))
    evecs = jax.random.normal(k[4], (B, V, K), jnp.float32) / jnp.sqrt(V)
    gradX = jax.random.normal(k[5], (B, V, V), jnp.float32) * 0.05
    gradY = jax.random.normal(k[6], (B, V, V), jnp.float32) * 0.05
    params = init_params(k[7], C_in, C_width, C_out, N_block)

    out = lndnet_forward(shots, mass, L, evals, evecs, gradX, gradY, params)
    out = jax.block_until_ready(out)

    ref = lndnet_reference(shots, mass, L, evals, evecs, gradX, gradY, params)
    assert out.shape == (B, V, 1), out.shape
    assert bool(jnp.all(jnp.isfinite(out)))
    # bf16 is used only for the big operator streams (grad/evecs) with f32 accumulation;
    # tolerance is relaxed slightly vs. a pure-f32 kernel.
    assert bool(jnp.allclose(out, ref, atol=3e-2, rtol=3e-2)), float(jnp.max(jnp.abs(out - ref)))
    print("KERNEL_OK")
</pallas_src>

<mosaic_0001>
module attributes {stable_mosaic.version = 11 : i64} {
  func.func @lndnet_kernel(%arg0: i32, %arg1: memref<1x128x16xf32, #tpu.memory_space<vmem>>, %arg2: memref<1x128x1xf32, #tpu.memory_space<vmem>>, %arg3: memref<1x16x1xf32, #tpu.memory_space<vmem>>, %arg4: memref<1x128x16xbf16, #tpu.memory_space<vmem>>, %arg5: memref<1x16x128xbf16, #tpu.memory_space<vmem>>, %arg6: memref<1x256x128xbf16, #tpu.memory_space<vmem>>, %arg7: memref<16x32xf32, #tpu.memory_space<vmem>>, %arg8: memref<1x32xf32, #tpu.memory_space<vmem>>, %arg9: memref<2x1x32xf32, #tpu.memory_space<vmem>>, %arg10: memref<2x64x64xf32, #tpu.memory_space<vmem>>, %arg11: memref<2x32x32xf32, #tpu.memory_space<vmem>>, %arg12: memref<2x32x32xf32, #tpu.memory_space<vmem>>, %arg13: memref<2x32x32xf32, #tpu.memory_space<vmem>>, %arg14: memref<2x1x32xf32, #tpu.memory_space<vmem>>, %arg15: memref<2x32x32xf32, #tpu.memory_space<vmem>>, %arg16: memref<2x1x32xf32, #tpu.memory_space<vmem>>, %arg17: memref<2x32x32xf32, #tpu.memory_space<vmem>>, %arg18: memref<2x1x32xf32, #tpu.memory_space<vmem>>, %arg19: memref<32x1xf32, #tpu.memory_space<vmem>>, %arg20: memref<1xf32, #tpu.memory_space<smem>>, %arg21: memref<1x1x128xf32, #tpu.memory_space<vmem>>) attributes {dimension_semantics = [#tpu.dimension_semantics<parallel>], iteration_bounds = array<i64: 2>, scalar_prefetch = 0 : i64, scratch_operands = 0 : i64, tpu.core_type = #tpu.core_type<tc>, window_params = [{transform_indices = @transform_0, window_bounds = array<i64: 1, 128, 16>}, {transform_indices = @transform_1, window_bounds = array<i64: 1, 128, 1>}, {transform_indices = @transform_2, window_bounds = array<i64: 1, 16, 1>}, {transform_indices = @transform_3, window_bounds = array<i64: 1, 128, 16>}, {transform_indices = @transform_4, window_bounds = array<i64: 1, 16, 128>}, {transform_indices = @transform_5, window_bounds = array<i64: 1, 256, 128>}, {pipeline_mode = #tpu.pipeline_mode<synchronous>, transform_indices = @transform_6, window_bounds = array<i64: 16, 32>}, {pipeline_mode = #tpu.pipeline_mode<synchronous>, transform_indices = @transform_7, window_bounds = array<i64: 1, 32>}, {pipeline_mode = #tpu.pipeline_mode<synchronous>, transform_indices = @transform_8, window_bounds = array<i64: 2, 1, 32>}, {pipeline_mode = #tpu.pipeline_mode<synchronous>, transform_indices = @transform_9, window_bounds = array<i64: 2, 64, 64>}, {pipeline_mode = #tpu.pipeline_mode<synchronous>, transform_indices = @transform_10, window_bounds = array<i64: 2, 32, 32>}, {pipeline_mode = #tpu.pipeline_mode<synchronous>, transform_indices = @transform_11, window_bounds = array<i64: 2, 32, 32>}, {pipeline_mode = #tpu.pipeline_mode<synchronous>, transform_indices = @transform_12, window_bounds = array<i64: 2, 32, 32>}, {pipeline_mode = #tpu.pipeline_mode<synchronous>, transform_indices = @transform_13, window_bounds = array<i64: 2, 1, 32>}, {pipeline_mode = #tpu.pipeline_mode<synchronous>, transform_indices = @transform_14, window_bounds = array<i64: 2, 32, 32>}, {pipeline_mode = #tpu.pipeline_mode<synchronous>, transform_indices = @transform_15, window_bounds = array<i64: 2, 1, 32>}, {pipeline_mode = #tpu.pipeline_mode<synchronous>, transform_indices = @transform_16, window_bounds = array<i64: 2, 32, 32>}, {pipeline_mode = #tpu.pipeline_mode<synchronous>, transform_indices = @transform_17, window_bounds = array<i64: 2, 1, 32>}, {pipeline_mode = #tpu.pipeline_mode<synchronous>, transform_indices = @transform_18, window_bounds = array<i64: 32, 1>}, {transform_indices = @transform_19, window_bounds = array<i64: 1>}, {transform_indices = @transform_20, window_bounds = array<i64: 1, 1, 128>}]} {
    %c0 = arith.constant 0 : index
    %c0_0 = arith.constant 0 : index
    %c0_1 = arith.constant 0 : index
    %0 = vector.load %arg1[%c0, %c0_0, %c0_1] : memref<1x128x16xf32, #tpu.memory_space<vmem>>, vector<1x128x16xf32>
    %1 = vector.shape_cast %0 : vector<1x128x16xf32> to vector<128x16xf32>
    %c0_2 = arith.constant 0 : index
    %c0_3 = arith.constant 0 : index
    %c0_4 = arith.constant 0 : index
    %2 = vector.load %arg2[%c0_2, %c0_3, %c0_4] : memref<1x128x1xf32, #tpu.memory_space<vmem>>, vector<1x128x1xf32>
    %3 = vector.shape_cast %2 : vector<1x128x1xf32> to vector<128x1xf32>
    %c0_5 = arith.constant 0 : index
    %c0_6 = arith.constant 0 : index
    %c0_7 = arith.constant 0 : index
    %4 = vector.load %arg3[%c0_5, %c0_6, %c0_7] : memref<1x16x1xf32, #tpu.memory_space<vmem>>, vector<1x16x1xf32>
    %5 = vector.shape_cast %4 : vector<1x16x1xf32> to vector<16x1xf32>
    %c0_8 = arith.constant 0 : index
    %c0_9 = arith.constant 0 : index
    %c0_10 = arith.constant 0 : index
    %6 = vector.load %arg4[%c0_8, %c0_9, %c0_10] : memref<1x128x16xbf16, #tpu.memory_space<vmem>>, vector<1x128x16xbf16>
    %7 = vector.shape_cast %6 : vector<1x128x16xbf16> to vector<128x16xbf16>
    %c0_11 = arith.constant 0 : index
    %c0_12 = arith.constant 0 : index
    %c0_13 = arith.constant 0 : index
    %8 = vector.load %arg5[%c0_11, %c0_12, %c0_13] : memref<1x16x128xbf16, #tpu.memory_space<vmem>>, vector<1x16x128xbf16>
    %9 = vector.shape_cast %8 : vector<1x16x128xbf16> to vector<16x128xbf16>
    %c0_14 = arith.constant 0 : index
    %c0_15 = arith.constant 0 : index
    %c0_16 = arith.constant 0 : index
    %10 = vector.load %arg6[%c0_14, %c0_15, %c0_16] : memref<1x256x128xbf16, #tpu.memory_space<vmem>>, vector<1x256x128xbf16>
    %11 = vector.shape_cast %10 : vector<1x256x128xbf16> to vector<256x128xbf16>
    %c0_17 = arith.constant 0 : index
    %c0_18 = arith.constant 0 : index
    %12 = vector.load %arg7[%c0_17, %c0_18] : memref<16x32xf32, #tpu.memory_space<vmem>>, vector<16x32xf32>
    %cst = arith.constant dense<0.000000e+00> : vector<128x32xf32>
    %13 = tpu.matmul %1, %12, %cst {dimension_numbers = #tpu.dot_dimension_numbers<[1], [0], [0], [1], [0, 0, 1, 1], [], []>} : vector<128x16xf32>, vector<16x32xf32>, vector<128x32xf32> -> vector<128x32xf32>
    %c0_19 = arith.constant 0 : index
    %c0_20 = arith.constant 0 : index
    %14 = vector.load %arg8[%c0_19, %c0_20] : memref<1x32xf32, #tpu.memory_space<vmem>>, vector<1x32xf32>
    %15 = vector.broadcast %14 : vector<1x32xf32> to vector<128x32xf32>
    %16 = arith.addf %13, %15 : vector<128x32xf32>
    %c0_21 = arith.constant 0 : index
    %c0_22 = arith.constant 0 : index
    %c0_23 = arith.constant 0 : index
    %17 = vector.load %arg9[%c0_21, %c0_22, %c0_23] : memref<2x1x32xf32, #tpu.memory_space<vmem>>, vector<1x1x32xf32>
    %18 = vector.shape_cast %17 : vector<1x1x32xf32> to vector<1x32xf32>
    %cst_24 = arith.constant 9.99999993E-9 : f32
    %19 = vector.broadcast %cst_24 : f32 to vector<1x32xf32>
    %20 = arith.maximumf %18, %19 : vector<1x32xf32>
    %21 = vector.broadcast %3 : vector<128x1xf32> to vector<128x32xf32>
    %22 = arith.mulf %16, %21 : vector<128x32xf32>
    %23 = arith.truncf %22 : vector<128x32xf32> to vector<128x32xbf16>
    %cst_25 = arith.constant dense<0.000000e+00> : vector<16x32xf32>
    %24 = tpu.matmul %9, %23, %cst_25 {dimension_numbers = #tpu.dot_dimension_numbers<[1], [0], [0], [1], [0, 0, 1, 1], [], []>} : vector<16x128xbf16>, vector<128x32xbf16>, vector<16x32xf32> -> vector<16x32xf32>
    %cst_26 = arith.constant 0.000000e+00 : f32
    %25 = vector.broadcast %cst_26 : f32 to vector<16x1xf32>
    %26 = arith.subf %25, %5 : vector<16x1xf32>
    %27 = vector.broadcast %26 : vector<16x1xf32> to vector<16x32xf32>
    %28 = vector.broadcast %20 : vector<1x32xf32> to vector<16x32xf32>
    %29 = arith.mulf %27, %28 : vector<16x32xf32>
    %30 = math.exp %29 : vector<16x32xf32>
    %31 = arith.mulf %30, %24 : vector<16x32xf32>
    %32 = arith.truncf %31 : vector<16x32xf32> to vector<16x32xbf16>
    %cst_27 = arith.constant dense<0.000000e+00> : vector<128x32xf32>
    %33 = tpu.matmul %7, %32, %cst_27 {dimension_numbers = #tpu.dot_dimension_numbers<[1], [0], [0], [1], [0, 0, 1, 1], [], []>} : vector<128x16xbf16>, vector<16x32xbf16>, vector<128x32xf32> -> vector<128x32xf32>
    %34 = arith.truncf %33 : vector<128x32xf32> to vector<128x32xbf16>
    %cst_28 = arith.constant dense<0.000000e+00> : vector<256x32xf32>
    %35 = tpu.matmul %11, %34, %cst_28 {dimension_numbers = #tpu.dot_dimension_numbers<[1], [0], [0], [1], [0, 0, 1, 1], [], []>} : vector<256x128xbf16>, vector<128x32xbf16>, vector<256x32xf32> -> vector<256x32xf32>
    %36 = vector.extract_strided_slice %35 {offsets = [0, 0], sizes = [128, 32], strides = [1, 1]} : vector<256x32xf32> to vector<128x32xf32>
    %37 = vector.extract_strided_slice %35 {offsets = [128, 0], sizes = [128, 32], strides = [1, 1]} : vector<256x32xf32> to vector<128x32xf32>
    %38 = tpu.concatenate %36, %37 in 1 : vector<128x32xf32>, vector<128x32xf32> -> vector<128x64xf32>
    %c0_29 = arith.constant 0 : index
    %c0_30 = arith.constant 0 : index
    %c0_31 = arith.constant 0 : index
    %39 = vector.load %arg10[%c0_29, %c0_30, %c0_31] : memref<2x64x64xf32, #tpu.memory_space<vmem>>, vector<1x64x64xf32>
    %40 = vector.shape_cast %39 : vector<1x64x64xf32> to vector<64x64xf32>
    %cst_32 = arith.constant dense<0.000000e+00> : vector<128x64xf32>
    %41 = tpu.matmul %38, %40, %cst_32 {dimension_numbers = #tpu.dot_dimension_numbers<[1], [0], [0], [1], [0, 0, 1, 1], [], []>} : vector<128x64xf32>, vector<64x64xf32>, vector<128x64xf32> -> vector<128x64xf32>
    %42 = arith.mulf %38, %41 : vector<128x64xf32>
    %43 = vector.extract_strided_slice %42 {offsets = [0, 0], sizes = [128, 32], strides = [1, 1]} : vector<128x64xf32> to vector<128x32xf32>
    %44 = vector.extract_strided_slice %42 {offsets = [0, 32], sizes = [128, 32], strides = [1, 1]} : vector<128x64xf32> to vector<128x32xf32>
    %45 = arith.addf %43, %44 : vector<128x32xf32>
    %46 = math.tanh %45 : vector<128x32xf32>
    %c0_33 = arith.constant 0 : index
    %c0_34 = arith.constant 0 : index
    %c0_35 = arith.constant 0 : index
    %47 = vector.load %arg11[%c0_33, %c0_34, %c0_35] : memref<2x32x32xf32, #tpu.memory_space<vmem>>, vector<1x32x32xf32>
    %48 = vector.shape_cast %47 : vector<1x32x32xf32> to vector<32x32xf32>
    %cst_36 = arith.constant dense<0.000000e+00> : vector<128x32xf32>
    %49 = tpu.matmul %16, %48, %cst_36 {dimension_numbers = #tpu.dot_dimension_numbers<[1], [0], [0], [1], [0, 0, 1, 1], [], []>} : vector<128x32xf32>, vector<32x32xf32>, vector<128x32xf32> -> vector<128x32xf32>
    %c0_37 = arith.constant 0 : index
    %c0_38 = arith.constant 0 : index
    %c0_39 = arith.constant 0 : index
    %50 = vector.load %arg12[%c0_37, %c0_38, %c0_39] : memref<2x32x32xf32, #tpu.memory_space<vmem>>, vector<1x32x32xf32>
    %51 = vector.shape_cast %50 : vector<1x32x32xf32> to vector<32x32xf32>
    %cst_40 = arith.constant dense<0.000000e+00> : vector<128x32xf32>
    %52 = tpu.matmul %33, %51, %cst_40 {dimension_numbers = #tpu.dot_dimension_numbers<[1], [0], [0], [1], [0, 0, 1, 1], [], []>} : vector<128x32xf32>, vector<32x32xf32>, vector<128x32xf32> -> vector<128x32xf32>
    %53 = arith.addf %49, %52 : vector<128x32xf32>
    %c0_41 = arith.constant 0 : index
    %c0_42 = arith.constant 0 : index
    %c0_43 = arith.constant 0 : index
    %54 = vector.load %arg13[%c0_41, %c0_42, %c0_43] : memref<2x32x32xf32, #tpu.memory_space<vmem>>, vector<1x32x32xf32>
    %55 = vector.shape_cast %54 : vector<1x32x32xf32> to vector<32x32xf32>
    %cst_44 = arith.constant dense<0.000000e+00> : vector<128x32xf32>
    %56 = tpu.matmul %46, %55, %cst_44 {dimension_numbers = #tpu.dot_dimension_numbers<[1], [0], [0], [1], [0, 0, 1, 1], [], []>} : vector<128x32xf32>, vector<32x32xf32>, vector<128x32xf32> -> vector<128x32xf32>
    %57 = arith.addf %53, %56 : vector<128x32xf32>
    %c0_45 = arith.constant 0 : index
    %c0_46 = arith.constant 0 : index
    %c0_47 = arith.constant 0 : index
    %58 = vector.load %arg14[%c0_45, %c0_46, %c0_47] : memref<2x1x32xf32, #tpu.memory_space<vmem>>, vector<1x1x32xf32>
    %59 = vector.shape_cast %58 : vector<1x1x32xf32> to vector<1x32xf32>
    %60 = vector.broadcast %59 : vector<1x32xf32> to vector<128x32xf32>
    %61 = arith.addf %57, %60 : vector<128x32xf32>
    %cst_48 = arith.constant 0.000000e+00 : f32
    %62 = vector.broadcast %cst_48 : f32 to vector<128x32xf32>
    %63 = arith.maximumf %61, %62 : vector<128x32xf32>
    %c0_49 = arith.constant 0 : index
    %c0_50 = arith.constant 0 : index
    %c0_51 = arith.constant 0 : index
    %64 = vector.load %arg15[%c0_49, %c0_50, %c0_51] : memref<2x32x32xf32, #tpu.memory_space<vmem>>, vector<1x32x32xf32>
    %65 = vector.shape_cast %64 : vector<1x32x32xf32> to vector<32x32xf32>
    %cst_52 = arith.constant dense<0.000000e+00> : vector<128x32xf32>
    %66 = tpu.matmul %63, %65, %cst_52 {dimension_numbers = #tpu.dot_dimension_numbers<[1], [0], [0], [1], [0, 0, 1, 1], [], []>} : vector<128x32xf32>, vector<32x32xf32>, vector<128x32xf32> -> vector<128x32xf32>
    %c0_53 = arith.constant 0 : index
    %c0_54 = arith.constant 0 : index
    %c0_55 = arith.constant 0 : index
    %67 = vector.load %arg16[%c0_53, %c0_54, %c0_55] : memref<2x1x32xf32, #tpu.memory_space<vmem>>, vector<1x1x32xf32>
    %68 = vector.shape_cast %67 : vector<1x1x32xf32> to vector<1x32xf32>
    %69 = vector.broadcast %68 : vector<1x32xf32> to vector<128x32xf32>
    %70 = arith.addf %66, %69 : vector<128x32xf32>
    %cst_56 = arith.constant 0.000000e+00 : f32
    %71 = vector.broadcast %cst_56 : f32 to vector<128x32xf32>
    %72 = arith.maximumf %70, %71 : vector<128x32xf32>
    %c0_57 = arith.constant 0 : index
    %c0_58 = arith.constant 0 : index
    %c0_59 = arith.constant 0 : index
    %73 = vector.load %arg17[%c0_57, %c0_58, %c0_59] : memref<2x32x32xf32, #tpu.memory_space<vmem>>, vector<1x32x32xf32>
    %74 = vector.shape_cast %73 : vector<1x32x32xf32> to vector<32x32xf32>
    %cst_60 = arith.constant dense<0.000000e+00> : vector<128x32xf32>
    %75 = tpu.matmul %72, %74, %cst_60 {dimension_numbers = #tpu.dot_dimension_numbers<[1], [0], [0], [1], [0, 0, 1, 1], [], []>} : vector<128x32xf32>, vector<32x32xf32>, vector<128x32xf32> -> vector<128x32xf32>
    %c0_61 = arith.constant 0 : index
    %c0_62 = arith.constant 0 : index
    %c0_63 = arith.constant 0 : index
    %76 = vector.load %arg18[%c0_61, %c0_62, %c0_63] : memref<2x1x32xf32, #tpu.memory_space<vmem>>, vector<1x1x32xf32>
    %77 = vector.shape_cast %76 : vector<1x1x32xf32> to vector<1x32xf32>
    %78 = vector.broadcast %77 : vector<1x32xf32> to vector<128x32xf32>
    %79 = arith.addf %75, %78 : vector<128x32xf32>
    %80 = arith.addf %16, %79 : vector<128x32xf32>
    %c1 = arith.constant 1 : index
    %c0_64 = arith.constant 0 : index
    %c0_65 = arith.constant 0 : index
    %81 = vector.load %arg9[%c1, %c0_64, %c0_65] : memref<2x1x32xf32, #tpu.memory_space<vmem>>, vector<1x1x32xf32>
    %82 = vector.shape_cast %81 : vector<1x1x32xf32> to vector<1x32xf32>
    %cst_66 = arith.constant 9.99999993E-9 : f32
    %83 = vector.broadcast %cst_66 : f32 to vector<1x32xf32>
    %84 = arith.maximumf %82, %83 : vector<1x32xf32>
    %85 = vector.broadcast %3 : vector<128x1xf32> to vector<128x32xf32>
    %86 = arith.mulf %80, %85 : vector<128x32xf32>
    %87 = arith.truncf %86 : vector<128x32xf32> to vector<128x32xbf16>
    %cst_67 = arith.constant dense<0.000000e+00> : vector<16x32xf32>
    %88 = tpu.matmul %9, %87, %cst_67 {dimension_numbers = #tpu.dot_dimension_numbers<[1], [0], [0], [1], [0, 0, 1, 1], [], []>} : vector<16x128xbf16>, vector<128x32xbf16>, vector<16x32xf32> -> vector<16x32xf32>
    %cst_68 = arith.constant 0.000000e+00 : f32
    %89 = vector.broadcast %cst_68 : f32 to vector<16x1xf32>
    %90 = arith.subf %89, %5 : vector<16x1xf32>
    %91 = vector.broadcast %90 : vector<16x1xf32> to vector<16x32xf32>
    %92 = vector.broadcast %84 : vector<1x32xf32> to vector<16x32xf32>
    %93 = arith.mulf %91, %92 : vector<16x32xf32>
    %94 = math.exp %93 : vector<16x32xf32>
    %95 = arith.mulf %94, %88 : vector<16x32xf32>
    %96 = arith.truncf %95 : vector<16x32xf32> to vector<16x32xbf16>
    %cst_69 = arith.constant dense<0.000000e+00> : vector<128x32xf32>
    %97 = tpu.matmul %7, %96, %cst_69 {dimension_numbers = #tpu.dot_dimension_numbers<[1], [0], [0], [1], [0, 0, 1, 1], [], []>} : vector<128x16xbf16>, vector<16x32xbf16>, vector<128x32xf32> -> vector<128x32xf32>
    %98 = arith.truncf %97 : vector<128x32xf32> to vector<128x32xbf16>
    %cst_70 = arith.constant dense<0.000000e+00> : vector<256x32xf32>
    %99 = tpu.matmul %11, %98, %cst_70 {dimension_numbers = #tpu.dot_dimension_numbers<[1], [0], [0], [1], [0, 0, 1, 1], [], []>} : vector<256x128xbf16>, vector<128x32xbf16>, vector<256x32xf32> -> vector<256x32xf32>
    %100 = vector.extract_strided_slice %99 {offsets = [0, 0], sizes = [128, 32], strides = [1, 1]} : vector<256x32xf32> to vector<128x32xf32>
    %101 = vector.extract_strided_slice %99 {offsets = [128, 0], sizes = [128, 32], strides = [1, 1]} : vector<256x32xf32> to vector<128x32xf32>
    %102 = tpu.concatenate %100, %101 in 1 : vector<128x32xf32>, vector<128x32xf32> -> vector<128x64xf32>
    %c1_71 = arith.constant 1 : index
    %c0_72 = arith.constant 0 : index
    %c0_73 = arith.constant 0 : index
    %103 = vector.load %arg10[%c1_71, %c0_72, %c0_73] : memref<2x64x64xf32, #tpu.memory_space<vmem>>, vector<1x64x64xf32>
    %104 = vector.shape_cast %103 : vector<1x64x64xf32> to vector<64x64xf32>
    %cst_74 = arith.constant dense<0.000000e+00> : vector<128x64xf32>
    %105 = tpu.matmul %102, %104, %cst_74 {dimension_numbers = #tpu.dot_dimension_numbers<[1], [0], [0], [1], [0, 0, 1, 1], [], []>} : vector<128x64xf32>, vector<64x64xf32>, vector<128x64xf32> -> vector<128x64xf32>
    %106 = arith.mulf %102, %105 : vector<128x64xf32>
    %107 = vector.extract_strided_slice %106 {offsets = [0, 0], sizes = [128, 32], strides = [1, 1]} : vector<128x64xf32> to vector<128x32xf32>
    %108 = vector.extract_strided_slice %106 {offsets = [0, 32], sizes = [128, 32], strides = [1, 1]} : vector<128x64xf32> to vector<128x32xf32>
    %109 = arith.addf %107, %108 : vector<128x32xf32>
    %110 = math.tanh %109 : vector<128x32xf32>
    %c1_75 = arith.constant 1 : index
    %c0_76 = arith.constant 0 : index
    %c0_77 = arith.constant 0 : index
    %111 = vector.load %arg11[%c1_75, %c0_76, %c0_77] : memref<2x32x32xf32, #tpu.memory_space<vmem>>, vector<1x32x32xf32>
    %112 = vector.shape_cast %111 : vector<1x32x32xf32> to vector<32x32xf32>
    %cst_78 = arith.constant dense<0.000000e+00> : vector<128x32xf32>
    %113 = tpu.matmul %80, %112, %cst_78 {dimension_numbers = #tpu.dot_dimension_numbers<[1], [0], [0], [1], [0, 0, 1, 1], [], []>} : vector<128x32xf32>, vector<32x32xf32>, vector<128x32xf32> -> vector<128x32xf32>
    %c1_79 = arith.constant 1 : index
    %c0_80 = arith.constant 0 : index
    %c0_81 = arith.constant 0 : index
    %114 = vector.load %arg12[%c1_79, %c0_80, %c0_81] : memref<2x32x32xf32, #tpu.memory_space<vmem>>, vector<1x32x32xf32>
    %115 = vector.shape_cast %114 : vector<1x32x32xf32> to vector<32x32xf32>
    %cst_82 = arith.constant dense<0.000000e+00> : vector<128x32xf32>
    %116 = tpu.matmul %97, %115, %cst_82 {dimension_numbers = #tpu.dot_dimension_numbers<[1], [0], [0], [1], [0, 0, 1, 1], [], []>} : vector<128x32xf32>, vector<32x32xf32>, vector<128x32xf32> -> vector<128x32xf32>
    %117 = arith.addf %113, %116 : vector<128x32xf32>
    %c1_83 = arith.constant 1 : index
    %c0_84 = arith.constant 0 : index
    %c0_85 = arith.constant 0 : index
    %118 = vector.load %arg13[%c1_83, %c0_84, %c0_85] : memref<2x32x32xf32, #tpu.memory_space<vmem>>, vector<1x32x32xf32>
    %119 = vector.shape_cast %118 : vector<1x32x32xf32> to vector<32x32xf32>
    %cst_86 = arith.constant dense<0.000000e+00> : vector<128x32xf32>
    %120 = tpu.matmul %110, %119, %cst_86 {dimension_numbers = #tpu.dot_dimension_numbers<[1], [0], [0], [1], [0, 0, 1, 1], [], []>} : vector<128x32xf32>, vector<32x32xf32>, vector<128x32xf32> -> vector<128x32xf32>
    %121 = arith.addf %117, %120 : vector<128x32xf32>
    %c1_87 = arith.constant 1 : index
    %c0_88 = arith.constant 0 : index
    %c0_89 = arith.constant 0 : index
    %122 = vector.load %arg14[%c1_87, %c0_88, %c0_89] : memref<2x1x32xf32, #tpu.memory_space<vmem>>, vector<1x1x32xf32>
    %123 = vector.shape_cast %122 : vector<1x1x32xf32> to vector<1x32xf32>
    %124 = vector.broadcast %123 : vector<1x32xf32> to vector<128x32xf32>
    %125 = arith.addf %121, %124 : vector<128x32xf32>
    %cst_90 = arith.constant 0.000000e+00 : f32
    %126 = vector.broadcast %cst_90 : f32 to vector<128x32xf32>
    %127 = arith.maximumf %125, %126 : vector<128x32xf32>
    %c1_91 = arith.constant 1 : index
    %c0_92 = arith.constant 0 : index
    %c0_93 = arith.constant 0 : index
    %128 = vector.load %arg15[%c1_91, %c0_92, %c0_93] : memref<2x32x32xf32, #tpu.memory_space<vmem>>, vector<1x32x32xf32>
    %129 = vector.shape_cast %128 : vector<1x32x32xf32> to vector<32x32xf32>
    %cst_94 = arith.constant dense<0.000000e+00> : vector<128x32xf32>
    %130 = tpu.matmul %127, %129, %cst_94 {dimension_numbers = #tpu.dot_dimension_numbers<[1], [0], [0], [1], [0, 0, 1, 1], [], []>} : vector<128x32xf32>, vector<32x32xf32>, vector<128x32xf32> -> vector<128x32xf32>
    %c1_95 = arith.constant 1 : index
    %c0_96 = arith.constant 0 : index
    %c0_97 = arith.constant 0 : index
    %131 = vector.load %arg16[%c1_95, %c0_96, %c0_97] : memref<2x1x32xf32, #tpu.memory_space<vmem>>, vector<1x1x32xf32>
    %132 = vector.shape_cast %131 : vector<1x1x32xf32> to vector<1x32xf32>
    %133 = vector.broadcast %132 : vector<1x32xf32> to vector<128x32xf32>
    %134 = arith.addf %130, %133 : vector<128x32xf32>
    %cst_98 = arith.constant 0.000000e+00 : f32
    %135 = vector.broadcast %cst_98 : f32 to vector<128x32xf32>
    %136 = arith.maximumf %134, %135 : vector<128x32xf32>
    %c1_99 = arith.constant 1 : index
    %c0_100 = arith.constant 0 : index
    %c0_101 = arith.constant 0 : index
    %137 = vector.load %arg17[%c1_99, %c0_100, %c0_101] : memref<2x32x32xf32, #tpu.memory_space<vmem>>, vector<1x32x32xf32>
    %138 = vector.shape_cast %137 : vector<1x32x32xf32> to vector<32x32xf32>
    %cst_102 = arith.constant dense<0.000000e+00> : vector<128x32xf32>
    %139 = tpu.matmul %136, %138, %cst_102 {dimension_numbers = #tpu.dot_dimension_numbers<[1], [0], [0], [1], [0, 0, 1, 1], [], []>} : vector<128x32xf32>, vector<32x32xf32>, vector<128x32xf32> -> vector<128x32xf32>
    %c1_103 = arith.constant 1 : index
    %c0_104 = arith.constant 0 : index
    %c0_105 = arith.constant 0 : index
    %140 = vector.load %arg18[%c1_103, %c0_104, %c0_105] : memref<2x1x32xf32, #tpu.memory_space<vmem>>, vector<1x1x32xf32>
    %141 = vector.shape_cast %140 : vector<1x1x32xf32> to vector<1x32xf32>
    %142 = vector.broadcast %141 : vector<1x32xf32> to vector<128x32xf32>
    %143 = arith.addf %139, %142 : vector<128x32xf32>
    %144 = arith.addf %80, %143 : vector<128x32xf32>
    %c0_106 = arith.constant 0 : index
    %c0_107 = arith.constant 0 : index
    %145 = vector.load %arg19[%c0_106, %c0_107] : memref<32x1xf32, #tpu.memory_space<vmem>>, vector<32x1xf32>
    %cst_108 = arith.constant dense<0.000000e+00> : vector<128x1xf32>
    %146 = tpu.matmul %144, %145, %cst_108 {dimension_numbers = #tpu.dot_dimension_numbers<[1], [0], [0], [1], [0, 0, 1, 1], [], []>} : vector<128x32xf32>, vector<32x1xf32>, vector<128x1xf32> -> vector<128x1xf32>
    %147 = vector.shape_cast %146 : vector<128x1xf32> to vector<128xf32>
    %c0_109 = arith.constant 0 : index
    %148 = memref.load %arg20[%c0_109] : memref<1xf32, #tpu.memory_space<smem>>
    %149 = vector.broadcast %148 : f32 to vector<128xf32>
    %150 = arith.addf %147, %149 : vector<128xf32>
    %c0_110 = arith.constant 0 : index
    %c0_111 = arith.constant 0 : index
    %c0_112 = arith.constant 0 : index
    %151 = vector.load %arg21[%c0_110, %c0_111, %c0_112] : memref<1x1x128xf32, #tpu.memory_space<vmem>>, vector<1x1x128xf32>
    %152 = vector.shape_cast %151 : vector<1x1x128xf32> to vector<128xf32>
    %153 = vector.shape_cast %150 : vector<128xf32> to vector<1x1x128xf32>
    tpu.vector_store %arg21[%c0_110, %c0_111, %c0_112], %153 {strides = array<i32>} : memref<1x1x128xf32, #tpu.memory_space<vmem>>, vector<1x1x128xf32>,
    return
  }
  func.func @transform_0(%arg0: i32) -> (i32, i32, i32) {
    %c0_i32 = arith.constant 0 : i32
    %c0_i32_0 = arith.constant 0 : i32
    %c0_i32_1 = arith.constant 0 : i32
    return %arg0, %c0_i32, %c0_i32_0 : i32, i32, i32
  }
  func.func @transform_1(%arg0: i32) -> (i32, i32, i32) {
    %c0_i32 = arith.constant 0 : i32
    %c0_i32_0 = arith.constant 0 : i32
    %c0_i32_1 = arith.constant 0 : i32
    return %arg0, %c0_i32, %c0_i32_0 : i32, i32, i32
  }
  func.func @transform_2(%arg0: i32) -> (i32, i32, i32) {
    %c0_i32 = arith.constant 0 : i32
    %c0_i32_0 = arith.constant 0 : i32
    %c0_i32_1 = arith.constant 0 : i32
    return %arg0, %c0_i32, %c0_i32_0 : i32, i32, i32
  }
  func.func @transform_3(%arg0: i32) -> (i32, i32, i32) {
    %c0_i32 = arith.constant 0 : i32
    %c0_i32_0 = arith.constant 0 : i32
    %c0_i32_1 = arith.constant 0 : i32
    return %arg0, %c0_i32, %c0_i32_0 : i32, i32, i32
  }
  func.func @transform_4(%arg0: i32) -> (i32, i32, i32) {
    %c0_i32 = arith.constant 0 : i32
    %c0_i32_0 = arith.constant 0 : i32
    %c0_i32_1 = arith.constant 0 : i32
    return %arg0, %c0_i32, %c0_i32_0 : i32, i32, i32
  }
  func.func @transform_5(%arg0: i32) -> (i32, i32, i32) {
    %c0_i32 = arith.constant 0 : i32
    %c0_i32_0 = arith.constant 0 : i32
    %c0_i32_1 = arith.constant 0 : i32
    return %arg0, %c0_i32, %c0_i32_0 : i32, i32, i32
  }
  func.func @transform_6(%arg0: i32) -> (i32, i32) {
    %c0_i32 = arith.constant 0 : i32
    %c0_i32_0 = arith.constant 0 : i32
    %c0_i32_1 = arith.constant 0 : i32
    return %c0_i32, %c0_i32_0 : i32, i32
  }
  func.func @transform_7(%arg0: i32) -> (i32, i32) {
    %c0_i32 = arith.constant 0 : i32
    %c0_i32_0 = arith.constant 0 : i32
    %c0_i32_1 = arith.constant 0 : i32
    return %c0_i32, %c0_i32_0 : i32, i32
  }
  func.func @transform_8(%arg0: i32) -> (i32, i32, i32) {
    %c0_i32 = arith.constant 0 : i32
    %c0_i32_0 = arith.constant 0 : i32
    %c0_i32_1 = arith.constant 0 : i32
    %c0_i32_2 = arith.constant 0 : i32
    return %c0_i32, %c0_i32_0, %c0_i32_1 : i32, i32, i32
  }
  func.func @transform_9(%arg0: i32) -> (i32, i32, i32) {
    %c0_i32 = arith.constant 0 : i32
    %c0_i32_0 = arith.constant 0 : i32
    %c0_i32_1 = arith.constant 0 : i32
    %c0_i32_2 = arith.constant 0 : i32
    return %c0_i32, %c0_i32_0, %c0_i32_1 : i32, i32, i32
  }
  func.func @transform_10(%arg0: i32) -> (i32, i32, i32) {
    %c0_i32 = arith.constant 0 : i32
    %c0_i32_0 = arith.constant 0 : i32
    %c0_i32_1 = arith.constant 0 : i32
    %c0_i32_2 = arith.constant 0 : i32
    return %c0_i32, %c0_i32_0, %c0_i32_1 : i32, i32, i32
  }
  func.func @transform_11(%arg0: i32) -> (i32, i32, i32) {
    %c0_i32 = arith.constant 0 : i32
    %c0_i32_0 = arith.constant 0 : i32
    %c0_i32_1 = arith.constant 0 : i32
    %c0_i32_2 = arith.constant 0 : i32
    return %c0_i32, %c0_i32_0, %c0_i32_1 : i32, i32, i32
  }
  func.func @transform_12(%arg0: i32) -> (i32, i32, i32) {
    %c0_i32 = arith.constant 0 : i32
    %c0_i32_0 = arith.constant 0 : i32
    %c0_i32_1 = arith.constant 0 : i32
    %c0_i32_2 = arith.constant 0 : i32
    return %c0_i32, %c0_i32_0, %c0_i32_1 : i32, i32, i32
  }
  func.func @transform_13(%arg0: i32) -> (i32, i32, i32) {
    %c0_i32 = arith.constant 0 : i32
    %c0_i32_0 = arith.constant 0 : i32
    %c0_i32_1 = arith.constant 0 : i32
    %c0_i32_2 = arith.constant 0 : i32
    return %c0_i32, %c0_i32_0, %c0_i32_1 : i32, i32, i32
  }
  func.func @transform_14(%arg0: i32) -> (i32, i32, i32) {
    %c0_i32 = arith.constant 0 : i32
    %c0_i32_0 = arith.constant 0 : i32
    %c0_i32_1 = arith.constant 0 : i32
    %c0_i32_2 = arith.constant 0 : i32
    return %c0_i32, %c0_i32_0, %c0_i32_1 : i32, i32, i32
  }
  func.func @transform_15(%arg0: i32) -> (i32, i32, i32) {
    %c0_i32 = arith.constant 0 : i32
    %c0_i32_0 = arith.constant 0 : i32
    %c0_i32_1 = arith.constant 0 : i32
    %c0_i32_2 = arith.constant 0 : i32
    return %c0_i32, %c0_i32_0, %c0_i32_1 : i32, i32, i32
  }
  func.func @transform_16(%arg0: i32) -> (i32, i32, i32) {
    %c0_i32 = arith.constant 0 : i32
    %c0_i32_0 = arith.constant 0 : i32
    %c0_i32_1 = arith.constant 0 : i32
    %c0_i32_2 = arith.constant 0 : i32
    return %c0_i32, %c0_i32_0, %c0_i32_1 : i32, i32, i32
  }
  func.func @transform_17(%arg0: i32) -> (i32, i32, i32) {
    %c0_i32 = arith.constant 0 : i32
    %c0_i32_0 = arith.constant 0 : i32
    %c0_i32_1 = arith.constant 0 : i32
    %c0_i32_2 = arith.constant 0 : i32
    return %c0_i32, %c0_i32_0, %c0_i32_1 : i32, i32, i32
  }
  func.func @transform_18(%arg0: i32) -> (i32, i32) {
    %c0_i32 = arith.constant 0 : i32
    %c0_i32_0 = arith.constant 0 : i32
    %c0_i32_1 = arith.constant 0 : i32
    return %c0_i32, %c0_i32_0 : i32, i32
  }
  func.func @transform_19(%arg0: i32) -> i32 {
    %c0_i32 = arith.constant 0 : i32
    %c0_i32_0 = arith.constant 0 : i32
    return %c0_i32 : i32
  }
  func.func @transform_20(%arg0: i32) -> (i32, i32, i32) {
    %c0_i32 = arith.constant 0 : i32
    %c0_i32_0 = arith.constant 0 : i32
    %c0_i32_1 = arith.constant 0 : i32
    return %arg0, %c0_i32, %c0_i32_0 : i32, i32, i32
  }
}

</mosaic_0001>

<bundles_post_ra>
// kernel: tpu_custom_call.1
= control target key start
LH: loop header
LB: loop body
LE: loop exit
PB: predicated region body
PF: predicated region fallthrough
CT: control target
= control target key end

     0   :  { %s6144_s0 = inlined_call_operand.vmem [shape: f32[2,128,16], index: 0, kind: input, shape index: {}]   ;;  %s6145_s1 = inlined_call_operand.vmem [shape: f32[2,128,1], index: 1, kind: input, shape index: {}]   ;;  %s6146_s2 = inlined_call_operand.vmem [shape: f32[2,16,1], index: 2, kind: input, shape index: {}]   ;;  %s6147_s3 = inlined_call_operand.vmem [shape: bf16[2,128,16], index: 3, kind: input, shape index: {}]   ;;  %s6148_s4 = inlined_call_operand.vmem [shape: bf16[2,16,128], index: 4, kind: input, shape index: {}]   ;;  %s6149_s5 = inlined_call_operand.vmem [shape: bf16[2,256,128], index: 5, kind: input, shape index: {}]   ;;  %s6150_s6 = inlined_call_operand.vmem [shape: f32[16,32], index: 6, kind: input, shape index: {}]   ;;  %s6151_s7 = inlined_call_operand.vmem [shape: f32[1,32], index: 7, kind: input, shape index: {}]   ;;  %s6152_s8 = inlined_call_operand.vmem [shape: f32[2,1,32], index: 8, kind: input, shape index: {}]   ;;  %s6153_s9 = inlined_call_operand.vmem [shape: f32[2,64,64], index: 9, kind: input, shape index: {}]   ;;  %s6154_s10 = inlined_call_operand.vmem [shape: f32[2,32,32], index: 10, kind: input, shape index: {}]   ;;  %s6155_s11 = inlined_call_operand.vmem [shape: f32[2,32,32], index: 11, kind: input, shape index: {}]   ;;  %s6156_s12 = inlined_call_operand.vmem [shape: f32[2,32,32], index: 12, kind: input, shape index: {}]   ;;  %s6157_s13 = inlined_call_operand.vmem [shape: f32[2,1,32], index: 13, kind: input, shape index: {}]   ;;  %s6158_s14 = inlined_call_operand.vmem [shape: f32[2,32,32], index: 14, kind: input, shape index: {}]   ;;  %s6159_s15 = inlined_call_operand.vmem [shape: f32[2,1,32], index: 15, kind: input, shape index: {}]   ;;  %s6160_s16 = inlined_call_operand.hbm [shape: f32[2,32,32], index: 16, kind: input, shape index: {}]   ;;  %s6161_s17 = inlined_call_operand.vmem [shape: f32[2,1,32], index: 17, kind: input, shape index: {}]   ;;  %s6162_s18 = inlined_call_operand.vmem [shape: f32[32,1], index: 18, kind: input, shape index: {}]   ;;  %s6163_s19 = inlined_call_operand.<no memory space> [shape: f32[1], index: 19, kind: input, shape index: {}]   ;;  %s6164_s20 = inlined_call_operand.hbm [shape: f32[2,1,128], index: 20, kind: output, shape index: {}]  }
   0x1   :  { %6173 = sst [smem:[#allocation13_spill]] %s6144_s0 }
   0x2   :  { %6174 = sst [smem:[#allocation14_spill]] %s6145_s1 }
   0x3   :  { %6175 = sst [smem:[#allocation15_spill]] %s6146_s2 }
   0x4   :  { %6176 = sst [smem:[#allocation16_spill]] %s6147_s3 }
   0x5   :  { %6177 = sst [smem:[#allocation17_spill]] %s6148_s4 }
   0x6   :  { %6178 = sst [smem:[#allocation18_spill]] %s6160_s16 }
   0x7   :  { %25 = sst [smem:[#allocation2]] %s6163_s19 }
   0x8   :  { %26 = vsyncpa [#allocation4], 0 }
   0x9   :  { %27 = vsyncpa [#allocation5], 0 }
   0xa   :  { %29 = vsyncpa [#allocation5 + $0x1], 0  ;;  %s4801_s23 = smov 0   ;;  %s4803_s24 = smov 0  }
   0xb   :  { %s4805_s2 = smov 0   ;;  %s4807_s25 = smov 0  }
   0xc LB: > { %6179 = sst [smem:[#allocation9_spill]] %s4681_s2  ;;  %s4822_s19 = sadd.s32 4294967295, %s4685_s25   ;;  %s4685_s25 = sphi %s4807_s25, %s6194_s25   ;;  %s4681_s2 = sphi %s4805_s2, %s6196_s2   ;;  %s4677_s24 = sphi %s4803_s24, %s6198_s24   ;;  %s4673_s23 = sphi %s4801_s23, %s6197_s23  }
   0xd   : > { %s4000_s3 = sadd.s32 4294967294, %s4685_s25   ;;  %s4826_s26 = sadd.s32 1, %s4685_s25  }
   0xe   : > { %6180 = sst [smem:[#allocation10_spill]] %s4826_s26  ;;  %s492_s27 = sadd.s32 1, %s4681_s2 }
   0xf   : > { %s489_s28 = ssub.s32 %s4685_s25, %s4826_s26  ;;  %p502_p0 = scmp.ne.s32.totalorder %s4681_s2, %s4677_s24 }
  0x10   : > { %p490_p1 = scmp.eq.s32.totalorder %s489_s28, 0  ;;  %p503_p2 = scmp.eq.s32.totalorder %s4822_s19, 1 }
  0x11   : > { %p508_p3 = scmp.ne.s32.totalorder %s4677_s24, %s4673_s23  ;;  %p509_p4 = scmp.eq.s32.totalorder %s4000_s3, 1 }
  0x12   : > { %s4837_s4 = scalar_select %p490_p1, %s4681_s2, %s492_s27  }
  0x13   : > { %p4839_p5 = por %p503_p2, %p502_p0  ;;  %p4843_p6 = por %p509_p4, %p508_p3 }
  0x14   : > { %6181 = sst [smem:[#allocation11_spill]] %s4837_s4  ;;  %p4001_p7 = scmp.ge.s32.totalorder %s4685_s25, 1 }
  0x15   : > { %s6183_s30 = scalar_select %p4843_p6, 1, 0 }
  0x16   : > { %p516_p8 = scmp.lt.s32.totalorder %s4685_s25, 3  ;;  %p4441_p9 = scmp.eq.s32.totalorder %s4822_s19, 0 }
  0x17   : > { %6184 = sst [smem:[#allocation12_spill]] %s6183_s30  ;;  %s4687_s22 = smov [#allocation3]  }
  0x18   : > { %p517_p10 = pnand %p4001_p7, %p516_p8  ;;  %s6185_s16 = sld [smem:[#allocation18_spill]] }
  0x19   : > { %s559_s3 = sshll.u32 %s4687_s22, 4  ;;  %s4688_s27 = smov 128   ;;  %s560_s3 = int_to_ptr.vmem [resolvable:$true] %s559_s3 }
  0x1a   : > { %p4433_p11 = pneg %p517_p10  ;;  %s4689_s28 = smov 8  }
  0x1b   : > { %632 = sbr.rel (%p517_p10) target bundleno = 3759 (0xeaf), region = 100 }
  0x1c   : > { %p4434_p12 = pnand %p4441_p9, %p4433_p11 }
  0x1e   : > { %s557_s1 = sshll.u32 %s6185_s16, 4  ;;  %s558_s1 = int_to_ptr.hbm [resolvable:$true] %s557_s1 }
  0x1f   : > { %4436 = dma.hbm_to_vmem [thread:$0]  (!%p4434_p12), %s558_s1, 1024, %s560_s3, [#allocation4], %s4688_s27, %s4688_s27, %s4689_s28  }
  0x20   : > { %4664 = dma.done.wait (%p4441_p9), [#allocation4], 1024  }
  0x21   : > { %4666 = vsyncadd (%p4441_p9), [#allocation4], 4294966272  ;;  %p715_p13 = scmp.lt.s32.totalorder %s4822_s19, 1  ;;  %v4690_v0 = vmov 0   ;;  %s6186_s3 = sld [smem:[#allocation14_spill]]  ;;  %v831_v1 = vld [vmem:[%s6150_s6 + $0x8] sm:$0xff] }
  0x22   : > { %4482 = vset.pattern.permute.xlu0 %v4690_v0  ;;  %4484 = vset.pattern.permute.xlu2 %v4690_v0  ;;  %s6187_s4 = sld [smem:[#allocation13_spill]]  ;;  %v830_v3 = vld [vmem:[%s6150_s6] sm:$0xff]  ;;  %vm836_vm0 = vcmask 130048   ;;  %vm1470_vm1 = vcmask 261120   ;;  %vm1495_vm2 = vcmask 523264   ;;  %vm3800_vm3 = vcmask 130112  }
  0x23   : > { %s4861_s0 = scalar_select %p715_p13, %s4822_s19, 1  ;;  %4483 = vset.pattern.permute.xlu1 %v4690_v0  ;;  %899 = vmatpush.msra.mxu0 %v831_v1  ;;  %v4485_v60 = vld [vmem:[%s6151_s7] ss:$0 sm:$0xff]  ;;  %vm3804_vm4 = vcmask 195712   ;;  %vm3808_vm5 = vcmask 261312   ;;  %vm3812_vm6 = vcmask 326912  }
  0x24   : > { %s6188_s30 = sld [smem:[#allocation15_spill]]  ;;  %vm3816_vm7 = vcmask 392512   ;;  %vm3820_vm8 = vcmask 458112   ;;  %vm3824_vm9 = vcmask 523712   ;;  %vm3828_vm10 = vcmask 589312  }
  0x25   : > { %s4864_s21 = sshll.u32 %s4861_s0, 7  ;;  %900 = vmatpush.msra.mxu0 %v830_v3  ;;  %s4390_s16 = sshll.u32 %s4861_s0, 4  ;;  %vm3832_vm11 = vcmask 654912   ;;  %vm3836_vm12 = vcmask 720512   ;;  %vm3840_vm13 = vcmask 786112   ;;  %vm3844_vm14 = vcmask 851712  }
  0x26   : > { %s4392_s28 = sshll.u32 %s4861_s0, 3  ;;  %s5111_s22 = scalar_lea.vmem %s6149_s5, %s4864_s21  ;;  %vm3848_vm15 = vcmask 917312  }
  0x27   : > { %s4870_s27 = scalar_lea.vmem %s6186_s3, %s4864_s21 }
  0x28   : > { %s4876_s2 = scalar_lea.vmem %s6187_s4, %s4864_s21  ;;  %v776_v2 = vld [vmem:[%s4870_s27 + $0x70] sm:$0xff]  ;;  %v774_v5 = vld [vmem:[%s4870_s27 + $0x60] sm:$0xff]  ;;  %v777_v7 = vld [vmem:[%s4870_s27 + $0x78] sm:$0xff]  ;;  %s6171_s21 = smov 32  }
  0x29   : > { %1024 = vperm.xlu0 %4482, %v776_v2   ;;  %v746_v4 = vld [vmem:[%s4876_s2] sm:$0xff]  ;;  %1014 = vperm.xlu1 %4483, %v774_v5   ;;  %v772_v6 = vld [vmem:[%s4870_s27 + $0x50] sm:$0xff]  ;;  %v775_v8 = vld [vmem:[%s4870_s27 + $0x68] sm:$0xff] }
  0x2a   : > { %1004 = vperm.xlu2 %4484, %v772_v6   ;;  %4018 = vmatmul.msk.f32.vlgmr.msra.gmra.mxu0 %vm836_vm0, %v746_v4  ;;  %v773_v9 = vld [vmem:[%s4870_s27 + $0x58] sm:$0xff]  ;;  %v747_v10 = vld [vmem:[%s4876_s2 + $0x8] sm:$0xff]  ;;  %v770_v11 = vld [vmem:[%s4870_s27 + $0x40] sm:$0xff]  ;;  %s729_s3 = scalar_lea.vmem %s6188_s30, %s4390_s16  ;;  %s6189_s16 = sld [smem:[#allocation17_spill]] }
  0x2b   : > { %v771_v12 = vld [vmem:[%s4870_s27 + $0x48] sm:$0xff]  ;;  %v768_v13 = vld [vmem:[%s4870_s27 + $0x30] sm:$0xff]  ;;  %v769_v15 = vld [vmem:[%s4870_s27 + $0x38] sm:$0xff] }
  0x2c   : > { %v748_v14 = vld [vmem:[%s4876_s2 + $0x10] sm:$0xff]  ;;  %v766_v16 = vld [vmem:[%s4870_s27 + $0x20] sm:$0xff]  ;;  %v767_v17 = vld [vmem:[%s4870_s27 + $0x28] sm:$0xff] }
  0x2d   : > { %v749_v18 = vld [vmem:[%s4876_s2 + $0x18] sm:$0xff]  ;;  %v764_v19 = vld [vmem:[%s4870_s27 + $0x10] sm:$0xff]  ;;  %v762_v21 = vld [vmem:[%s4870_s27] sm:$0xff] }
  0x2e   : > { %v765_v20 = vld [vmem:[%s4870_s27 + $0x18] sm:$0xff]  ;;  %v750_v22 = vld [vmem:[%s4876_s2 + $0x20] sm:$0xff]  ;;  %v763_v23 = vld [vmem:[%s4870_s27 + $0x8] sm:$0xff] }
  0x2f   : > { %v751_v24 = vld [vmem:[%s4876_s2 + $0x28] sm:$0xff]  ;;  %v752_v25 = vld [vmem:[%s4876_s2 + $0x30] sm:$0xff]  ;;  %v753_v26 = vld [vmem:[%s4876_s2 + $0x38] sm:$0xff] }
  0x30   : > { %v754_v27 = vld [vmem:[%s4876_s2 + $0x40] sm:$0xff]  ;;  %v755_v28 = vld [vmem:[%s4876_s2 + $0x48] sm:$0xff]  ;;  %v756_v29 = vld [vmem:[%s4876_s2 + $0x50] sm:$0xff]  ;;  %s5045_s26 = scalar_lea.vmem %s6189_s16, %s4392_s28  ;;  %s6190_s28 = sld [smem:[#allocation16_spill]] }
  0x31   : > { %1029 = vperm.xlu0 %4482, %v777_v7   ;;  %1019 = vperm.xlu1 %4483, %v775_v8   ;;  %v757_v30 = vld [vmem:[%s4876_s2 + $0x58] sm:$0xff]  ;;  %v778_v31 = vld [vmem:[%s729_s3] sm:$0xff]  ;;  %v759_v34 = vld [vmem:[%s4876_s2 + $0x68] sm:$0xff]  ;;  %s6169_s16 = smov 96  }
  0x32   : > { %1009 = vperm.xlu2 %4484, %v773_v9   ;;  %4019 = vmatmul.msk.f32.gmra.mxu0 %vm836_vm0, %v747_v10  ;;  %v1076_v32 = vsub.f32 0.0, %v778_v31  ;;  %v758_v33 = vld [vmem:[%s4876_s2 + $0x60] sm:$0xff]  ;;  %v760_v35 = vld [vmem:[%s4876_s2 + $0x70] sm:$0xff]  ;;  %v761_v36 = vld [vmem:[%s4876_s2 + $0x78] sm:$0xff] }
  0x33   : > { %v779_v37 = vld [vmem:[%s729_s3 + $0x8] sm:$0xff]  ;;  %s4391_s3 = sshll.u32 %s4861_s0, 6 }
  0x34   : > { %v1077_v38 = vsub.f32 0.0, %v779_v37 }
  0x36   : > { %s5061_s1 = scalar_lea.vmem %s6190_s28, %s4391_s3  ;;  %s3869_s3 = scalar_lea.hbm %s6164_s20, %s4822_s19 }
  0x37   : > { %s3873_s2 = sshll.u32 %s3869_s3, 4  ;;  %s3874_s2 = int_to_ptr.hbm [resolvable:$true] %s3873_s2 }
  0x38   : > { %s4633_s27 = sshra.s32 %s3874_s2, 4  ;;  %s4634_s27 = int_to_ptr.hbm [resolvable:$true] %s4633_s27 }
  0x39   : > { %994 = vperm.xlu0 %4482, %v770_v11   ;;  %999 = vperm.xlu1 %4483, %v771_v12   ;;  %s4635_s28 = scalar_lea.hbm %s4634_s27, 1  ;;  %p4640_p3 = scmp.lt.s32.totalorder %s4634_s27, %s6164_s20 }
  0x3a   : > { %984 = vperm.xlu2 %4484, %v768_v13   ;;  %4020 = vmatmul.msk.f32.gmra.mxu0 %vm836_vm0, %v748_v14  ;;  %p4636_p0 = scmp.ne.s32.totalorder %s4634_s27, %s4635_s28 }
  0x3c   : > { %p4637_p1 = pnand %p4636_p0, %p4839_p5 }
  0x3e   : > { %p4638_p2 = pneg %p4637_p1 }
  0x41   : > { %989 = vperm.xlu0 %4482, %v769_v15   ;;  %974 = vperm.xlu1 %4483, %v766_v16  }
  0x42   : > { %979 = vperm.xlu2 %4484, %v767_v17   ;;  %4021 = vmatmul.msk.f32.gmra.mxu0 %vm836_vm0, %v749_v18 }
  0x49   : > { %964 = vperm.xlu0 %4482, %v764_v19   ;;  %969 = vperm.xlu1 %4483, %v765_v20  }
  0x4a   : > { %954 = vperm.xlu2 %4484, %v762_v21   ;;  %4022 = vmatmul.msk.f32.gmra.mxu0 %vm836_vm0, %v750_v22 }
  0x51   : > { %959 = vperm.xlu0 %4482, %v763_v23   ;;  %1080 = vperm.xlu1 %4483, %v1076_v32  }
  0x52   : > { %4023 = vmatmul.msk.f32.gmra.mxu0 %vm836_vm0, %v751_v24  ;;  %1085 = vperm.xlu2 %4484, %v1077_v38  }
  0x5a   : > { %4024 = vmatmul.msk.f32.gmra.mxu0 %vm836_vm0, %v752_v25 }
  0x62   : > { %4025 = vmatmul.msk.f32.gmra.mxu0 %vm836_vm0, %v753_v26 }
  0x6a   : > { %4026 = vmatmul.msk.f32.gmra.mxu0 %vm836_vm0, %v754_v27 }
  0x72   : > { %4027 = vmatmul.msk.f32.gmra.mxu0 %vm836_vm0, %v755_v28 }
  0x7a   : > { %4028 = vmatmul.msk.f32.gmra.mxu0 %vm836_vm0, %v756_v29 }
  0x82   : > { %4029 = vmatmul.msk.f32.gmra.mxu0 %vm836_vm0, %v757_v30 }
  0x84   : > { %v4946_v56 = vpop.permute.xlu2 %1004 }
  0x8a   : > { %4030 = vmatmul.msk.f32.gmra.mxu0 %vm836_vm0, %v758_v33 }
  0x8c   : > { %v4955_v61 = vpop.permute.xlu2 %1009 }
  0x92   : > { %4031 = vmatmul.msk.f32.gmra.mxu0 %vm836_vm0, %v759_v34 }
  0x94   : > { %v4981_v12 = vpop.permute.xlu2 %984 }
  0x9a   : > { %4032 = vmatmul.msk.f32.gmra.mxu0 %vm836_vm0, %v760_v35 }
  0x9b   : > { %v4940_v51 = vpop.permute.xlu0 %1024  ;;  %v4942_v53 = vpop.permute.xlu1 %1014 }
  0x9c   : > { %v5007_v28 = vpop.permute.xlu2 %979 }
  0xa2   : > { %4033 = vmatmul.msk.f32.gmra.mxu0 %vm836_vm0, %v761_v36 }
  0xa3   : > { %v4944_v55 = vpop.permute.xlu0 %1029  ;;  %v4948_v57 = vpop.permute.xlu1 %1019 }
  0xa7   : > { %v4936_v39 = vpop.f32.mrf.mxu0 }
  0xab   : > { %v4950_v59 = vpop.permute.xlu0 %994  ;;  %v4963_v2 = vpop.permute.xlu1 %999 }
  0xaf   : > { %v4938_v40 = vpop.f32.mrf.mxu0 }
  0xb3   : > { %v4975_v9 = vpop.permute.xlu0 %989  ;;  %v4991_v18 = vpop.permute.xlu1 %974 }
  0xb7   : > { %v908_v41 = vpop.f32.mrf.mxu0 }
  0xb8   : > { %v5019_v35 = vadd.f32 %v4485_v60, %v908_v41 }
  0xbb   : > { %v5001_v24 = vpop.permute.xlu0 %964  ;;  %v5017_v34 = vpop.permute.xlu1 %969 }
  0xbc   : > { %v1034_v41 = vmul.f32 %v5001_v24, %v5019_v35 }
  0xbf   : > { %v911_v42 = vpop.f32.mrf.mxu0 }
  0xc0   : > { %v5013_v31 = vadd.f32 %v4485_v60, %v911_v42  ;;  %v5028_v42 = vadd.f32 %v4485_v60, %v4936_v39 }
  0xc2   : > { %v1035_v37 = vmul.f32 %v5017_v34, %v5013_v31 }
  0xc7   : > { %v914_v43 = vpop.f32.mrf.mxu0 }
  0xc8   : > { %v5009_v29 = vadd.f32 %v4485_v60, %v914_v43  ;;  %v5025_v43 = vpop.permute.xlu0 %959 }
  0xca   : > { %v1036_v36 = vmul.f32 %v4991_v18, %v5009_v29 }
  0xcf   : > { %v917_v44 = vpop.f32.mrf.mxu0 }
  0xd0   : > { %v5003_v25 = vadd.f32 %v4485_v60, %v917_v44  ;;  %v5031_v44 = vadd.f32 %v4485_v60, %v4938_v40  ;;  %v4402_v40 = vld [vmem:[%s5045_s26] sm:$0xff] }
  0xd2   : > { %v1037_v33 = vmul.f32 %v5007_v28, %v5003_v25 }
  0xd4   : > { %v1050_v38 = vpack.c.bf16 %v1037_v33, %v1036_v36  ;;  %v1728_v33 = vld [vmem:[%s6155_s11 + $0x18] sm:$0xff]  ;;  %v1727_v36 = vld [vmem:[%s6155_s11 + $0x10] sm:$0xff] }
  0xd5   : > { %1789 = vmatpush.msrb.mxu0 %v1728_v33  ;;  %v4403_v33 = vld [vmem:[%s5111_s22] sm:$0xff] }
  0xd7   : > { %v920_v45 = vpop.f32.mrf.mxu0  ;;  %1790 = vmatpush.msrb.mxu0 %v1727_v36  ;;  %v4404_v36 = vld [vmem:[%s5111_s22 + $0x8] sm:$0xff] }
  0xd8   : > { %v4997_v22 = vadd.f32 %v4485_v60, %v920_v45  ;;  %v5035_v45 = vpop.permute.xlu2 %954 }
  0xda   : > { %v1038_v30 = vmul.f32 %v4981_v12, %v4997_v22 }
  0xdf   : > { %v923_v46 = vpop.f32.mrf.mxu0 }
  0xe0   : > { %v4993_v19 = vadd.f32 %v4485_v60, %v923_v46  ;;  %v1033_v46 = vmul.f32 %v5025_v43, %v5031_v44 }
  0xe2   : > { %v1039_v27 = vmul.f32 %v4975_v9, %v4993_v19 }
  0xe4   : > { %v1051_v32 = vpack.c.bf16 %v1039_v27, %v1038_v30  ;;  %v4397_v27 = vld [vmem:[%s5061_s1 + $0x18] sm:$0xff]  ;;  %v4398_v30 = vld [vmem:[%s5061_s1 + $0x20] sm:$0xff] }
  0xe7   : > { %v926_v47 = vpop.f32.mrf.mxu0 }
  0xe8   : > { %v4987_v16 = vadd.f32 %v4485_v60, %v926_v47  ;;  %v1049_v47 = vpack.c.bf16 %v1035_v37, %v1034_v41  ;;  %v1726_v37 = vld [vmem:[%s6155_s11 + $0x8] sm:$0xff]  ;;  %v1725_v41 = vld [vmem:[%s6155_s11] sm:$0xff] }
  0xe9   : > { %1791 = vmatpush.msrb.mxu0 %v1726_v37  ;;  %v4405_v37 = vld [vmem:[%s5111_s22 + $0x10] sm:$0xff] }
  0xea   : > { %v1040_v23 = vmul.f32 %v4950_v59, %v4987_v16 }
  0xeb   : > { %1792 = vmatpush.msrb.mxu0 %v1725_v41  ;;  %v4407_v41 = vld [vmem:[%s5111_s22 + $0x20] sm:$0xff] }
  0xef   : > { %v929_v48 = vpop.f32.mrf.mxu0 }
  0xf0   : > { %v4983_v13 = vadd.f32 %v4485_v60, %v929_v48  ;;  %v1032_v48 = vmul.f32 %v5035_v45, %v5028_v42 }
  0xf2   : > { %v1041_v21 = vmul.f32 %v4963_v2, %v4983_v13  ;;  %v1048_v39 = vpack.c.bf16 %v1033_v46, %v1032_v48  ;;  %v4401_v46 = vld [vmem:[%s5061_s1 + $0x38] sm:$0xff] }
  0xf4   : > { %v1052_v26 = vpack.c.bf16 %v1041_v21, %v1040_v23  ;;  %v4394_v21 = vld [vmem:[%s5061_s1] sm:$0xff]  ;;  %v4395_v23 = vld [vmem:[%s5061_s1 + $0x8] sm:$0xff] }
  0xf7   : > { %v932_v49 = vpop.f32.mrf.mxu0 }
  0xf8   : > { %v4977_v10 = vadd.f32 %v4485_v60, %v932_v49  ;;  %v950_v49 = vld [vmem:[%s6152_s8] sm:$0x1] }
  0xfa   : > { %v1042_v17 = vmul.f32 %v4946_v56, %v4977_v10 }
  0xff   : > { %v935_v50 = vpop.f32.mrf.mxu0 }
 0x100   : > { %v4971_v6 = vadd.f32 %v4485_v60, %v935_v50  ;;  %v951_v50 = vmax.f32 %v950_v49, 1e-08 }
 0x102   : > { %v1043_v15 = vmul.f32 %v4955_v61, %v4971_v6 }
 0x104   : > { %v1053_v20 = vpack.c.bf16 %v1043_v15, %v1042_v17 }
 0x107   : > { %v938_v52 = vpop.f32.mrf.mxu0 }
 0x108   : > { %v4965_v3 = vadd.f32 %v4485_v60, %v938_v52  ;;  %v1089_v52 = vperm.slane %v951_v50, 0 }
 0x10a   : > { %v1044_v11 = vmul.f32 %v4942_v53, %v4965_v3 }
 0x10f   : > { %v941_v54 = vpop.f32.mrf.mxu0 }
 0x110   : > { %v4959_v0 = vadd.f32 %v4485_v60, %v941_v54  ;;  %v5051_v54 = vpop.permute.xlu1 %1080 }
 0x112   : > { %v1045_v8 = vmul.f32 %v4948_v57, %v4959_v0 }
 0x114   : > { %v1054_v14 = vpack.c.bf16 %v1045_v8, %v1044_v11 }
 0x117   : > { %v944_v58 = vpop.f32.mrf.mxu0 }
 0x118   : > { %v4957_v62 = vadd.f32 %v4485_v60, %v944_v58  ;;  %v5053_v58 = vpop.permute.xlu2 %1085 }
 0x11a   : > { %v1046_v4 = vmul.f32 %v4940_v51, %v4957_v62 }
 0x11f   : > { %v947_v63 = vpop.f32.mrf.mxu0 }
 0x120   : > { %v4961_v1 = vadd.f32 %v4485_v60, %v947_v63  ;;  %v1091_v60 = vmul.f32 %v1089_v52, %v5051_v54  ;;  %v1092_v63 = vmul.f32 %v1089_v52, %v5053_v58 }
 0x122   : > { %v1047_v5 = vmul.f32 %v4944_v55, %v4961_v1 }
 0x124   : > { %v1055_v7 = vpack.c.bf16 %v1047_v5, %v1046_v4  ;;  %v1093_v4 = vmul.f32 1.442695, %v1091_v60  ;;  %v1095_v5 = vmul.f32 1.442695, %v1092_v63 }
 0x126   : > { %1062 = vmatpush.bf16.msra.mxu1 %v1055_v7  ;;  %4492 = vpow2.f32 %v1093_v4 }
 0x127   : > { %4494 = vpow2.f32 %v1095_v5 }
 0x12a   : > { %1063 = vmatpush.bf16.msra.mxu1 %v1054_v14 }
 0x12c   : > { %v4493_v8 = vpop.eup %4492 }
 0x12d   : > { %v4495_v11 = vpop.eup %4494 }
 0x12e   : > { %1064 = vmatpush.bf16.msra.mxu1 %v1053_v20 }
 0x132   : > { %1065 = vmatpush.bf16.msra.mxu1 %v1052_v26  ;;  %v4396_v26 = vld [vmem:[%s5061_s1 + $0x10] sm:$0xff] }
 0x136   : > { %1066 = vmatpush.bf16.msra.mxu1 %v1051_v32  ;;  %v4399_v32 = vld [vmem:[%s5061_s1 + $0x28] sm:$0xff] }
 0x13a   : > { %1067 = vmatpush.bf16.msra.mxu1 %v1050_v38  ;;  %v4400_v38 = vld [vmem:[%s5061_s1 + $0x30] sm:$0xff] }
 0x13e   : > { %1068 = vmatpush.bf16.msra.mxu1 %v1049_v47 }
 0x142   : > { %1069 = vmatpush.bf16.msra.mxu1 %v1048_v39 }
 0x145   : > { %1070 = vmatmul.bf16.vlgmr.msra.gmra.mxu1 %v4402_v40 }
 0x1c2   : > { %v1071_v7 = vpop.f32.mrf.mxu1 }
 0x1c3   : > { %v1097_v15 = vmul.f32 %v4493_v8, %v1071_v7 }
 0x1ca   : > { %v1073_v14 = vpop.f32.mrf.mxu1 }
 0x1cb   : > { %v1098_v17 = vmul.f32 %v4495_v11, %v1073_v14 }
 0x1cd   : > { %v1099_v20 = vpack.c.bf16 %v1098_v17, %v1097_v15 }
 0x1cf   : > { %1171 = vmatpush.bf16.msra.mxu2 %v1099_v20 }
 0x1d2   : > { %4070 = vmatmul.msk.bf16.vlgmr.msra.gmra.mxu2 %vm836_vm0, %v4394_v21 }
 0x1e2   : > { %4071 = vmatmul.msk.bf16.gmra.mxu2 %vm836_vm0, %v4395_v23 }
 0x1f2   : > { %4072 = vmatmul.msk.bf16.gmra.mxu2 %vm836_vm0, %v4396_v26 }
 0x202   : > { %4073 = vmatmul.msk.bf16.gmra.mxu2 %vm836_vm0, %v4397_v27 }
 0x212   : > { %4074 = vmatmul.msk.bf16.gmra.mxu2 %vm836_vm0, %v4398_v30 }
 0x222   : > { %4075 = vmatmul.msk.bf16.gmra.mxu2 %vm836_vm0, %v4399_v32 }
 0x232   : > { %4076 = vmatmul.msk.bf16.gmra.mxu2 %vm836_vm0, %v4400_v38  ;;  %v4406_v38 = vld [vmem:[%s5111_s22 + $0x18] sm:$0xff] }
 0x242   : > { %4077 = vmatmul.msk.bf16.gmra.mxu2 %vm836_vm0, %v4401_v46  ;;  %v4408_v46 = vld [vmem:[%s5111_s22 + $0x28] sm:$0xff] }
 0x255   : > { %v1173_v47 = vpop.f32.mrf.mxu2 }
 0x256   : > { %4158 = vmatmul.msk.f32.vlgmr.msrb.gmra.mxu0 %vm1470_vm1, %v1173_v47 }
 0x25d   : > { %v1175_v48 = vpop.f32.mrf.mxu2 }
 0x25e   : > { %4159 = vmatmul.msk.f32.gmra.mxu0 %vm1470_vm1, %v1175_v48  ;;  %v1213_v32 = vpack.c.bf16 %v1175_v48, %v1173_v47  ;;  %v4410_v47 = vld [vmem:[%s5111_s22 + $0x38] sm:$0xff]  ;;  %v4411_v48 = vld [vmem:[%s5111_s22 + $0x40] sm:$0xff] }
 0x265   : > { %v1178_v39 = vpop.f32.mrf.mxu2 }
 0x266   : > { %4160 = vmatmul.msk.f32.gmra.mxu0 %vm1470_vm1, %v1178_v39 }
 0x26d   : > { %v1180_v40 = vpop.f32.mrf.mxu2 }
 0x26e   : > { %4161 = vmatmul.msk.f32.gmra.mxu0 %vm1470_vm1, %v1180_v40  ;;  %v1214_v30 = vpack.c.bf16 %v1180_v40, %v1178_v39  ;;  %v4409_v39 = vld [vmem:[%s5111_s22 + $0x30] sm:$0xff] }
 0x275   : > { %v1183_v49 = vpop.f32.mrf.mxu2 }
 0x276   : > { %4162 = vmatmul.msk.f32.gmra.mxu0 %vm1470_vm1, %v1183_v49 }
 0x27d   : > { %v1185_v50 = vpop.f32.mrf.mxu2 }
 0x27e   : > { %4163 = vmatmul.msk.f32.gmra.mxu0 %vm1470_vm1, %v1185_v50  ;;  %v1215_v27 = vpack.c.bf16 %v1185_v50, %v1183_v49  ;;  %v4412_v50 = vld [vmem:[%s5111_s22 + $0x48] sm:$0xff] }
 0x285   : > { %v1188_v52 = vpop.f32.mrf.mxu2 }
 0x286   : > { %4164 = vmatmul.msk.f32.gmra.mxu0 %vm1470_vm1, %v1188_v52 }
 0x28d   : > { %v1190_v60 = vpop.f32.mrf.mxu2 }
 0x28e   : > { %4165 = vmatmul.msk.f32.gmra.mxu0 %vm1470_vm1, %v1190_v60  ;;  %v1216_v26 = vpack.c.bf16 %v1190_v60, %v1188_v52 }
 0x295   : > { %v1193_v63 = vpop.f32.mrf.mxu2 }
 0x296   : > { %4166 = vmatmul.msk.f32.gmra.mxu0 %vm1470_vm1, %v1193_v63 }
 0x29d   : > { %v1195_v4 = vpop.f32.mrf.mxu2 }
 0x29e   : > { %4167 = vmatmul.msk.f32.gmra.mxu0 %vm1470_vm1, %v1195_v4  ;;  %v1217_v23 = vpack.c.bf16 %v1195_v4, %v1193_v63  ;;  %v4413_v63 = vld [vmem:[%s5111_s22 + $0x50] sm:$0xff] }
 0x2a5   : > { %v1198_v5 = vpop.f32.mrf.mxu2 }
 0x2a6   : > { %4168 = vmatmul.msk.f32.gmra.mxu0 %vm1470_vm1, %v1198_v5 }
 0x2ad   : > { %v1200_v7 = vpop.f32.mrf.mxu2 }
 0x2ae   : > { %4169 = vmatmul.msk.f32.gmra.mxu0 %vm1470_vm1, %v1200_v7  ;;  %v1218_v21 = vpack.c.bf16 %v1200_v7, %v1198_v5  ;;  %v4414_v7 = vld [vmem:[%s5111_s22 + $0x58] sm:$0xff] }
 0x2b5   : > { %v1203_v8 = vpop.f32.mrf.mxu2 }
 0x2b6   : > { %4170 = vmatmul.msk.f32.gmra.mxu0 %vm1470_vm1, %v1203_v8 }
 0x2bd   : > { %v1205_v11 = vpop.f32.mrf.mxu2 }
 0x2be   : > { %4171 = vmatmul.msk.f32.gmra.mxu0 %vm1470_vm1, %v1205_v11  ;;  %v1219_v20 = vpack.c.bf16 %v1205_v11, %v1203_v8 }
 0x2c5   : > { %v1208_v14 = vpop.f32.mrf.mxu2 }
 0x2c6   : > { %4172 = vmatmul.msk.f32.gmra.mxu0 %vm1470_vm1, %v1208_v14 }
 0x2cd   : > { %v1210_v15 = vpop.f32.mrf.mxu2 }
 0x2ce   : > { %4173 = vmatmul.msk.f32.gmra.mxu0 %vm1470_vm1, %v1210_v15  ;;  %v1220_v17 = vpack.c.bf16 %v1210_v15, %v1208_v14  ;;  %v4415_v14 = vld [vmem:[%s5111_s22 + $0x60] sm:$0xff] }
 0x2d0   : > { %1317 = vmatpush.bf16.msra.mxu3 %v1220_v17 }
 0x2d4   : > { %1318 = vmatpush.bf16.msra.mxu3 %v1219_v20  ;;  %v4416_v20 = vld [vmem:[%s5111_s22 + $0x68] sm:$0xff] }
 0x2d8   : > { %1319 = vmatpush.bf16.msra.mxu3 %v1218_v21 }
 0x2dc   : > { %1320 = vmatpush.bf16.msra.mxu3 %v1217_v23 }
 0x2e0   : > { %1321 = vmatpush.bf16.msra.mxu3 %v1216_v26  ;;  %v4417_v26 = vld [vmem:[%s5111_s22 + $0x70] sm:$0xff] }
 0x2e4   : > { %1322 = vmatpush.bf16.msra.mxu3 %v1215_v27 }
 0x2e8   : > { %1323 = vmatpush.bf16.msra.mxu3 %v1214_v30 }
 0x2ec   : > { %1324 = vmatpush.bf16.msra.mxu3 %v1213_v32  ;;  %v4418_v32 = vld [vmem:[%s5111_s22 + $0x78] sm:$0xff] }
 0x2ef   : > { %1325 = vmatmul.bf16.vlgmr.msra.gmra.mxu3 %v4403_v33 }
 0x2ff   : > { %1330 = vmatmul.bf16.gmra.mxu3 %v4404_v36 }
 0x30f   : > { %1335 = vmatmul.bf16.gmra.mxu3 %v4405_v37 }
 0x31f   : > { %1340 = vmatmul.bf16.gmra.mxu3 %v4406_v38 }
 0x32f   : > { %1345 = vmatmul.bf16.gmra.mxu3 %v4407_v41 }
 0x33f   : > { %1350 = vmatmul.bf16.gmra.mxu3 %v4408_v46 }
 0x34f   : > { %1355 = vmatmul.bf16.gmra.mxu3 %v4409_v39 }
 0x35f   : > { %1360 = vmatmul.bf16.gmra.mxu3 %v4410_v47 }
 0x36f   : > { %1365 = vmatmul.bf16.gmra.mxu3 %v4411_v48 }
 0x372   : > { %v5122_v40 = vpop.f32.mrf.mxu3 }
 0x37a   : > { %v5124_v49 = vpop.f32.mrf.mxu3 }
 0x37f   : > { %1370 = vmatmul.bf16.gmra.mxu3 %v4412_v50 }
 0x382   : > { %v5127_v52 = vpop.f32.mrf.mxu3 }
 0x38a   : > { %v5129_v60 = vpop.f32.mrf.mxu3 }
 0x38f   : > { %1375 = vmatmul.bf16.gmra.mxu3 %v4413_v63 }
 0x392   : > { %v5132_v4 = vpop.f32.mrf.mxu3 }
 0x39a   : > { %v5134_v5 = vpop.f32.mrf.mxu3 }
 0x39f   : > { %1380 = vmatmul.bf16.gmra.mxu3 %v4414_v7  ;;  %v1494_v7 = vld [vmem:[%s6153_s9 + $0x38] sm:$0xff] }
 0x3a0   : > { %1552 = vmatpush.msrb.mxu1 %v1494_v7  ;;  %4419 = vmatpush.msrb.mxu2 %v1494_v7 }
 0x3a2   : > { %v5137_v8 = vpop.f32.mrf.mxu3 }
 0x3aa   : > { %v5139_v11 = vpop.f32.mrf.mxu3 }
 0x3af   : > { %1385 = vmatmul.bf16.gmra.mxu3 %v4415_v14  ;;  %v1493_v14 = vld [vmem:[%s6153_s9 + $0x30] sm:$0xff] }
 0x3b0   : > { %1553 = vmatpush.msrb.mxu1 %v1493_v14  ;;  %4420 = vmatpush.msrb.mxu2 %v1493_v14 }
 0x3b2   : > { %v5142_v15 = vpop.f32.mrf.mxu3 }
 0x3ba   : > { %v5144_v17 = vpop.f32.mrf.mxu3 }
 0x3bf   : > { %1390 = vmatmul.bf16.gmra.mxu3 %v4416_v20 }
 0x3c2   : > { %v5147_v21 = vpop.f32.mrf.mxu3 }
 0x3ca   : > { %v5149_v23 = vpop.f32.mrf.mxu3 }
 0x3cf   : > { %1395 = vmatmul.bf16.gmra.mxu3 %v4417_v26  ;;  %v1492_v26 = vld [vmem:[%s6153_s9 + $0x28] sm:$0xff] }
 0x3d0   : > { %1554 = vmatpush.msrb.mxu1 %v1492_v26  ;;  %4421 = vmatpush.msrb.mxu2 %v1492_v26 }
 0x3d2   : > { %v5152_v27 = vpop.f32.mrf.mxu3 }
 0x3da   : > { %v5154_v30 = vpop.f32.mrf.mxu3 }
 0x3df   : > { %1400 = vmatmul.bf16.gmra.mxu3 %v4418_v32  ;;  %v1491_v32 = vld [vmem:[%s6153_s9 + $0x20] sm:$0xff] }
 0x3e0   : > { %1555 = vmatpush.msrb.mxu1 %v1491_v32  ;;  %4422 = vmatpush.msrb.mxu2 %v1491_v32 }
 0x3e2   : > { %v5157_v33 = vpop.f32.mrf.mxu3 }
 0x3ea   : > { %v5159_v36 = vpop.f32.mrf.mxu3 }
 0x3f2   : > { %v1366_v37 = vpop.f32.mrf.mxu3 }
 0x3f3   : > { %1422 = vrot.lane.b32.xlu0 %v1366_v37, %s6171_s21  ;;  %v1490_v37 = vld [vmem:[%s6153_s9 + $0x18] sm:$0xff] }
 0x3f4   : > { %1556 = vmatpush.msrb.mxu1 %v1490_v37  ;;  %4423 = vmatpush.msrb.mxu2 %v1490_v37 }
 0x3fa   : > { %v1368_v38 = vpop.f32.mrf.mxu3 }
 0x3fb   : > { %1424 = vrot.lane.b32.xlu1 %v1368_v38, %s6171_s21  ;;  %v1489_v38 = vld [vmem:[%s6153_s9 + $0x10] sm:$0xff] }
 0x3fc   : > { %1557 = vmatpush.msrb.mxu1 %v1489_v38  ;;  %4424 = vmatpush.msrb.mxu2 %v1489_v38 }
 0x402   : > { %v1371_v41 = vpop.f32.mrf.mxu3 }
 0x403   : > { %1426 = vrot.lane.b32.xlu2 %v1371_v41, %s6171_s21 }
 0x40a   : > { %v1373_v46 = vpop.f32.mrf.mxu3 }
 0x40b   : > { %1428 = vrot.lane.b32.xlu0 %v1373_v46, %s6171_s21  ;;  %v1488_v46 = vld [vmem:[%s6153_s9 + $0x8] sm:$0xff] }
 0x40c   : > { %1558 = vmatpush.msrb.mxu1 %v1488_v46  ;;  %4425 = vmatpush.msrb.mxu2 %v1488_v46 }
 0x412   : > { %v1376_v39 = vpop.f32.mrf.mxu3 }
 0x413   : > { %1430 = vrot.lane.b32.xlu1 %v1376_v39, %s6171_s21  ;;  %v1487_v39 = vld [vmem:[%s6153_s9] sm:$0xff] }
 0x414   : > { %1559 = vmatpush.msrb.mxu1 %v1487_v39  ;;  %4426 = vmatpush.msrb.mxu2 %v1487_v39 }
 0x41a   : > { %v1378_v47 = vpop.f32.mrf.mxu3 }
 0x41b   : > { %1432 = vrot.lane.b32.xlu2 %v1378_v47, %s6171_s21 }
 0x422   : > { %v1381_v48 = vpop.f32.mrf.mxu3 }
 0x423   : > { %1434 = vrot.lane.b32.xlu0 %v1381_v48, %s6171_s21 }
 0x42a   : > { %v1383_v50 = vpop.f32.mrf.mxu3 }
 0x42b   : > { %1436 = vrot.lane.b32.xlu1 %v1383_v50, %s6171_s21 }
 0x432   : > { %v1386_v63 = vpop.f32.mrf.mxu3 }
 0x433   : > { %1438 = vrot.lane.b32.xlu2 %v1386_v63, %s6171_s21 }
 0x43a   : > { %v1388_v20 = vpop.f32.mrf.mxu3 }
 0x43b   : > { %1440 = vrot.lane.b32.xlu0 %v1388_v20, %s6171_s21 }
 0x442   : > { %v1391_v41 = vpop.f32.mrf.mxu3 }
 0x443   : > { %1442 = vrot.lane.b32.xlu1 %v1391_v41, %s6171_s21 }
 0x44a   : > { %v1393_v47 = vpop.f32.mrf.mxu3 }
 0x44b   : > { %1444 = vrot.lane.b32.xlu2 %v1393_v47, %s6171_s21 }
 0x452   : > { %v1396_v48 = vpop.f32.mrf.mxu3 }
 0x453   : > { %1446 = vrot.lane.b32.xlu0 %v1396_v48, %s6171_s21 }
 0x45a   : > { %v1398_v50 = vpop.f32.mrf.mxu3 }
 0x45b   : > { %1448 = vrot.lane.b32.xlu1 %v1398_v50, %s6171_s21 }
 0x45d   : > { %v1427_v37 = vpop.permute.xlu2 %1426 }
 0x45e   : > { %v1473_v38 = vsel %vm1470_vm1, %v5127_v52, %v1427_v37  ;;  %v1723_v37 = vld [vmem:[%s6154_s10 + $0x10] sm:$0xff] }
 0x462   : > { %v1401_v63 = vpop.f32.mrf.mxu3 }
 0x463   : > { %1450 = vrot.lane.b32.xlu2 %v1401_v63, %s6171_s21 }
 0x465   : > { %v1423_v7 = vpop.permute.xlu0 %1422 }
 0x466   : > { %v1471_v14 = vsel %vm1470_vm1, %v5122_v40, %v1423_v7 }
 0x467   : > { %4142 = vmatmul.msk.f32.vlgmr.msrb.gmra.mxu1 %vm1495_vm2, %v1471_v14 }
 0x46a   : > { %v1403_v20 = vpop.f32.mrf.mxu3 }
 0x46b   : > { %1452 = vrot.lane.b32.xlu0 %v1403_v20, %s6171_s21  ;;  %s713_s21 = sand.u32 1, %s4677_s24  }
 0x46c   : > { %s3861_s19 = scalar_lea.sflag [#allocation5], %s713_s21 }
 0x46d   : > { %v1425_v26 = vpop.permute.xlu1 %1424 }
 0x46e   : > { %v1472_v32 = vsel %vm1470_vm1, %v5124_v49, %v1425_v26 }
 0x46f   : > { %4143 = vmatmul.msk.f32.gmra.mxu1 %vm1495_vm2, %v1472_v32 }
 0x475   : > { %v1433_v49 = vpop.permute.xlu2 %1432 }
 0x476   : > { %v1476_v47 = vsel %vm1470_vm1, %v5134_v5, %v1433_v49 }
 0x477   : > { %4144 = vmatmul.msk.f32.gmra.mxu1 %vm1495_vm2, %v1473_v38 }
 0x47d   : > { %v1429_v41 = vpop.permute.xlu0 %1428 }
 0x47e   : > { %v1474_v40 = vsel %vm1470_vm1, %v5129_v60, %v1429_v41  ;;  %v1721_v41 = vld [vmem:[%s6154_s10] sm:$0xff] }
 0x47f   : > { %4145 = vmatmul.msk.f32.gmra.mxu1 %vm1495_vm2, %v1474_v40 }
 0x485   : > { %v1431_v46 = vpop.permute.xlu1 %1430 }
 0x486   : > { %v1475_v39 = vsel %vm1470_vm1, %v5132_v4, %v1431_v46 }
 0x487   : > { %4146 = vmatmul.msk.f32.gmra.mxu1 %vm1495_vm2, %v1475_v39 }
 0x48d   : > { %v1439_v50 = vpop.permute.xlu2 %1438 }
 0x48e   : > { %v5233_v5 = vsel %vm1470_vm1, %v5142_v15, %v1439_v50 }
 0x48f   : > { %4147 = vmatmul.msk.f32.gmra.mxu1 %vm1495_vm2, %v1476_v47 }
 0x495   : > { %v1435_v52 = vpop.permute.xlu0 %1434 }
 0x496   : > { %v5221_v48 = vsel %vm1470_vm1, %v5137_v8, %v1435_v52 }
 0x497   : > { %4148 = vmatmul.msk.f32.gmra.mxu1 %vm1495_vm2, %v5221_v48 }
 0x49d   : > { %v1437_v60 = vpop.permute.xlu1 %1436 }
 0x49e   : > { %v5227_v4 = vsel %vm1470_vm1, %v5139_v11, %v1437_v60 }
 0x49f   : > { %4149 = vmatmul.msk.f32.gmra.mxu1 %vm1495_vm2, %v5227_v4 }
 0x4a5   : > { %v1445_v11 = vpop.permute.xlu2 %1444 }
 0x4a7   : > { %4150 = vmatmul.msk.f32.gmra.mxu1 %vm1495_vm2, %v5233_v5 }
 0x4ad   : > { %v1441_v8 = vpop.permute.xlu0 %1440 }
 0x4ae   : > { %v5239_v63 = vsel %vm1470_vm1, %v5144_v17, %v1441_v8  ;;  %v5255_v17 = vsel %vm1470_vm1, %v5149_v23, %v1445_v11  ;;  %v1722_v23 = vld [vmem:[%s6154_s10 + $0x8] sm:$0xff] }
 0x4af   : > { %4151 = vmatmul.msk.f32.gmra.mxu1 %vm1495_vm2, %v5239_v63 }
 0x4b5   : > { %v1443_v7 = vpop.permute.xlu1 %1442 }
 0x4b6   : > { %v5245_v20 = vsel %vm1470_vm1, %v5147_v21, %v1443_v7  ;;  %v1724_v21 = vld [vmem:[%s6154_s10 + $0x18] sm:$0xff] }
 0x4b7   : > { %4152 = vmatmul.msk.f32.gmra.mxu1 %vm1495_vm2, %v5245_v20  ;;  %1902 = vmatpush.msra.mxu2 %v1724_v21 }
 0x4b9   : > { %1903 = vmatpush.msra.mxu2 %v1723_v37 }
 0x4bb   : > { %1904 = vmatpush.msra.mxu2 %v1722_v23 }
 0x4bd   : > { %v1451_v15 = vpop.permute.xlu2 %1450  ;;  %1905 = vmatpush.msra.mxu2 %v1721_v41 }
 0x4be   : > { %v5251_v26 = vsel %vm1470_vm1, %v5157_v33, %v1451_v15 }
 0x4bf   : > { %4153 = vmatmul.msk.f32.gmra.mxu1 %vm1495_vm2, %v5255_v17  ;;  %4156 = vmatmul.msk.f32.vlgmr.msrb.gmra.mxu2 %vm1495_vm2, %v5251_v26 }
 0x4c5   : > { %v1447_v33 = vpop.permute.xlu0 %1446 }
 0x4c6   : > { %v5275_v46 = vsel %vm1470_vm1, %v5152_v27, %v1447_v33 }
 0x4c7   : > { %4154 = vmatmul.msk.f32.gmra.mxu1 %vm1495_vm2, %v5275_v46 }
 0x4cd   : > { %v1449_v49 = vpop.permute.xlu1 %1448 }
 0x4ce   : > { %v5281_v52 = vsel %vm1470_vm1, %v5154_v30, %v1449_v49 }
 0x4cf   : > { %4155 = vmatmul.msk.f32.gmra.mxu1 %vm1495_vm2, %v5281_v52 }
 0x4dd   : > { %v1453_v60 = vpop.permute.xlu0 %1452 }
 0x4de   : > { %v5287_v50 = vsel %vm1470_vm1, %v5159_v36, %v1453_v60 }
 0x4df   : > { %4157 = vmatmul.msk.f32.gmra.mxu2 %vm1495_vm2, %v5287_v50 }
 0x4e4   : > { %v1561_v27 = vpop.f32.mrf.mxu1 }
 0x4e5   : > { %v5291_v8 = vmul.f32 %v1561_v27, %v1471_v14 }
 0x4e7   : > { %1641 = vrot.lane.b32.xlu1 %v5291_v8, %s6169_s16  ;;  %4174 = vmatmul.msk.f32.vlgmr.msra.gmra.mxu2 %vm1470_vm1, %v5028_v42 }
 0x4ec   : > { %v1564_v30 = vpop.f32.mrf.mxu1 }
 0x4ed   : > { %v5297_v11 = vmul.f32 %v1564_v30, %v1472_v32  ;;  %v1956_v30 = vld [vmem:[%s6156_s12 + $0x8] sm:$0xff] }
 0x4ef   : > { %1643 = vrot.lane.b32.xlu2 %v5297_v11, %s6169_s16  ;;  %4175 = vmatmul.msk.f32.gmra.mxu2 %vm1470_vm1, %v5031_v44 }
 0x4f4   : > { %v1567_v36 = vpop.f32.mrf.mxu1 }
 0x4f5   : > { %v5303_v7 = vmul.f32 %v1567_v36, %v1473_v38 }
 0x4f7   : > { %1645 = vrot.lane.b32.xlu0 %v5303_v7, %s6169_s16  ;;  %4176 = vmatmul.msk.f32.gmra.mxu2 %vm1470_vm1, %v5019_v35 }
 0x4fc   : > { %v1570_v14 = vpop.f32.mrf.mxu1 }
 0x4fd   : > { %v5309_v15 = vmul.f32 %v1570_v14, %v1474_v40 }
 0x4ff   : > { %1647 = vrot.lane.b32.xlu1 %v5309_v15, %s6169_s16  ;;  %4177 = vmatmul.msk.f32.gmra.mxu2 %vm1470_vm1, %v5013_v31 }
 0x504   : > { %v1573_v32 = vpop.f32.mrf.mxu1 }
 0x505   : > { %v5315_v21 = vmul.f32 %v1573_v32, %v1475_v39 }
 0x507   : > { %1649 = vrot.lane.b32.xlu2 %v5315_v21, %s6169_s16  ;;  %4178 = vmatmul.msk.f32.gmra.mxu2 %vm1470_vm1, %v5009_v29 }
 0x50c   : > { %v1576_v38 = vpop.f32.mrf.mxu1 }
 0x50d   : > { %v5321_v37 = vmul.f32 %v1576_v38, %v1476_v47 }
 0x50f   : > { %1651 = vrot.lane.b32.xlu0 %v5321_v37, %s6169_s16  ;;  %4179 = vmatmul.msk.f32.gmra.mxu2 %vm1470_vm1, %v5003_v25 }
 0x514   : > { %v1579_v40 = vpop.f32.mrf.mxu1 }
 0x515   : > { %v5328_v23 = vmul.f32 %v1579_v40, %v5221_v48 }
 0x517   : > { %1653 = vrot.lane.b32.xlu1 %v5328_v23, %s6169_s16  ;;  %4180 = vmatmul.msk.f32.gmra.mxu2 %vm1470_vm1, %v4997_v22 }
 0x51c   : > { %v1582_v39 = vpop.f32.mrf.mxu1 }
 0x51d   : > { %v5335_v47 = vmul.f32 %v1582_v39, %v5227_v4 }
 0x51f   : > { %1655 = vrot.lane.b32.xlu2 %v5335_v47, %s6169_s16  ;;  %4181 = vmatmul.msk.f32.gmra.mxu2 %vm1470_vm1, %v4993_v19 }
 0x524   : > { %v1585_v33 = vpop.f32.mrf.mxu1 }
 0x525   : > { %v5342_v48 = vmul.f32 %v1585_v33, %v5233_v5 }
 0x527   : > { %1657 = vrot.lane.b32.xlu0 %v5342_v48, %s6169_s16  ;;  %4182 = vmatmul.msk.f32.gmra.mxu2 %vm1470_vm1, %v4987_v16 }
 0x52c   : > { %v1588_v41 = vpop.f32.mrf.mxu1 }
 0x52d   : > { %v5349_v4 = vmul.f32 %v1588_v41, %v5239_v63  ;;  %v1958_v63 = vld [vmem:[%s6156_s12 + $0x18] sm:$0xff] }
 0x52e   : > { %2019 = vmatpush.msra.mxu1 %v1958_v63 }
 0x52f   : > { %1659 = vrot.lane.b32.xlu1 %v5349_v4, %s6169_s16  ;;  %4183 = vmatmul.msk.f32.gmra.mxu2 %vm1470_vm1, %v4983_v13 }
 0x534   : > { %v1591_v49 = vpop.f32.mrf.mxu1 }
 0x535   : > { %v5356_v5 = vmul.f32 %v1591_v49, %v5245_v20  ;;  %v1957_v20 = vld [vmem:[%s6156_s12 + $0x10] sm:$0xff] }
 0x536   : > { %2020 = vmatpush.msra.mxu1 %v1957_v20 }
 0x537   : > { %1661 = vrot.lane.b32.xlu2 %v5356_v5, %s6169_s16  ;;  %4184 = vmatmul.msk.f32.gmra.mxu2 %vm1470_vm1, %v4977_v10 }
 0x538   : > { %2021 = vmatpush.msra.mxu1 %v1956_v30 }
 0x53c   : > { %v1594_v60 = vpop.f32.mrf.mxu1 }
 0x53d   : > { %v5366_v27 = vmul.f32 %v1594_v60, %v5255_v17  ;;  %v1955_v17 = vld [vmem:[%s6156_s12] sm:$0xff] }
 0x53e   : > { %2022 = vmatpush.msra.mxu1 %v1955_v17 }
 0x53f   : > { %1663 = vrot.lane.b32.xlu0 %v5366_v27, %s6169_s16  ;;  %4185 = vmatmul.msk.f32.gmra.mxu2 %vm1470_vm1, %v4971_v6 }
 0x542   : > { %v1603_v36 = vpop.f32.mrf.mxu2 }
 0x543   : > { %v5382_v32 = vmul.f32 %v1603_v36, %v5251_v26 }
 0x544   : > { %v1597_v14 = vpop.f32.mrf.mxu1 }
 0x545   : > { %v5385_v38 = vmul.f32 %v1597_v14, %v5275_v46 }
 0x547   : > { %1665 = vrot.lane.b32.xlu1 %v5385_v38, %s6169_s16  ;;  %1669 = vrot.lane.b32.xlu0 %v5382_v32, %s6169_s16 }
 0x548   : > { %4186 = vmatmul.msk.f32.gmra.mxu2 %vm1470_vm1, %v4965_v3 }
 0x549   : > { %v1644_v33 = vpop.permute.xlu2 %1643 }
 0x54a   : > { %v1690_v41 = vadd.f32 %v1644_v33, %v5297_v11 }
 0x54c   : > { %v1600_v40 = vpop.f32.mrf.mxu1 }
 0x54d   : > { %v5394_v39 = vmul.f32 %v1600_v40, %v5281_v52 }
 0x54f   : > { %1667 = vrot.lane.b32.xlu2 %v5394_v39, %s6169_s16 }
 0x550   : > { %4187 = vmatmul.msk.f32.gmra.mxu2 %vm1470_vm1, %v4959_v0 }
 0x558   : > { %4188 = vmatmul.msk.f32.gmra.mxu2 %vm1470_vm1, %v4957_v62 }
 0x559   : > { %v1642_v26 = vpop.permute.xlu1 %1641 }
 0x55a   : > { %v1689_v46 = vadd.f32 %v1642_v26, %v5291_v8 }
 0x55c   : > { %4496 = vtanh.f32 %v1689_v46 }
 0x55d   : > { %4498 = vtanh.f32 %v1690_v41 }
 0x560   : > { %4189 = vmatmul.msk.f32.gmra.mxu2 %vm1470_vm1, %v4961_v1 }
 0x562   : > { %v4497_v52 = vpop.eup %4496  ;;  %v1606_v49 = vpop.f32.mrf.mxu2 }
 0x563   : > { %v5407_v60 = vmul.f32 %v1606_v49, %v5287_v50  ;;  %4190 = vmatmul.msk.f32.vlgmr.msra.gmra.mxu1 %vm1470_vm1, %v4497_v52  ;;  %v4499_v8 = vpop.eup %4498  ;;  %v1650_v50 = vpop.permute.xlu2 %1649 }
 0x564   : > { %v1693_v17 = vadd.f32 %v1650_v50, %v5315_v21 }
 0x565   : > { %1671 = vrot.lane.b32.xlu1 %v5407_v60, %s6169_s16 }
 0x569   : > { %v1646_v63 = vpop.permute.xlu0 %1645 }
 0x56a   : > { %v1691_v20 = vadd.f32 %v1646_v63, %v5303_v7 }
 0x56b   : > { %4191 = vmatmul.msk.f32.gmra.mxu1 %vm1470_vm1, %v4499_v8 }
 0x56c   : > { %4500 = vtanh.f32 %v1691_v20 }
 0x571   : > { %v1648_v11 = vpop.permute.xlu1 %1647 }
 0x572   : > { %v4501_v30 = vpop.eup %4500  ;;  %v1692_v36 = vadd.f32 %v1648_v11, %v5309_v15 }
 0x573   : > { %4192 = vmatmul.msk.f32.gmra.mxu1 %vm1470_vm1, %v4501_v30 }
 0x574   : > { %4502 = vtanh.f32 %v1692_v36 }
 0x575   : > { %4504 = vtanh.f32 %v1693_v17 }
 0x579   : > { %v1656_v41 = vpop.permute.xlu2 %1655 }
 0x57a   : > { %v4503_v14 = vpop.eup %4502  ;;  %v1696_v21 = vadd.f32 %v1656_v41, %v5335_v47 }
 0x57b   : > { %4193 = vmatmul.msk.f32.gmra.mxu1 %vm1470_vm1, %v4503_v14  ;;  %v4505_v26 = vpop.eup %4504 }
 0x581   : > { %v1652_v40 = vpop.permute.xlu0 %1651 }
 0x582   : > { %v1694_v7 = vadd.f32 %v1652_v40, %v5321_v37 }
 0x583   : > { %4194 = vmatmul.msk.f32.gmra.mxu1 %vm1470_vm1, %v4505_v26 }
 0x584   : > { %4506 = vtanh.f32 %v1694_v7  ;;  %v2127_v7 = vld [vmem:[%s6158_s14 + $0x18] sm:$0xff] }
 0x585   : > { %2192 = vmatpush.msra.mxu0 %v2127_v7 }
 0x589   : > { %v1654_v46 = vpop.permute.xlu1 %1653 }
 0x58a   : > { %v4507_v33 = vpop.eup %4506  ;;  %v1695_v15 = vadd.f32 %v1654_v46, %v5328_v23  ;;  %v1794_v46 = vpop.f32.mrf.mxu0 }
 0x58b   : > { %4195 = vmatmul.msk.f32.gmra.mxu1 %vm1470_vm1, %v4507_v33  ;;  %v2126_v33 = vld [vmem:[%s6158_s14 + $0x10] sm:$0xff] }
 0x58c   : > { %4508 = vtanh.f32 %v1695_v15  ;;  %2193 = vmatpush.msra.mxu0 %v2126_v33  ;;  %v2124_v15 = vld [vmem:[%s6158_s14] sm:$0xff] }
 0x58d   : > { %4510 = vtanh.f32 %v1696_v21 }
 0x591   : > { %v1662_v11 = vpop.permute.xlu2 %1661 }
 0x592   : > { %v4509_v52 = vpop.eup %4508  ;;  %v1699_v47 = vadd.f32 %v1662_v11, %v5356_v5  ;;  %v1907_v5 = vpop.f32.mrf.mxu2 }
 0x593   : > { %4196 = vmatmul.msk.f32.gmra.mxu1 %vm1470_vm1, %v4509_v52  ;;  %v4511_v63 = vpop.eup %4510 }
 0x599   : > { %v1658_v49 = vpop.permute.xlu0 %1657 }
 0x59a   : > { %v1697_v37 = vadd.f32 %v1658_v49, %v5342_v48  ;;  %v1910_v52 = vpop.f32.mrf.mxu2  ;;  %v1797_v49 = vpop.f32.mrf.mxu0 }
 0x59b   : > { %4197 = vmatmul.msk.f32.gmra.mxu1 %vm1470_vm1, %v4511_v63 }
 0x59c   : > { %4512 = vtanh.f32 %v1697_v37 }
 0x5a1   : > { %v1660_v8 = vpop.permute.xlu1 %1659 }
 0x5a2   : > { %v4513_v20 = vpop.eup %4512  ;;  %v1698_v23 = vadd.f32 %v1660_v8, %v5349_v4  ;;  %v1913_v37 = vpop.f32.mrf.mxu2 }
 0x5a3   : > { %4198 = vmatmul.msk.f32.gmra.mxu1 %vm1470_vm1, %v4513_v20  ;;  %v1800_v8 = vpop.f32.mrf.mxu0 }
 0x5a4   : > { %4514 = vtanh.f32 %v1698_v23 }
 0x5a5   : > { %4516 = vtanh.f32 %v1699_v47  ;;  %v1908_v47 = vadd.f32 %v1907_v5, %v1794_v46  ;;  %v1914_v46 = vadd.f32 %v1913_v37, %v1800_v8 }
 0x5a9   : > { %v1668_v40 = vpop.permute.xlu2 %1667 }
 0x5aa   : > { %v4515_v30 = vpop.eup %4514  ;;  %v1702_v26 = vadd.f32 %v1668_v40, %v5394_v39  ;;  %v1916_v11 = vpop.f32.mrf.mxu2 }
 0x5ab   : > { %4199 = vmatmul.msk.f32.gmra.mxu1 %vm1470_vm1, %v4515_v30  ;;  %v4517_v50 = vpop.eup %4516 }
 0x5b1   : > { %v1664_v36 = vpop.permute.xlu0 %1663 }
 0x5b2   : > { %v1700_v48 = vadd.f32 %v1664_v36, %v5366_v27  ;;  %v1803_v36 = vpop.f32.mrf.mxu0 }
 0x5b3   : > { %4200 = vmatmul.msk.f32.gmra.mxu1 %vm1470_vm1, %v4517_v50 }
 0x5b4   : > { %4518 = vtanh.f32 %v1700_v48 }
 0x5b9   : > { %v1666_v17 = vpop.permute.xlu1 %1665  ;;  %v1670_v39 = vpop.permute.xlu0 %1669 }
 0x5ba   : > { %v4519_v14 = vpop.eup %4518  ;;  %v1701_v4 = vadd.f32 %v1666_v17, %v5385_v38  ;;  %v2125_v38 = vld [vmem:[%s6158_s14 + $0x8] sm:$0xff]  ;;  %v1703_v41 = vadd.f32 %v1670_v39, %v5382_v32  ;;  %v5455_v32 = vld [vmem:[%s6157_s13] ss:$0 sm:$0xff] }
 0x5bb   : > { %4201 = vmatmul.msk.f32.gmra.mxu1 %vm1470_vm1, %v4519_v14  ;;  %2194 = vmatpush.msra.mxu0 %v2125_v38 }
 0x5bc   : > { %4520 = vtanh.f32 %v1701_v4  ;;  %v1911_v4 = vadd.f32 %v1910_v52, %v1797_v49  ;;  %v1917_v52 = vadd.f32 %v1916_v11, %v1803_v36 }
 0x5bd   : > { %4522 = vtanh.f32 %v1702_v26  ;;  %2195 = vmatpush.msra.mxu0 %v2124_v15  ;;  %v1806_v26 = vpop.f32.mrf.mxu0 }
 0x5be   : > { %4524 = vtanh.f32 %v1703_v41 }
 0x5c2   : > { %v4521_v27 = vpop.eup %4520 }
 0x5c3   : > { %4202 = vmatmul.msk.f32.gmra.mxu1 %vm1470_vm1, %v4521_v27  ;;  %v4523_v21 = vpop.eup %4522 }
 0x5c4   : > { %v4525_v63 = vpop.eup %4524 }
 0x5c5   : > { %v1809_v41 = vpop.f32.mrf.mxu0 }
 0x5cb   : > { %4203 = vmatmul.msk.f32.gmra.mxu1 %vm1470_vm1, %v4523_v21 }
 0x5d3   : > { %4204 = vmatmul.msk.f32.gmra.mxu1 %vm1470_vm1, %v4525_v63 }
 0x5d7   : > { %v1672_v20 = vpop.permute.xlu1 %1671 }
 0x5d8   : > { %v1704_v23 = vadd.f32 %v1672_v20, %v5407_v60  ;;  %v1919_v60 = vpop.f32.mrf.mxu2 }
 0x5d9   : > { %v1920_v37 = vadd.f32 %v1919_v60, %v1806_v26 }
 0x5da   : > { %4526 = vtanh.f32 %v1704_v23 }
 0x5e0   : > { %v4527_v30 = vpop.eup %4526  ;;  %v2024_v50 = vpop.f32.mrf.mxu1 }
 0x5e1   : > { %v2072_v48 = vadd.f32 %v2024_v50, %v1908_v47  ;;  %4205 = vmatmul.msk.f32.gmra.mxu1 %vm1470_vm1, %v4527_v30  ;;  %v1922_v39 = vpop.f32.mrf.mxu2  ;;  %v1812_v30 = vpop.f32.mrf.mxu0 }
 0x5e3   : > { %v2092_v17 = vadd.f32 %v5455_v32, %v2072_v48 }
 0x5e5   : > { %v2108_v14 = vmax.f32 %v2092_v17, 0.0 }
 0x5e7   : > { %4206 = vmatmul.msk.f32.vlgmr.msra.gmra.mxu0 %vm1470_vm1, %v2108_v14 }
 0x5e8   : > { %v2027_v40 = vpop.f32.mrf.mxu1 }
 0x5e9   : > { %v2073_v5 = vadd.f32 %v2027_v40, %v1911_v4  ;;  %v1925_v23 = vpop.f32.mrf.mxu2  ;;  %v1923_v4 = vadd.f32 %v1922_v39, %v1809_v41  ;;  %v1815_v11 = vpop.f32.mrf.mxu0 }
 0x5eb   : > { %v2093_v7 = vadd.f32 %v5455_v32, %v2073_v5 }
 0x5ed   : > { %v2109_v27 = vmax.f32 %v2093_v7, 0.0 }
 0x5ef   : > { %4207 = vmatmul.msk.f32.gmra.mxu0 %vm1470_vm1, %v2109_v27  ;;  %v1926_v27 = vadd.f32 %v1925_v23, %v1812_v30 }
 0x5f0   : > { %v2030_v33 = vpop.f32.mrf.mxu1 }
 0x5f1   : > { %v2074_v38 = vadd.f32 %v2030_v33, %v1914_v46  ;;  %v1928_v14 = vpop.f32.mrf.mxu2  ;;  %v1818_v33 = vpop.f32.mrf.mxu0 }
 0x5f3   : > { %v2094_v15 = vadd.f32 %v5455_v32, %v2074_v38 }
 0x5f5   : > { %v2110_v21 = vmax.f32 %v2094_v15, 0.0 }
 0x5f7   : > { %4208 = vmatmul.msk.f32.gmra.mxu0 %vm1470_vm1, %v2110_v21  ;;  %v1929_v21 = vadd.f32 %v1928_v14, %v1815_v11 }
 0x5f8   : > { %v2033_v49 = vpop.f32.mrf.mxu1 }
 0x5f9   : > { %v2075_v63 = vadd.f32 %v2033_v49, %v1917_v52  ;;  %v1931_v60 = vpop.f32.mrf.mxu2 }
 0x5fa   : > { %v1932_v23 = vadd.f32 %v1931_v60, %v1818_v33 }
 0x5fb   : > { %v2095_v20 = vadd.f32 %v5455_v32, %v2075_v63  ;;  %v1821_v63 = vpop.f32.mrf.mxu0 }
 0x5fd   : > { %v2111_v47 = vmax.f32 %v2095_v20, 0.0 }
 0x5ff   : > { %4209 = vmatmul.msk.f32.gmra.mxu0 %vm1470_vm1, %v2111_v47 }
 0x600   : > { %v2036_v8 = vpop.f32.mrf.mxu1 }
 0x601   : > { %v2076_v50 = vadd.f32 %v2036_v8, %v1920_v37  ;;  %v1934_v52 = vpop.f32.mrf.mxu2 }
 0x603   : > { %v2096_v48 = vadd.f32 %v5455_v32, %v2076_v50 }
 0x605   : > { %v2112_v17 = vmax.f32 %v2096_v48, 0.0  ;;  %v1824_v48 = vpop.f32.mrf.mxu0 }
 0x607   : > { %4210 = vmatmul.msk.f32.gmra.mxu0 %vm1470_vm1, %v2112_v17  ;;  %v1935_v17 = vadd.f32 %v1934_v52, %v1821_v63 }
 0x608   : > { %v2039_v36 = vpop.f32.mrf.mxu1 }
 0x609   : > { %v2077_v40 = vadd.f32 %v2039_v36, %v1923_v4  ;;  %v1937_v8 = vpop.f32.mrf.mxu2 }
 0x60b   : > { %v2097_v5 = vadd.f32 %v5455_v32, %v2077_v40 }
 0x60d   : > { %v2113_v7 = vmax.f32 %v2097_v5, 0.0  ;;  %v1938_v5 = vadd.f32 %v1937_v8, %v1824_v48  ;;  %v2263_v8 = vld [vmem:[#allocation3 + $0x10] sm:$0xff]  ;;  %v2262_v48 = vld [vmem:[#allocation3 + $0x8] sm:$0xff] }
 0x60f   : > { %4211 = vmatmul.msk.f32.gmra.mxu0 %vm1470_vm1, %v2113_v7  ;;  %v1827_v7 = vpop.f32.mrf.mxu0 }
 0x610   : > { %v2042_v26 = vpop.f32.mrf.mxu1 }
 0x611   : > { %v2078_v46 = vadd.f32 %v2042_v26, %v1926_v27  ;;  %v1940_v40 = vpop.f32.mrf.mxu2 }
 0x612   : > { %v1941_v33 = vadd.f32 %v1940_v40, %v1827_v7 }
 0x613   : > { %v2098_v38 = vadd.f32 %v5455_v32, %v2078_v46 }
 0x615   : > { %v2114_v15 = vmax.f32 %v2098_v38, 0.0 }
 0x617   : > { %4212 = vmatmul.msk.f32.gmra.mxu0 %vm1470_vm1, %v2114_v15 }
 0x618   : > { %v2045_v39 = vpop.f32.mrf.mxu1 }
 0x619   : > { %v2079_v41 = vadd.f32 %v2045_v39, %v1929_v21  ;;  %v1943_v38 = vpop.f32.mrf.mxu2  ;;  %v1830_v39 = vpop.f32.mrf.mxu0 }
 0x61b   : > { %v2099_v49 = vadd.f32 %v5455_v32, %v2079_v41 }
 0x61d   : > { %v2115_v20 = vmax.f32 %v2099_v49, 0.0  ;;  %v1944_v49 = vadd.f32 %v1943_v38, %v1830_v39 }
 0x61f   : > { %4213 = vmatmul.msk.f32.gmra.mxu0 %vm1470_vm1, %v2115_v20 }
 0x620   : > { %v2048_v47 = vpop.f32.mrf.mxu1 }
 0x621   : > { %v2080_v30 = vadd.f32 %v2048_v47, %v1932_v23  ;;  %v1946_v23 = vpop.f32.mrf.mxu2  ;;  %v2264_v47 = vld [vmem:[#allocation3 + $0x18] sm:$0xff] }
 0x622   : > { %2329 = vmatpush.msrb.mxu2 %v2264_v47 }
 0x623   : > { %v2100_v37 = vadd.f32 %v5455_v32, %v2080_v30 }
 0x624   : > { %2330 = vmatpush.msrb.mxu2 %v2263_v8 }
 0x625   : > { %v2116_v50 = vmax.f32 %v2100_v37, 0.0  ;;  %v1833_v37 = vpop.f32.mrf.mxu0 }
 0x626   : > { %2331 = vmatpush.msrb.mxu2 %v2262_v48 }
 0x627   : > { %4214 = vmatmul.msk.f32.gmra.mxu0 %vm1470_vm1, %v2116_v50 }
 0x628   : > { %v2051_v14 = vpop.f32.mrf.mxu1 }
 0x629   : > { %v2081_v4 = vadd.f32 %v2051_v14, %v1935_v17  ;;  %v1947_v17 = vadd.f32 %v1946_v23, %v1833_v37  ;;  %v2261_v14 = vld [vmem:[#allocation3] sm:$0xff]  ;;  %v1949_v40 = vpop.f32.mrf.mxu2 }
 0x62a   : > { %2332 = vmatpush.msrb.mxu2 %v2261_v14 }
 0x62b   : > { %v2101_v11 = vadd.f32 %v5455_v32, %v2081_v4 }
 0x62d   : > { %v2117_v36 = vmax.f32 %v2101_v11, 0.0  ;;  %v1836_v7 = vpop.f32.mrf.mxu0 }
 0x62f   : > { %4215 = vmatmul.msk.f32.gmra.mxu0 %vm1470_vm1, %v2117_v36 }
 0x630   : > { %v2054_v27 = vpop.f32.mrf.mxu1 }
 0x631   : > { %v2082_v60 = vadd.f32 %v2054_v27, %v1938_v5  ;;  %v1950_v27 = vadd.f32 %v1949_v40, %v1836_v7  ;;  %v1952_v38 = vpop.f32.mrf.mxu2 }
 0x633   : > { %v2102_v26 = vadd.f32 %v5455_v32, %v2082_v60 }
 0x635   : > { %v2118_v46 = vmax.f32 %v2102_v26, 0.0 }
 0x637   : > { %4216 = vmatmul.msk.f32.gmra.mxu0 %vm1470_vm1, %v2118_v46 }
 0x638   : > { %v2057_v15 = vpop.f32.mrf.mxu1 }
 0x639   : > { %v2083_v21 = vadd.f32 %v2057_v15, %v1941_v33  ;;  %v1839_v15 = vpop.f32.mrf.mxu0 }
 0x63b   : > { %v2103_v41 = vadd.f32 %v5455_v32, %v2083_v21  ;;  %v1953_v21 = vadd.f32 %v1952_v38, %v1839_v15 }
 0x63d   : > { %v2119_v52 = vmax.f32 %v2103_v41, 0.0 }
 0x63f   : > { %4217 = vmatmul.msk.f32.gmra.mxu0 %vm1470_vm1, %v2119_v52 }
 0x640   : > { %v2060_v63 = vpop.f32.mrf.mxu1 }
 0x641   : > { %v2084_v20 = vadd.f32 %v2060_v63, %v1944_v49  ;;  %v5492_v49 = vld [vmem:[%s6159_s15] ss:$0 sm:$0xff] }
 0x643   : > { %v2104_v30 = vadd.f32 %v5455_v32, %v2084_v20 }
 0x645   : > { %v2120_v50 = vmax.f32 %v2104_v30, 0.0 }
 0x647   : > { %4218 = vmatmul.msk.f32.gmra.mxu0 %vm1470_vm1, %v2120_v50 }
 0x648   : > { %v2063_v4 = vpop.f32.mrf.mxu1 }
 0x649   : > { %v2085_v11 = vadd.f32 %v2063_v4, %v1947_v17 }
 0x64b   : > { %v2105_v36 = vadd.f32 %v5455_v32, %v2085_v11 }
 0x64d   : > { %v2121_v5 = vmax.f32 %v2105_v36, 0.0 }
 0x64f   : > { %4219 = vmatmul.msk.f32.gmra.mxu0 %vm1470_vm1, %v2121_v5 }
 0x650   : > { %v2066_v60 = vpop.f32.mrf.mxu1 }
 0x651   : > { %v2086_v26 = vadd.f32 %v2066_v60, %v1950_v27 }
 0x653   : > { %v2106_v46 = vadd.f32 %v5455_v32, %v2086_v26 }
 0x655   : > { %v2122_v33 = vmax.f32 %v2106_v46, 0.0 }
 0x657   : > { %4220 = vmatmul.msk.f32.gmra.mxu0 %vm1470_vm1, %v2122_v33 }
 0x65e   : > { %v2069_v39 = vpop.f32.mrf.mxu1 }
 0x65f   : > { %v2087_v41 = vadd.f32 %v2069_v39, %v1953_v21 }
 0x661   : > { %v2107_v52 = vadd.f32 %v5455_v32, %v2087_v41 }
 0x663   : > { %v2123_v63 = vmax.f32 %v2107_v52, 0.0 }
 0x664   : > { %v2197_v20 = vpop.f32.mrf.mxu0 }
 0x665   : > { %v2198_v23 = vadd.f32 %v5492_v49, %v2197_v20  ;;  %4221 = vmatmul.msk.f32.gmra.mxu0 %vm1470_vm1, %v2123_v63 }
 0x667   : > { %v2245_v47 = vmax.f32 %v2198_v23, 0.0 }
 0x669   : > { %4222 = vmatmul.msk.f32.vlgmr.msrb.gmra.mxu2 %vm1470_vm1, %v2245_v47 }
 0x66c   : > { %v2200_v30 = vpop.f32.mrf.mxu0 }
 0x66d   : > { %v2201_v37 = vadd.f32 %v5492_v49, %v2200_v30 }
 0x66f   : > { %v2246_v8 = vmax.f32 %v2201_v37, 0.0 }
 0x671   : > { %4223 = vmatmul.msk.f32.gmra.mxu2 %vm1470_vm1, %v2246_v8 }
 0x674   : > { %v2203_v32 = vpop.f32.mrf.mxu0 }
 0x675   : > { %v2204_v50 = vadd.f32 %v5492_v49, %v2203_v32 }
 0x677   : > { %v2247_v48 = vmax.f32 %v2204_v50, 0.0 }
 0x679   : > { %4224 = vmatmul.msk.f32.gmra.mxu2 %vm1470_vm1, %v2247_v48 }
 0x67c   : > { %v2206_v17 = vpop.f32.mrf.mxu0 }
 0x67d   : > { %v2207_v14 = vadd.f32 %v5492_v49, %v2206_v17 }
 0x67f   : > { %v2248_v4 = vmax.f32 %v2207_v14, 0.0 }
 0x681   : > { %4225 = vmatmul.msk.f32.gmra.mxu2 %vm1470_vm1, %v2248_v4 }
 0x684   : > { %v2209_v11 = vpop.f32.mrf.mxu0 }
 0x685   : > { %v2210_v36 = vadd.f32 %v5492_v49, %v2209_v11 }
 0x687   : > { %v2249_v40 = vmax.f32 %v2210_v36, 0.0 }
 0x689   : > { %4226 = vmatmul.msk.f32.gmra.mxu2 %vm1470_vm1, %v2249_v40 }
 0x68c   : > { %v2212_v5 = vpop.f32.mrf.mxu0 }
 0x68d   : > { %v2213_v7 = vadd.f32 %v5492_v49, %v2212_v5 }
 0x68f   : > { %v2250_v27 = vmax.f32 %v2213_v7, 0.0 }
 0x691   : > { %4227 = vmatmul.msk.f32.gmra.mxu2 %vm1470_vm1, %v2250_v27 }
 0x694   : > { %v2215_v60 = vpop.f32.mrf.mxu0 }
 0x695   : > { %v2216_v26 = vadd.f32 %v5492_v49, %v2215_v60 }
 0x697   : > { %v2251_v46 = vmax.f32 %v2216_v26, 0.0 }
 0x699   : > { %4228 = vmatmul.msk.f32.gmra.mxu2 %vm1470_vm1, %v2251_v46 }
 0x69c   : > { %v2218_v33 = vpop.f32.mrf.mxu0 }
 0x69d   : > { %v2219_v38 = vadd.f32 %v5492_v49, %v2218_v33 }
 0x69f   : > { %v2252_v15 = vmax.f32 %v2219_v38, 0.0 }
 0x6a1   : > { %4229 = vmatmul.msk.f32.gmra.mxu2 %vm1470_vm1, %v2252_v15 }
 0x6a4   : > { %v2221_v21 = vpop.f32.mrf.mxu0 }
 0x6a5   : > { %v2222_v39 = vadd.f32 %v5492_v49, %v2221_v21 }
 0x6a7   : > { %v2253_v41 = vmax.f32 %v2222_v39, 0.0 }
 0x6a9   : > { %4230 = vmatmul.msk.f32.gmra.mxu2 %vm1470_vm1, %v2253_v41 }
 0x6ac   : > { %v2224_v52 = vpop.f32.mrf.mxu0 }
 0x6ad   : > { %v2225_v63 = vadd.f32 %v5492_v49, %v2224_v52 }
 0x6af   : > { %v2254_v20 = vmax.f32 %v2225_v63, 0.0 }
 0x6b1   : > { %4231 = vmatmul.msk.f32.gmra.mxu2 %vm1470_vm1, %v2254_v20 }
 0x6b4   : > { %v2227_v23 = vpop.f32.mrf.mxu0 }
 0x6b5   : > { %v2228_v47 = vadd.f32 %v5492_v49, %v2227_v23 }
 0x6b7   : > { %v2255_v30 = vmax.f32 %v2228_v47, 0.0 }
 0x6b9   : > { %4232 = vmatmul.msk.f32.gmra.mxu2 %vm1470_vm1, %v2255_v30 }
 0x6bc   : > { %v2230_v37 = vpop.f32.mrf.mxu0 }
 0x6bd   : > { %v2231_v8 = vadd.f32 %v5492_v49, %v2230_v37 }
 0x6bf   : > { %v2256_v32 = vmax.f32 %v2231_v8, 0.0 }
 0x6c1   : > { %4233 = vmatmul.msk.f32.gmra.mxu2 %vm1470_vm1, %v2256_v32 }
 0x6c4   : > { %v2233_v50 = vpop.f32.mrf.mxu0 }
 0x6c5   : > { %v2234_v48 = vadd.f32 %v5492_v49, %v2233_v50 }
 0x6c7   : > { %v2257_v17 = vmax.f32 %v2234_v48, 0.0 }
 0x6c9   : > { %4234 = vmatmul.msk.f32.gmra.mxu2 %vm1470_vm1, %v2257_v17 }
 0x6cc   : > { %v2236_v14 = vpop.f32.mrf.mxu0 }
 0x6cd   : > { %v2237_v4 = vadd.f32 %v5492_v49, %v2236_v14 }
 0x6cf   : > { %v2258_v11 = vmax.f32 %v2237_v4, 0.0 }
 0x6d1   : > { %4235 = vmatmul.msk.f32.gmra.mxu2 %vm1470_vm1, %v2258_v11 }
 0x6d4   : > { %v2239_v36 = vpop.f32.mrf.mxu0 }
 0x6d5   : > { %v2240_v40 = vadd.f32 %v5492_v49, %v2239_v36 }
 0x6d7   : > { %v2259_v5 = vmax.f32 %v2240_v40, 0.0 }
 0x6d9   : > { %4236 = vmatmul.msk.f32.gmra.mxu2 %vm1470_vm1, %v2259_v5 }
 0x6e2   : > { %v2242_v7 = vpop.f32.mrf.mxu0 }
 0x6e3   : > { %v2243_v27 = vadd.f32 %v5492_v49, %v2242_v7  ;;  %v4488_v49 = vld [vmem:[%s6161_s17] ss:$0 sm:$0xff] }
 0x6e5   : > { %v2260_v60 = vmax.f32 %v2243_v27, 0.0 }
 0x6e7   : > { %4237 = vmatmul.msk.f32.gmra.mxu2 %vm1470_vm1, %v2260_v60 }
 0x6ec   : > { %v5527_v26 = vpop.f32.mrf.mxu2 }
 0x6f4   : > { %v2337_v46 = vpop.f32.mrf.mxu2 }
 0x6fc   : > { %v2340_v33 = vpop.f32.mrf.mxu2 }
 0x704   : > { %v2343_v38 = vpop.f32.mrf.mxu2 }
 0x70c   : > { %v2346_v15 = vpop.f32.mrf.mxu2 }
 0x714   : > { %v2349_v21 = vpop.f32.mrf.mxu2 }
 0x71c   : > { %v2352_v39 = vpop.f32.mrf.mxu2 }
 0x724   : > { %v2355_v41 = vpop.f32.mrf.mxu2 }
 0x72c   : > { %v2358_v52 = vpop.f32.mrf.mxu2 }
 0x734   : > { %v2361_v63 = vpop.f32.mrf.mxu2 }
 0x73c   : > { %v2364_v20 = vpop.f32.mrf.mxu2 }
 0x73d   : > { %v2365_v40 = vadd.f32 %v4488_v49, %v2364_v20 }
 0x73f   : > { %v5554_v20 = vadd.f32 %v2365_v40, %v4977_v10  ;;  %v2350_v10 = vadd.f32 %v4488_v49, %v2349_v21  ;;  %v2341_v21 = vadd.f32 %v4488_v49, %v2340_v33 }
 0x744   : > { %v2367_v23 = vpop.f32.mrf.mxu2 }
 0x745   : > { %v2368_v4 = vadd.f32 %v4488_v49, %v2367_v23 }
 0x747   : > { %v5549_v60 = vadd.f32 %v2368_v4, %v4971_v6 }
 0x749   : > { %v2412_v6 = vmul.f32 %v5549_v60, %v4955_v61 }
 0x74c   : > { %v2370_v47 = vpop.f32.mrf.mxu2 }
 0x74d   : > { %v2371_v48 = vadd.f32 %v4488_v49, %v2370_v47 }
 0x74f   : > { %v5542_v5 = vadd.f32 %v2371_v48, %v4965_v3 }
 0x751   : > { %v2413_v3 = vmul.f32 %v5542_v5, %v4942_v53 }
 0x754   : > { %v2373_v30 = vpop.f32.mrf.mxu2 }
 0x755   : > { %v2374_v32 = vadd.f32 %v4488_v49, %v2373_v30 }
 0x757   : > { %v5536_v11 = vadd.f32 %v2374_v32, %v4959_v0 }
 0x759   : > { %v2414_v0 = vmul.f32 %v5536_v11, %v4948_v57  ;;  %v2411_v57 = vmul.f32 %v5554_v20, %v4946_v56 }
 0x75b   : > { %v2422_v53 = vpack.c.bf16 %v2412_v6, %v2411_v57  ;;  %v4274_v6 = vld [vmem:[%s6154_s10 + $0x38] sm:$0xff]  ;;  %v4276_v57 = vld [vmem:[%s6155_s11 + $0x28] sm:$0xff] }
 0x75c   : > { %v2376_v37 = vpop.f32.mrf.mxu2 }
 0x75d   : > { %v2377_v8 = vadd.f32 %v4488_v49, %v2376_v37 }
 0x75f   : > { %v5533_v17 = vadd.f32 %v2377_v8, %v4957_v62  ;;  %v2362_v62 = vadd.f32 %v4488_v49, %v2361_v63  ;;  %v2353_v63 = vadd.f32 %v4488_v49, %v2352_v39  ;;  %v5579_v39 = vadd.f32 %v2350_v10, %v5003_v25  ;;  %v4275_v10 = vld [vmem:[%s6155_s11 + $0x20] sm:$0xff] }
 0x761   : > { %v2415_v7 = vmul.f32 %v5533_v17, %v4940_v51  ;;  %v2356_v51 = vadd.f32 %v4488_v49, %v2355_v41  ;;  %v5559_v47 = vadd.f32 %v2362_v62, %v4983_v13  ;;  %v2347_v41 = vadd.f32 %v4488_v49, %v2346_v15 }
 0x762   : > { %v5574_v37 = vadd.f32 %v2353_v63, %v4997_v22  ;;  %v2338_v22 = vadd.f32 %v4488_v49, %v2337_v46  ;;  %v2406_v25 = vmul.f32 %v5579_v39, %v5007_v28  ;;  %v4273_v63 = vld [vmem:[%s6154_s10 + $0x30] sm:$0xff] }
 0x763   : > { %v2410_v13 = vmul.f32 %v5559_v47, %v4963_v2  ;;  %v5584_v8 = vadd.f32 %v2347_v41, %v5009_v29  ;;  %v4571_v41 = vld [vmem:[%s5061_s1 + $0x30] sm:$0xff] }
 0x764   : > { %v2407_v2 = vmul.f32 %v5574_v37, %v4981_v12  ;;  %v5600_v12 = vadd.f32 %v2338_v22, %v5031_v44 }
 0x765   : > { %v2405_v29 = vmul.f32 %v5584_v8, %v4991_v18 }
 0x767   : > { %v2419_v46 = vpack.c.bf16 %v2406_v25, %v2405_v29 }
 0x76a   : > { %v2379_v50 = vpop.f32.mrf.mxu2 }
 0x76b   : > { %v2380_v14 = vadd.f32 %v4488_v49, %v2379_v50 }
 0x76d   : > { %v5539_v36 = vadd.f32 %v2380_v14, %v4961_v1  ;;  %v2359_v1 = vadd.f32 %v4488_v49, %v2358_v52  ;;  %v5569_v52 = vadd.f32 %v2356_v51, %v4993_v19  ;;  %v4278_v51 = vld [vmem:[%s6155_s11 + $0x38] sm:$0xff] }
 0x76e   : > { %2981 = vmatpush.msra.mxu2 %v4278_v51  ;;  %v4583_v51 = vld [vmem:[%s5111_s22 + $0x50] sm:$0xff] }
 0x76f   : > { %v2416_v27 = vmul.f32 %v5539_v36, %v4944_v55  ;;  %v2423_v55 = vpack.c.bf16 %v2414_v0, %v2413_v3  ;;  %v5564_v30 = vadd.f32 %v2359_v1, %v4987_v16  ;;  %v2344_v16 = vadd.f32 %v4488_v49, %v2343_v38  ;;  %v4568_v0 = vld [vmem:[%s5061_s1 + $0x18] sm:$0xff]  ;;  %v4569_v1 = vld [vmem:[%s5061_s1 + $0x20] sm:$0xff]  ;;  %v4570_v3 = vld [vmem:[%s5061_s1 + $0x28] sm:$0xff] }
 0x770   : > { %v2408_v19 = vmul.f32 %v5569_v52, %v4975_v9  ;;  %v2335_v38 = vadd.f32 %v4488_v49, %v5527_v26  ;;  %v5595_v9 = vadd.f32 %v2341_v21, %v5019_v35  ;;  %v2402_v26 = vmul.f32 %v5600_v12, %v5025_v43  ;;  %v4564_v49 = vld [vmem:[%s5045_s26] sm:$0xff] }
 0x771   : > { %v2424_v23 = vpack.c.bf16 %v2416_v27, %v2415_v7  ;;  %v2409_v61 = vmul.f32 %v5564_v30, %v4950_v59  ;;  %v5589_v15 = vadd.f32 %v2344_v16, %v5013_v31 }
 0x772   : > { %v2420_v59 = vpack.c.bf16 %v2408_v19, %v2407_v2  ;;  %v5605_v33 = vadd.f32 %v2335_v38, %v5028_v42  ;;  %v2403_v28 = vmul.f32 %v5595_v9, %v5001_v24 }
 0x773   : > { %2425 = vmatpush.bf16.msrb.mxu0 %v2424_v23  ;;  %v2421_v56 = vpack.c.bf16 %v2410_v13, %v2409_v61  ;;  %v2404_v31 = vmul.f32 %v5589_v15, %v5017_v34  ;;  %v4238_v34 = vld [vmem:[%s6152_s8 + $0x1] sm:$0x1]  ;;  %v4567_v23 = vld [vmem:[%s5061_s1 + $0x10] sm:$0xff]  ;;  %v4572_v61 = vld [vmem:[%s5061_s1 + $0x38] sm:$0xff] }
 0x774   : > { %v2401_v18 = vmul.f32 %v5605_v33, %v5035_v45  ;;  %v2400_v42 = vmax.f32 %v4238_v34, 1e-08  ;;  %v4271_v13 = vld [vmem:[%s6154_s10 + $0x20] sm:$0xff] }
 0x775   : > { %v2418_v35 = vpack.c.bf16 %v2404_v31, %v2403_v28 }
 0x776   : > { %v2417_v44 = vpack.c.bf16 %v2402_v26, %v2401_v18  ;;  %v2440_v32 = vperm.slane %v2400_v42, 0 }
 0x777   : > { %2426 = vmatpush.bf16.msrb.mxu0 %v2423_v55  ;;  %v4277_v55 = vld [vmem:[%s6155_s11 + $0x30] sm:$0xff] }
 0x778   : > { %v2442_v24 = vmul.f32 %v2440_v32, %v5051_v54  ;;  %v2443_v43 = vmul.f32 %v2440_v32, %v5053_v58  ;;  %v4565_v54 = vld [vmem:[%s5061_s1] sm:$0xff]  ;;  %v4566_v58 = vld [vmem:[%s5061_s1 + $0x8] sm:$0xff]  ;;  %2982 = vmatpush.msra.mxu2 %v4277_v55  ;;  %s6191_s1 = smov 32  }
 0x77a   : > { %v2444_v50 = vmul.f32 1.442695, %v2442_v24  ;;  %v2446_v48 = vmul.f32 1.442695, %v2443_v43  ;;  %2983 = vmatpush.msra.mxu2 %v4276_v57 }
 0x77b   : > { %2427 = vmatpush.bf16.msrb.mxu0 %v2422_v53  ;;  %v4272_v53 = vld [vmem:[%s6154_s10 + $0x28] sm:$0xff] }
 0x77c   : > { %4528 = vpow2.f32 %v2444_v50  ;;  %2984 = vmatpush.msra.mxu2 %v4275_v10 }
 0x77d   : > { %4530 = vpow2.f32 %v2446_v48  ;;  %v4573_v48 = vld [vmem:[%s5111_s22] sm:$0xff] }
 0x77f   : > { %2428 = vmatpush.bf16.msrb.mxu0 %v2421_v56 }
 0x782   : > { %v4529_v14 = vpop.eup %4528 }
 0x783   : > { %2429 = vmatpush.bf16.msrb.mxu0 %v2420_v59  ;;  %v4531_v4 = vpop.eup %4530 }
 0x787   : > { %2430 = vmatpush.bf16.msrb.mxu0 %v2419_v46 }
 0x78b   : > { %2431 = vmatpush.bf16.msrb.mxu0 %v2418_v35 }
 0x78f   : > { %2432 = vmatpush.bf16.msrb.mxu0 %v2417_v44 }
 0x792   : > { %2433 = vmatmul.bf16.vlgmr.msrb.gmra.mxu0 %v4564_v49 }
 0x80f   : > { %v2434_v45 = vpop.f32.mrf.mxu0 }
 0x810   : > { %v2448_v7 = vmul.f32 %v4529_v14, %v2434_v45  ;;  %v4574_v45 = vld [vmem:[%s5111_s22 + $0x8] sm:$0xff]  ;;  %v4575_v14 = vld [vmem:[%s5111_s22 + $0x10] sm:$0xff] }
 0x817   : > { %v2436_v40 = vpop.f32.mrf.mxu0 }
 0x818   : > { %v2449_v27 = vmul.f32 %v4531_v4, %v2436_v40  ;;  %v4576_v4 = vld [vmem:[%s5111_s22 + $0x18] sm:$0xff]  ;;  %v4577_v40 = vld [vmem:[%s5111_s22 + $0x20] sm:$0xff] }
 0x81a   : > { %v2450_v62 = vpack.c.bf16 %v2449_v27, %v2448_v7  ;;  %v4578_v7 = vld [vmem:[%s5111_s22 + $0x28] sm:$0xff]  ;;  %v4579_v27 = vld [vmem:[%s5111_s22 + $0x30] sm:$0xff] }
 0x81c   : > { %2458 = vmatpush.bf16.msrb.mxu1 %v2450_v62  ;;  %v4580_v62 = vld [vmem:[%s5111_s22 + $0x38] sm:$0xff] }
 0x81f   : > { %4239 = vmatmul.msk.bf16.vlgmr.msrb.gmra.mxu1 %vm836_vm0, %v4565_v54  ;;  %v4581_v54 = vld [vmem:[%s5111_s22 + $0x40] sm:$0xff] }
 0x820   : > { %3094 = vmatpush.msra.mxu1 %v4274_v6 }
 0x822   : > { %3095 = vmatpush.msra.mxu1 %v4273_v63  ;;  %v4584_v63 = vld [vmem:[%s5111_s22 + $0x58] sm:$0xff] }
 0x824   : > { %3096 = vmatpush.msra.mxu1 %v4272_v53  ;;  %v4585_v53 = vld [vmem:[%s5111_s22 + $0x60] sm:$0xff] }
 0x826   : > { %3097 = vmatpush.msra.mxu1 %v4271_v13 }
 0x82f   : > { %4240 = vmatmul.msk.bf16.gmra.mxu1 %vm836_vm0, %v4566_v58 }
 0x83f   : > { %4241 = vmatmul.msk.bf16.gmra.mxu1 %vm836_vm0, %v4567_v23 }
 0x84f   : > { %4242 = vmatmul.msk.bf16.gmra.mxu1 %vm836_vm0, %v4568_v0  ;;  %v4582_v0 = vld [vmem:[%s5111_s22 + $0x48] sm:$0xff] }
 0x85f   : > { %4243 = vmatmul.msk.bf16.gmra.mxu1 %vm836_vm0, %v4569_v1 }
 0x86f   : > { %4244 = vmatmul.msk.bf16.gmra.mxu1 %vm836_vm0, %v4570_v3 }
 0x87f   : > { %4245 = vmatmul.msk.bf16.gmra.mxu1 %vm836_vm0, %v4571_v41 }
 0x88f   : > { %4246 = vmatmul.msk.bf16.gmra.mxu1 %vm836_vm0, %v4572_v61  ;;  %v4586_v61 = vld [vmem:[%s5111_s22 + $0x68] sm:$0xff]  ;;  %vm3852_vm0 = vcmask 982912  }
 0x89c   : > { %v5659_v16 = vpop.f32.mrf.mxu1 }
 0x89d   : > { %4279 = vmatmul.msk.f32.vlgmr.msra.gmra.mxu2 %vm1470_vm1, %v5659_v16 }
 0x89f   : > { %4295 = vmatmul.msk.f32.vlgmr.msra.gmra.mxu1 %vm1470_vm1, %v5605_v33 }
 0x8a4   : > { %v2462_v56 = vpop.f32.mrf.mxu1 }
 0x8a5   : > { %4280 = vmatmul.msk.f32.gmra.mxu2 %vm1470_vm1, %v2462_v56  ;;  %v2500_v50 = vpack.c.bf16 %v2462_v56, %v5659_v16 }
 0x8a7   : > { %4296 = vmatmul.msk.f32.gmra.mxu1 %vm1470_vm1, %v5600_v12 }
 0x8ac   : > { %v2465_v19 = vpop.f32.mrf.mxu1 }
 0x8ad   : > { %4281 = vmatmul.msk.f32.gmra.mxu2 %vm1470_vm1, %v2465_v19 }
 0x8af   : > { %4297 = vmatmul.msk.f32.gmra.mxu1 %vm1470_vm1, %v5595_v9 }
 0x8b4   : > { %v2467_v21 = vpop.f32.mrf.mxu1 }
 0x8b5   : > { %4282 = vmatmul.msk.f32.gmra.mxu2 %vm1470_vm1, %v2467_v21  ;;  %v2501_v43 = vpack.c.bf16 %v2467_v21, %v2465_v19  ;;  %v4587_v19 = vld [vmem:[%s5111_s22 + $0x70] sm:$0xff] }
 0x8b7   : > { %4298 = vmatmul.msk.f32.gmra.mxu1 %vm1470_vm1, %v5589_v15 }
 0x8bc   : > { %v2470_v2 = vpop.f32.mrf.mxu1 }
 0x8bd   : > { %4283 = vmatmul.msk.f32.gmra.mxu2 %vm1470_vm1, %v2470_v2 }
 0x8bf   : > { %4299 = vmatmul.msk.f32.gmra.mxu1 %vm1470_vm1, %v5584_v8 }
 0x8c4   : > { %v2472_v22 = vpop.f32.mrf.mxu1 }
 0x8c5   : > { %4284 = vmatmul.msk.f32.gmra.mxu2 %vm1470_vm1, %v2472_v22  ;;  %v2502_v24 = vpack.c.bf16 %v2472_v22, %v2470_v2  ;;  %v4588_v22 = vld [vmem:[%s5111_s22 + $0x78] sm:$0xff]  ;;  %s3713_s22 = sld [smem:[#allocation2]] }
 0x8c7   : > { %4300 = vmatmul.msk.f32.gmra.mxu1 %vm1470_vm1, %v5579_v39 }
 0x8cc   : > { %v2475_v59 = vpop.f32.mrf.mxu1 }
 0x8cd   : > { %4285 = vmatmul.msk.f32.gmra.mxu2 %vm1470_vm1, %v2475_v59 }
 0x8cf   : > { %4301 = vmatmul.msk.f32.gmra.mxu1 %vm1470_vm1, %v5574_v37 }
 0x8d4   : > { %v2477_v25 = vpop.f32.mrf.mxu1 }
 0x8d5   : > { %4286 = vmatmul.msk.f32.gmra.mxu2 %vm1470_vm1, %v2477_v25  ;;  %v2503_v32 = vpack.c.bf16 %v2477_v25, %v2475_v59 }
 0x8d7   : > { %4302 = vmatmul.msk.f32.gmra.mxu1 %vm1470_vm1, %v5569_v52 }
 0x8dc   : > { %v2480_v38 = vpop.f32.mrf.mxu1 }
 0x8dd   : > { %4287 = vmatmul.msk.f32.gmra.mxu2 %vm1470_vm1, %v2480_v38 }
 0x8df   : > { %4303 = vmatmul.msk.f32.gmra.mxu1 %vm1470_vm1, %v5564_v30 }
 0x8e4   : > { %v2482_v29 = vpop.f32.mrf.mxu1 }
 0x8e5   : > { %4288 = vmatmul.msk.f32.gmra.mxu2 %vm1470_vm1, %v2482_v29  ;;  %v2504_v42 = vpack.c.bf16 %v2482_v29, %v2480_v38 }
 0x8e7   : > { %4304 = vmatmul.msk.f32.gmra.mxu1 %vm1470_vm1, %v5559_v47 }
 0x8ec   : > { %v2485_v46 = vpop.f32.mrf.mxu1 }
 0x8ed   : > { %4289 = vmatmul.msk.f32.gmra.mxu2 %vm1470_vm1, %v2485_v46 }
 0x8ef   : > { %4305 = vmatmul.msk.f32.gmra.mxu1 %vm1470_vm1, %v5554_v20 }
 0x8f4   : > { %v2487_v31 = vpop.f32.mrf.mxu1 }
 0x8f5   : > { %4290 = vmatmul.msk.f32.gmra.mxu2 %vm1470_vm1, %v2487_v31  ;;  %v2505_v34 = vpack.c.bf16 %v2487_v31, %v2485_v46 }
 0x8f7   : > { %4306 = vmatmul.msk.f32.gmra.mxu1 %vm1470_vm1, %v5549_v60 }
 0x8fc   : > { %v2490_v28 = vpop.f32.mrf.mxu1 }
 0x8fd   : > { %4291 = vmatmul.msk.f32.gmra.mxu2 %vm1470_vm1, %v2490_v28 }
 0x8ff   : > { %4307 = vmatmul.msk.f32.gmra.mxu1 %vm1470_vm1, %v5542_v5 }
 0x904   : > { %v2492_v35 = vpop.f32.mrf.mxu1 }
 0x905   : > { %4292 = vmatmul.msk.f32.gmra.mxu2 %vm1470_vm1, %v2492_v35  ;;  %v2506_v49 = vpack.c.bf16 %v2492_v35, %v2490_v28 }
 0x907   : > { %4308 = vmatmul.msk.f32.gmra.mxu1 %vm1470_vm1, %v5536_v11 }
 0x90c   : > { %v2495_v26 = vpop.f32.mrf.mxu1 }
 0x90d   : > { %4293 = vmatmul.msk.f32.gmra.mxu2 %vm1470_vm1, %v2495_v26 }
 0x90f   : > { %4309 = vmatmul.msk.f32.gmra.mxu1 %vm1470_vm1, %v5533_v17 }
 0x914   : > { %v2497_v18 = vpop.f32.mrf.mxu1 }
 0x915   : > { %4294 = vmatmul.msk.f32.gmra.mxu2 %vm1470_vm1, %v2497_v18  ;;  %v2507_v44 = vpack.c.bf16 %v2497_v18, %v2495_v26  ;;  %v4254_v26 = vld [vmem:[%s6153_s9 + $0x78] sm:$0xff] }
 0x916   : > { %2742 = vmatpush.msra.mxu0 %v4254_v26 }
 0x917   : > { %2508 = vmatpush.bf16.msrb.mxu3 %v2507_v44  ;;  %4310 = vmatmul.msk.f32.gmra.mxu1 %vm1470_vm1, %v5539_v36  ;;  %v4253_v44 = vld [vmem:[%s6153_s9 + $0x70] sm:$0xff] }
 0x918   : > { %2743 = vmatpush.msra.mxu0 %v4253_v44 }
 0x91b   : > { %2509 = vmatpush.bf16.msrb.mxu3 %v2506_v49  ;;  %v4252_v49 = vld [vmem:[%s6153_s9 + $0x68] sm:$0xff] }
 0x91c   : > { %2744 = vmatpush.msra.mxu0 %v4252_v49 }
 0x91f   : > { %2510 = vmatpush.bf16.msrb.mxu3 %v2505_v34  ;;  %v4251_v34 = vld [vmem:[%s6153_s9 + $0x60] sm:$0xff] }
 0x920   : > { %2745 = vmatpush.msra.mxu0 %v4251_v34 }
 0x923   : > { %2511 = vmatpush.bf16.msrb.mxu3 %v2504_v42  ;;  %v4250_v42 = vld [vmem:[%s6153_s9 + $0x58] sm:$0xff] }
 0x924   : > { %2746 = vmatpush.msra.mxu0 %v4250_v42 }
 0x927   : > { %2512 = vmatpush.bf16.msrb.mxu3 %v2503_v32 }
 0x92b   : > { %2513 = vmatpush.bf16.msrb.mxu3 %v2502_v24  ;;  %v4249_v24 = vld [vmem:[%s6153_s9 + $0x50] sm:$0xff] }
 0x92c   : > { %2747 = vmatpush.msra.mxu0 %v4249_v24 }
 0x92f   : > { %2514 = vmatpush.bf16.msrb.mxu3 %v2501_v43  ;;  %v4248_v43 = vld [vmem:[%s6153_s9 + $0x48] sm:$0xff] }
 0x930   : > { %2748 = vmatpush.msra.mxu0 %v4248_v43 }
 0x933   : > { %2515 = vmatpush.bf16.msrb.mxu3 %v2500_v50  ;;  %v4247_v50 = vld [vmem:[%s6153_s9 + $0x40] sm:$0xff] }
 0x934   : > { %2749 = vmatpush.msra.mxu0 %v4247_v50 }
 0x936   : > { %2516 = vmatmul.bf16.vlgmr.msrb.gmra.mxu3 %v4573_v48 }
 0x946   : > { %2521 = vmatmul.bf16.gmra.mxu3 %v4574_v45 }
 0x956   : > { %2526 = vmatmul.bf16.gmra.mxu3 %v4575_v14 }
 0x966   : > { %2531 = vmatmul.bf16.gmra.mxu3 %v4576_v4 }
 0x976   : > { %2536 = vmatmul.bf16.gmra.mxu3 %v4577_v40 }
 0x986   : > { %2541 = vmatmul.bf16.gmra.mxu3 %v4578_v7 }
 0x996   : > { %2546 = vmatmul.bf16.gmra.mxu3 %v4579_v27 }
 0x9a6   : > { %2551 = vmatmul.bf16.gmra.mxu3 %v4580_v62 }
 0x9b6   : > { %2556 = vmatmul.bf16.gmra.mxu3 %v4581_v54 }
 0x9b9   : > { %v5720_v58 = vpop.f32.mrf.mxu3 }
 0x9c1   : > { %v5722_v23 = vpop.f32.mrf.mxu3 }
 0x9c6   : > { %2561 = vmatmul.bf16.gmra.mxu3 %v4582_v0 }
 0x9c9   : > { %v5725_v1 = vpop.f32.mrf.mxu3 }
 0x9d1   : > { %v5727_v3 = vpop.f32.mrf.mxu3 }
 0x9d6   : > { %2566 = vmatmul.bf16.gmra.mxu3 %v4583_v51 }
 0x9d9   : > { %v5730_v55 = vpop.f32.mrf.mxu3 }
 0x9e1   : > { %v5732_v6 = vpop.f32.mrf.mxu3 }
 0x9e6   : > { %2571 = vmatmul.bf16.gmra.mxu3 %v4584_v63 }
 0x9e9   : > { %v5735_v57 = vpop.f32.mrf.mxu3 }
 0x9f1   : > { %v5737_v10 = vpop.f32.mrf.mxu3 }
 0x9f6   : > { %2576 = vmatmul.bf16.gmra.mxu3 %v4585_v53 }
 0x9f9   : > { %v5740_v13 = vpop.f32.mrf.mxu3 }
 0xa01   : > { %v5742_v41 = vpop.f32.mrf.mxu3 }
 0xa06   : > { %2581 = vmatmul.bf16.gmra.mxu3 %v4586_v61 }
 0xa09   : > { %v5745_v16 = vpop.f32.mrf.mxu3 }
 0xa11   : > { %v5747_v56 = vpop.f32.mrf.mxu3 }
 0xa16   : > { %2586 = vmatmul.bf16.gmra.mxu3 %v4587_v19 }
 0xa19   : > { %v5750_v21 = vpop.f32.mrf.mxu3 }
 0xa21   : > { %v5752_v2 = vpop.f32.mrf.mxu3 }
 0xa26   : > { %2591 = vmatmul.bf16.gmra.mxu3 %v4588_v22 }
 0xa29   : > { %v5755_v59 = vpop.f32.mrf.mxu3 }
 0xa31   : > { %v5757_v25 = vpop.f32.mrf.mxu3 }
 0xa39   : > { %v2557_v38 = vpop.f32.mrf.mxu3 }
 0xa3a   : > { %2613 = vrot.lane.b32.xlu2 %v2557_v38, %s6191_s1 }
 0xa41   : > { %v2559_v29 = vpop.f32.mrf.mxu3 }
 0xa42   : > { %2615 = vrot.lane.b32.xlu0 %v2559_v29, %s6191_s1 }
 0xa49   : > { %v2562_v46 = vpop.f32.mrf.mxu3 }
 0xa4a   : > { %2617 = vrot.lane.b32.xlu1 %v2562_v46, %s6191_s1 }
 0xa51   : > { %v2564_v31 = vpop.f32.mrf.mxu3 }
 0xa52   : > { %2619 = vrot.lane.b32.xlu2 %v2564_v31, %s6191_s1 }
 0xa59   : > { %v2567_v28 = vpop.f32.mrf.mxu3 }
 0xa5a   : > { %2621 = vrot.lane.b32.xlu0 %v2567_v28, %s6191_s1 }
 0xa61   : > { %v2569_v35 = vpop.f32.mrf.mxu3 }
 0xa62   : > { %2623 = vrot.lane.b32.xlu1 %v2569_v35, %s6191_s1 }
 0xa69   : > { %v2572_v18 = vpop.f32.mrf.mxu3 }
 0xa6a   : > { %2625 = vrot.lane.b32.xlu2 %v2572_v18, %s6191_s1 }
 0xa71   : > { %v2574_v32 = vpop.f32.mrf.mxu3 }
 0xa72   : > { %2627 = vrot.lane.b32.xlu0 %v2574_v32, %s6191_s1 }
 0xa79   : > { %v2577_v48 = vpop.f32.mrf.mxu3 }
 0xa7a   : > { %2629 = vrot.lane.b32.xlu1 %v2577_v48, %s6191_s1 }
 0xa81   : > { %v2579_v45 = vpop.f32.mrf.mxu3 }
 0xa82   : > { %2631 = vrot.lane.b32.xlu2 %v2579_v45, %s6191_s1 }
 0xa89   : > { %v2582_v14 = vpop.f32.mrf.mxu3 }
 0xa8a   : > { %2633 = vrot.lane.b32.xlu0 %v2582_v14, %s6191_s1 }
 0xa91   : > { %v2584_v4 = vpop.f32.mrf.mxu3 }
 0xa92   : > { %2635 = vrot.lane.b32.xlu1 %v2584_v4, %s6191_s1 }
 0xa94   : > { %v2614_v40 = vpop.permute.xlu2 %2613 }
 0xa95   : > { %v2661_v7 = vsel %vm1470_vm1, %v5720_v58, %v2614_v40 }
 0xa96   : > { %4255 = vmatmul.msk.f32.vlgmr.msra.gmra.mxu0 %vm1495_vm2, %v2661_v7 }
 0xa99   : > { %v2587_v27 = vpop.f32.mrf.mxu3 }
 0xa9a   : > { %2637 = vrot.lane.b32.xlu2 %v2587_v27, %s6191_s1 }
 0xaa1   : > { %v2589_v62 = vpop.f32.mrf.mxu3 }
 0xaa2   : > { %2639 = vrot.lane.b32.xlu0 %v2589_v62, %s6191_s1 }
 0xaa9   : > { %v2592_v54 = vpop.f32.mrf.mxu3 }
 0xaaa   : > { %2641 = vrot.lane.b32.xlu1 %v2592_v54, %s6191_s1 }
 0xaac   : > { %v2620_v61 = vpop.permute.xlu2 %2619 }
 0xaad   : > { %v2664_v19 = vsel %vm1470_vm1, %v5727_v3, %v2620_v61 }
 0xab1   : > { %v2594_v0 = vpop.f32.mrf.mxu3 }
 0xab2   : > { %2643 = vrot.lane.b32.xlu2 %v2594_v0, %s6191_s1  ;;  %s6192_s1 = smov 96   ;;  %v4314_v0 = vld [vmem:[%s6156_s12 + $0x38] sm:$0xff] }
 0xab3   : > { %3212 = vmatpush.msrb.mxu0 %v4314_v0 }
 0xab4   : > { %v2616_v51 = vpop.permute.xlu0 %2615 }
 0xab5   : > { %v2662_v63 = vsel %vm1470_vm1, %v5722_v23, %v2616_v51 }
 0xab6   : > { %4256 = vmatmul.msk.f32.gmra.mxu0 %vm1495_vm2, %v2662_v63 }
 0xabc   : > { %v2618_v58 = vpop.permute.xlu1 %2617 }
 0xabd   : > { %v2663_v53 = vsel %vm1470_vm1, %v5725_v1, %v2618_v58  ;;  %v4312_v58 = vld [vmem:[%s6156_s12 + $0x28] sm:$0xff] }
 0xabe   : > { %4257 = vmatmul.msk.f32.gmra.mxu0 %vm1495_vm2, %v2663_v53 }
 0xac4   : > { %v2626_v1 = vpop.permute.xlu2 %2625 }
 0xac5   : > { %v2667_v46 = vsel %vm1470_vm1, %v5735_v57, %v2626_v1 }
 0xac6   : > { %4258 = vmatmul.msk.f32.gmra.mxu0 %vm1495_vm2, %v2664_v19 }
 0xacc   : > { %v2622_v22 = vpop.permute.xlu0 %2621 }
 0xacd   : > { %v2665_v38 = vsel %vm1470_vm1, %v5730_v55, %v2622_v22 }
 0xace   : > { %4259 = vmatmul.msk.f32.gmra.mxu0 %vm1495_vm2, %v2665_v38 }
 0xad4   : > { %v2624_v23 = vpop.permute.xlu1 %2623 }
 0xad5   : > { %v2666_v29 = vsel %vm1470_vm1, %v5732_v6, %v2624_v23 }
 0xad6   : > { %4260 = vmatmul.msk.f32.gmra.mxu0 %vm1495_vm2, %v2666_v29 }
 0xadc   : > { %v2632_v6 = vpop.permute.xlu2 %2631 }
 0xadd   : > { %v2670_v35 = vsel %vm1470_vm1, %v5742_v41, %v2632_v6 }
 0xade   : > { %4261 = vmatmul.msk.f32.gmra.mxu0 %vm1495_vm2, %v2667_v46 }
 0xae4   : > { %v2628_v3 = vpop.permute.xlu0 %2627 }
 0xae5   : > { %v2668_v31 = vsel %vm1470_vm1, %v5737_v10, %v2628_v3 }
 0xae6   : > { %4262 = vmatmul.msk.f32.gmra.mxu0 %vm1495_vm2, %v2668_v31 }
 0xaec   : > { %v2630_v55 = vpop.permute.xlu1 %2629 }
 0xaed   : > { %v2669_v28 = vsel %vm1470_vm1, %v5740_v13, %v2630_v55 }
 0xaee   : > { %4263 = vmatmul.msk.f32.gmra.mxu0 %vm1495_vm2, %v2669_v28 }
 0xaf4   : > { %v2638_v13 = vpop.permute.xlu2 %2637 }
 0xaf5   : > { %v2673_v44 = vsel %vm1470_vm1, %v5750_v21, %v2638_v13 }
 0xaf6   : > { %4264 = vmatmul.msk.f32.gmra.mxu0 %vm1495_vm2, %v2670_v35 }
 0xafc   : > { %v2634_v57 = vpop.permute.xlu0 %2633 }
 0xafd   : > { %v2671_v26 = vsel %vm1470_vm1, %v5745_v16, %v2634_v57 }
 0xafe   : > { %4265 = vmatmul.msk.f32.gmra.mxu0 %vm1495_vm2, %v2671_v26 }
 0xb04   : > { %v2636_v10 = vpop.permute.xlu1 %2635 }
 0xb05   : > { %v2672_v18 = vsel %vm1470_vm1, %v5747_v56, %v2636_v10 }
 0xb06   : > { %4266 = vmatmul.msk.f32.gmra.mxu0 %vm1495_vm2, %v2672_v18 }
 0xb0c   : > { %v2644_v32 = vpop.permute.xlu2 %2643 }
 0xb0d   : > { %v2676_v21 = vsel %vm1470_vm1, %v5757_v25, %v2644_v32 }
 0xb0e   : > { %4267 = vmatmul.msk.f32.gmra.mxu0 %vm1495_vm2, %v2673_v44 }
 0xb13   : > { %v2751_v41 = vpop.f32.mrf.mxu0 }
 0xb14   : > { %v2799_v49 = vmul.f32 %v2751_v41, %v2661_v7  ;;  %v2640_v34 = vpop.permute.xlu0 %2639 }
 0xb15   : > { %v2674_v16 = vsel %vm1470_vm1, %v5752_v2, %v2640_v34 }
 0xb16   : > { %2831 = vrot.lane.b32.xlu0 %v2799_v49, %s6192_s1  ;;  %4268 = vmatmul.msk.f32.gmra.mxu0 %vm1495_vm2, %v2674_v16 }
 0xb1c   : > { %v2642_v42 = vpop.permute.xlu1 %2641 }
 0xb1d   : > { %v2675_v56 = vsel %vm1470_vm1, %v5755_v59, %v2642_v42 }
 0xb1e   : > { %4269 = vmatmul.msk.f32.gmra.mxu0 %vm1495_vm2, %v2675_v56 }
 0xb26   : > { %4270 = vmatmul.msk.f32.gmra.mxu0 %vm1495_vm2, %v2676_v21 }
 0xb33   : > { %v2754_v24 = vpop.f32.mrf.mxu0 }
 0xb34   : > { %v2800_v43 = vmul.f32 %v2754_v24, %v2662_v63  ;;  %v4313_v63 = vld [vmem:[%s6156_s12 + $0x30] sm:$0xff] }
 0xb35   : > { %3213 = vmatpush.msrb.mxu0 %v4313_v63 }
 0xb36   : > { %2833 = vrot.lane.b32.xlu1 %v2800_v43, %s6192_s1 }
 0xb37   : > { %3214 = vmatpush.msrb.mxu0 %v4312_v58 }
 0xb3b   : > { %v2757_v2 = vpop.f32.mrf.mxu0 }
 0xb3c   : > { %v2801_v50 = vmul.f32 %v2757_v2, %v2663_v53  ;;  %v4311_v53 = vld [vmem:[%s6156_s12 + $0x20] sm:$0xff] }
 0xb3d   : > { %3215 = vmatpush.msrb.mxu0 %v4311_v53  ;;  %v4334_v53 = vld [vmem:[%s6158_s14 + $0x30] sm:$0xff] }
 0xb3e   : > { %2835 = vrot.lane.b32.xlu2 %v2801_v50, %s6192_s1 }
 0xb43   : > { %v2760_v48 = vpop.f32.mrf.mxu0 }
 0xb44   : > { %v2802_v45 = vmul.f32 %v2760_v48, %v2664_v19 }
 0xb46   : > { %2837 = vrot.lane.b32.xlu0 %v2802_v45, %s6192_s1 }
 0xb4b   : > { %v2763_v59 = vpop.f32.mrf.mxu0 }
 0xb4c   : > { %v5851_v14 = vmul.f32 %v2763_v59, %v2665_v38 }
 0xb4e   : > { %2839 = vrot.lane.b32.xlu1 %v5851_v14, %s6192_s1 }
 0xb53   : > { %v2766_v25 = vpop.f32.mrf.mxu0 }
 0xb54   : > { %v5855_v4 = vmul.f32 %v2766_v25, %v2666_v29 }
 0xb56   : > { %2841 = vrot.lane.b32.xlu2 %v5855_v4, %s6192_s1 }
 0xb5b   : > { %v2769_v40 = vpop.f32.mrf.mxu0 }
 0xb5c   : > { %v5859_v7 = vmul.f32 %v2769_v40, %v2667_v46 }
 0xb5e   : > { %2843 = vrot.lane.b32.xlu0 %v5859_v7, %s6192_s1 }
 0xb63   : > { %v2772_v27 = vpop.f32.mrf.mxu0 }
 0xb64   : > { %v5863_v62 = vmul.f32 %v2772_v27, %v2668_v31 }
 0xb66   : > { %2845 = vrot.lane.b32.xlu1 %v5863_v62, %s6192_s1 }
 0xb6b   : > { %v2775_v54 = vpop.f32.mrf.mxu0 }
 0xb6c   : > { %v5870_v51 = vmul.f32 %v2775_v54, %v2669_v28 }
 0xb6e   : > { %2847 = vrot.lane.b32.xlu2 %v5870_v51, %s6192_s1 }
 0xb73   : > { %v2778_v61 = vpop.f32.mrf.mxu0 }
 0xb74   : > { %v5883_v19 = vmul.f32 %v2778_v61, %v2670_v35  ;;  %v4333_v61 = vld [vmem:[%s6158_s14 + $0x28] sm:$0xff] }
 0xb76   : > { %2849 = vrot.lane.b32.xlu0 %v5883_v19, %s6192_s1 }
 0xb7b   : > { %v2781_v22 = vpop.f32.mrf.mxu0 }
 0xb7c   : > { %v5887_v38 = vmul.f32 %v2781_v22, %v2671_v26  ;;  %v4332_v22 = vld [vmem:[%s6158_s14 + $0x20] sm:$0xff] }
 0xb7e   : > { %2851 = vrot.lane.b32.xlu1 %v5887_v38, %s6192_s1 }
 0xb83   : > { %v2784_v23 = vpop.f32.mrf.mxu0 }
 0xb84   : > { %v5891_v29 = vmul.f32 %v2784_v23, %v2672_v18 }
 0xb86   : > { %2853 = vrot.lane.b32.xlu2 %v5891_v29, %s6192_s1 }
 0xb88   : > { %v2832_v1 = vpop.permute.xlu0 %2831 }
 0xb89   : > { %v2879_v46 = vadd.f32 %v2832_v1, %v2799_v49  ;;  %v2986_v1 = vpop.f32.mrf.mxu2 }
 0xb8b   : > { %4532 = vtanh.f32 %v2879_v46  ;;  %v2787_v3 = vpop.f32.mrf.mxu0 }
 0xb8c   : > { %v5895_v31 = vmul.f32 %v2787_v3, %v2673_v44 }
 0xb8e   : > { %2855 = vrot.lane.b32.xlu0 %v5895_v31, %s6192_s1 }
 0xb91   : > { %v4533_v55 = vpop.eup %4532 }
 0xb92   : > { %4315 = vmatmul.msk.f32.vlgmr.msrb.gmra.mxu0 %vm1470_vm1, %v4533_v55 }
 0xb93   : > { %v2790_v28 = vpop.f32.mrf.mxu0 }
 0xb94   : > { %v5900_v6 = vmul.f32 %v2790_v28, %v2674_v16  ;;  %v2989_v28 = vpop.f32.mrf.mxu2 }
 0xb96   : > { %2857 = vrot.lane.b32.xlu1 %v5900_v6, %s6192_s1 }
 0xb98   : > { %v2836_v44 = vpop.permute.xlu2 %2835 }
 0xb99   : > { %v2881_v41 = vadd.f32 %v2836_v44, %v2801_v50 }
 0xb9b   : > { %v2793_v35 = vpop.f32.mrf.mxu0 }
 0xb9c   : > { %v5904_v57 = vmul.f32 %v2793_v35, %v2675_v56  ;;  %v3099_v35 = vpop.f32.mrf.mxu1 }
 0xb9d   : > { %v3100_v44 = vadd.f32 %v3099_v35, %v2986_v1 }
 0xb9e   : > { %2859 = vrot.lane.b32.xlu2 %v5904_v57, %s6192_s1 }
 0xba3   : > { %v2796_v26 = vpop.f32.mrf.mxu0 }
 0xba4   : > { %v5908_v10 = vmul.f32 %v2796_v26, %v2676_v21 }
 0xba6   : > { %2861 = vrot.lane.b32.xlu0 %v5908_v10, %s6192_s1  ;;  %s714_s1 = scalar_lea.vmem [#allocation6], %s713_s21 }
 0xba7   : > { %s3871_s26 = sshll.u32 %s714_s1, 4  ;;  %s3872_s26 = int_to_ptr.vmem [resolvable:$true] %s3871_s26 }
 0xba8   : > { %v2834_v18 = vpop.permute.xlu1 %2833 }
 0xba9   : > { %v2880_v13 = vadd.f32 %v2834_v18, %v2800_v43 }
 0xbab   : > { %4534 = vtanh.f32 %v2880_v13 }
 0xbac   : > { %4536 = vtanh.f32 %v2881_v41  ;;  %v5949_v41 = vld [vmem:[%s6157_s13 + $0x1] ss:$0 sm:$0xff] }
 0xbb0   : > { %v2842_v24 = vpop.permute.xlu2 %2841 }
 0xbb1   : > { %v4535_v49 = vpop.eup %4534  ;;  %v2884_v43 = vadd.f32 %v2842_v24, %v5855_v4 }
 0xbb2   : > { %4316 = vmatmul.msk.f32.gmra.mxu0 %vm1470_vm1, %v4535_v49  ;;  %v4537_v16 = vpop.eup %4536 }
 0xbb8   : > { %v2838_v34 = vpop.permute.xlu0 %2837 }
 0xbb9   : > { %v2882_v42 = vadd.f32 %v2838_v34, %v2802_v45 }
 0xbba   : > { %4317 = vmatmul.msk.f32.gmra.mxu0 %vm1470_vm1, %v4537_v16 }
 0xbbb   : > { %4538 = vtanh.f32 %v2882_v42 }
 0xbc0   : > { %v2840_v56 = vpop.permute.xlu1 %2839 }
 0xbc1   : > { %v4539_v32 = vpop.eup %4538  ;;  %v2883_v21 = vadd.f32 %v2840_v56, %v5851_v14  ;;  %v3102_v56 = vpop.f32.mrf.mxu1 }
 0xbc2   : > { %4318 = vmatmul.msk.f32.gmra.mxu0 %vm1470_vm1, %v4539_v32 }
 0xbc3   : > { %4540 = vtanh.f32 %v2883_v21 }
 0xbc4   : > { %4542 = vtanh.f32 %v2884_v43 }
 0xbc8   : > { %v2848_v40 = vpop.permute.xlu2 %2847 }
 0xbc9   : > { %v4541_v2 = vpop.eup %4540  ;;  %v2887_v4 = vadd.f32 %v2848_v40, %v5870_v51 }
 0xbca   : > { %4319 = vmatmul.msk.f32.gmra.mxu0 %vm1470_vm1, %v4541_v2  ;;  %v4543_v48 = vpop.eup %4542 }
 0xbd0   : > { %v2844_v50 = vpop.permute.xlu0 %2843 }
 0xbd1   : > { %v2885_v45 = vadd.f32 %v2844_v50, %v5859_v7 }
 0xbd2   : > { %4320 = vmatmul.msk.f32.gmra.mxu0 %vm1470_vm1, %v4543_v48 }
 0xbd3   : > { %4544 = vtanh.f32 %v2885_v45 }
 0xbd8   : > { %v2846_v59 = vpop.permute.xlu1 %2845 }
 0xbd9   : > { %v4545_v25 = vpop.eup %4544  ;;  %v2886_v14 = vadd.f32 %v2846_v59, %v5863_v62  ;;  %v4335_v62 = vld [vmem:[%s6158_s14 + $0x38] sm:$0xff] }
 0xbda   : > { %4321 = vmatmul.msk.f32.gmra.mxu0 %vm1470_vm1, %v4545_v25  ;;  %3388 = vmatpush.msrb.mxu2 %v4335_v62  ;;  %v3103_v25 = vadd.f32 %v3102_v56, %v2989_v28 }
 0xbdb   : > { %4546 = vtanh.f32 %v2886_v14 }
 0xbdc   : > { %4548 = vtanh.f32 %v2887_v4  ;;  %3389 = vmatpush.msrb.mxu2 %v4334_v53 }
 0xbde   : > { %3390 = vmatpush.msrb.mxu2 %v4333_v61 }
 0xbe0   : > { %3391 = vmatpush.msrb.mxu2 %v4332_v22 }
 0xbe1   : > { %v4547_v27 = vpop.eup %4546 }
 0xbe2   : > { %4322 = vmatmul.msk.f32.gmra.mxu0 %vm1470_vm1, %v4547_v27  ;;  %v4549_v0 = vpop.eup %4548 }
 0xbe8   : > { %v2850_v54 = vpop.permute.xlu0 %2849 }
 0xbe9   : > { %v2888_v7 = vadd.f32 %v2850_v54, %v5883_v19  ;;  %v2854_v19 = vpop.permute.xlu2 %2853 }
 0xbea   : > { %4323 = vmatmul.msk.f32.gmra.mxu0 %vm1470_vm1, %v4549_v0 }
 0xbeb   : > { %4550 = vtanh.f32 %v2888_v7 }
 0xbf0   : > { %v2852_v63 = vpop.permute.xlu1 %2851 }
 0xbf1   : > { %v4551_v58 = vpop.eup %4550  ;;  %v2889_v51 = vadd.f32 %v2852_v63, %v5887_v38  ;;  %v2890_v38 = vadd.f32 %v2854_v19, %v5891_v29 }
 0xbf2   : > { %4324 = vmatmul.msk.f32.gmra.mxu0 %vm1470_vm1, %v4551_v58 }
 0xbf3   : > { %4552 = vtanh.f32 %v2889_v51 }
 0xbf4   : > { %4554 = vtanh.f32 %v2890_v38 }
 0xbf8   : > { %v2860_v29 = vpop.permute.xlu2 %2859 }
 0xbf9   : > { %v4553_v23 = vpop.eup %4552  ;;  %v2893_v49 = vadd.f32 %v2860_v29, %v5904_v57  ;;  %v3105_v57 = vpop.f32.mrf.mxu1 }
 0xbfa   : > { %4325 = vmatmul.msk.f32.gmra.mxu0 %vm1470_vm1, %v4553_v23  ;;  %v4555_v3 = vpop.eup %4554 }
 0xc00   : > { %v2856_v46 = vpop.permute.xlu0 %2855 }
 0xc01   : > { %v2891_v55 = vadd.f32 %v2856_v46, %v5895_v31  ;;  %v2992_v31 = vpop.f32.mrf.mxu2  ;;  %v3108_v45 = vpop.f32.mrf.mxu1 }
 0xc02   : > { %4326 = vmatmul.msk.f32.gmra.mxu0 %vm1470_vm1, %v4555_v3  ;;  %v3106_v0 = vadd.f32 %v3105_v57, %v2992_v31 }
 0xc03   : > { %4556 = vtanh.f32 %v2891_v55 }
 0xc08   : > { %v2858_v26 = vpop.permute.xlu1 %2857 }
 0xc09   : > { %v4557_v18 = vpop.eup %4556  ;;  %v2892_v13 = vadd.f32 %v2858_v26, %v5900_v6  ;;  %v2995_v43 = vpop.f32.mrf.mxu2 }
 0xc0a   : > { %4327 = vmatmul.msk.f32.gmra.mxu0 %vm1470_vm1, %v4557_v18  ;;  %v3111_v14 = vpop.f32.mrf.mxu1  ;;  %v3109_v53 = vadd.f32 %v3108_v45, %v2995_v43 }
 0xc0b   : > { %4558 = vtanh.f32 %v2892_v13 }
 0xc0c   : > { %4560 = vtanh.f32 %v2893_v49 }
 0xc0f   : > { %v3217_v34 = vpop.f32.mrf.mxu0 }
 0xc10   : > { %v3265_v16 = vadd.f32 %v3217_v34, %v3100_v44 }
 0xc11   : > { %v4559_v42 = vpop.eup %4558  ;;  %v2998_v48 = vpop.f32.mrf.mxu2 }
 0xc12   : > { %v3286_v32 = vadd.f32 %v5949_v41, %v3265_v16  ;;  %4328 = vmatmul.msk.f32.gmra.mxu0 %vm1470_vm1, %v4559_v42  ;;  %v4561_v24 = vpop.eup %4560  ;;  %v3114_v63 = vpop.f32.mrf.mxu1  ;;  %v3112_v46 = vadd.f32 %v3111_v14, %v2998_v48 }
 0xc14   : > { %v3302_v6 = vmax.f32 %v3286_v32, 0.0 }
 0xc16   : > { %4337 = vmatmul.msk.f32.vlgmr.msrb.gmra.mxu2 %vm1470_vm1, %v3302_v6 }
 0xc18   : > { %v2862_v21 = vpop.permute.xlu0 %2861 }
 0xc19   : > { %v2894_v2 = vadd.f32 %v2862_v21, %v5908_v10  ;;  %v3001_v59 = vpop.f32.mrf.mxu2 }
 0xc1a   : > { %4329 = vmatmul.msk.f32.gmra.mxu0 %vm1470_vm1, %v4561_v24  ;;  %v3117_v23 = vpop.f32.mrf.mxu1  ;;  %v3115_v13 = vadd.f32 %v3114_v63, %v3001_v59 }
 0xc1b   : > { %4562 = vtanh.f32 %v2894_v2 }
 0xc21   : > { %v4563_v50 = vpop.eup %4562  ;;  %v3004_v10 = vpop.f32.mrf.mxu2 }
 0xc22   : > { %4330 = vmatmul.msk.f32.gmra.mxu0 %vm1470_vm1, %v4563_v50  ;;  %v3120_v18 = vpop.f32.mrf.mxu1  ;;  %v3118_v16 = vadd.f32 %v3117_v23, %v3004_v10 }
 0xc29   : > { %v3007_v22 = vpop.f32.mrf.mxu2 }
 0xc2a   : > { %v3123_v42 = vpop.f32.mrf.mxu1  ;;  %v3121_v24 = vadd.f32 %v3120_v18, %v3007_v22 }
 0xc2f   : > { %v3220_v40 = vpop.f32.mrf.mxu0 }
 0xc30   : > { %v3266_v4 = vadd.f32 %v3220_v40, %v3103_v25 }
 0xc31   : > { %v3010_v35 = vpop.f32.mrf.mxu2 }
 0xc32   : > { %v3287_v27 = vadd.f32 %v5949_v41, %v3266_v4  ;;  %v3126_v50 = vpop.f32.mrf.mxu1  ;;  %v3124_v59 = vadd.f32 %v3123_v42, %v3010_v35 }
 0xc34   : > { %v3303_v54 = vmax.f32 %v3287_v27, 0.0 }
 0xc36   : > { %4338 = vmatmul.msk.f32.gmra.mxu2 %vm1470_vm1, %v3303_v54 }
 0xc37   : > { %v3223_v7 = vpop.f32.mrf.mxu0 }
 0xc38   : > { %v3267_v62 = vadd.f32 %v3223_v7, %v3106_v0 }
 0xc39   : > { %v3013_v34 = vpop.f32.mrf.mxu2 }
 0xc3a   : > { %v3288_v58 = vadd.f32 %v5949_v41, %v3267_v62  ;;  %v3129_v27 = vpop.f32.mrf.mxu1  ;;  %v3127_v0 = vadd.f32 %v3126_v50, %v3013_v34 }
 0xc3c   : > { %v3304_v51 = vmax.f32 %v3288_v58, 0.0 }
 0xc3e   : > { %4339 = vmatmul.msk.f32.gmra.mxu2 %vm1470_vm1, %v3304_v51 }
 0xc3f   : > { %v3226_v61 = vpop.f32.mrf.mxu0 }
 0xc40   : > { %v3268_v19 = vadd.f32 %v3226_v61, %v3109_v53 }
 0xc41   : > { %v3016_v43 = vpop.f32.mrf.mxu2 }
 0xc42   : > { %v3289_v38 = vadd.f32 %v5949_v41, %v3268_v19  ;;  %v3132_v51 = vpop.f32.mrf.mxu1  ;;  %v3130_v53 = vadd.f32 %v3129_v27, %v3016_v43  ;;  %v3461_v19 = vld [vmem:[#allocation3 + $0x38] sm:$0xff] }
 0xc43   : > { %3527 = vmatpush.msrb.mxu1 %v3461_v19 }
 0xc44   : > { %v3305_v1 = vmax.f32 %v3289_v38, 0.0  ;;  %v3460_v38 = vld [vmem:[#allocation3 + $0x30] sm:$0xff] }
 0xc45   : > { %3528 = vmatpush.msrb.mxu1 %v3460_v38 }
 0xc46   : > { %4340 = vmatmul.msk.f32.gmra.mxu2 %vm1470_vm1, %v3305_v1  ;;  %v3459_v1 = vld [vmem:[#allocation3 + $0x28] sm:$0xff] }
 0xc47   : > { %v3229_v3 = vpop.f32.mrf.mxu0  ;;  %3529 = vmatpush.msrb.mxu1 %v3459_v1 }
 0xc48   : > { %v3269_v55 = vadd.f32 %v3229_v3, %v3112_v46  ;;  %v3458_v3 = vld [vmem:[#allocation3 + $0x20] sm:$0xff] }
 0xc49   : > { %v3019_v40 = vpop.f32.mrf.mxu2  ;;  %3530 = vmatpush.msrb.mxu1 %v3458_v3 }
 0xc4a   : > { %v3290_v28 = vadd.f32 %v5949_v41, %v3269_v55  ;;  %v3135_v35 = vpop.f32.mrf.mxu1 }
 0xc4c   : > { %v3306_v26 = vmax.f32 %v3290_v28, 0.0  ;;  %v3133_v28 = vadd.f32 %v3132_v51, %v3019_v40 }
 0xc4e   : > { %4341 = vmatmul.msk.f32.gmra.mxu2 %vm1470_vm1, %v3306_v26 }
 0xc4f   : > { %v3232_v29 = vpop.f32.mrf.mxu0 }
 0xc50   : > { %v3270_v44 = vadd.f32 %v3232_v29, %v3115_v13 }
 0xc51   : > { %v3022_v63 = vpop.f32.mrf.mxu2 }
 0xc52   : > { %v3291_v31 = vadd.f32 %v5949_v41, %v3270_v44  ;;  %v3136_v44 = vadd.f32 %v3135_v35, %v3022_v63 }
 0xc54   : > { %v3307_v49 = vmax.f32 %v3291_v31, 0.0 }
 0xc56   : > { %4342 = vmatmul.msk.f32.gmra.mxu2 %vm1470_vm1, %v3307_v49 }
 0xc57   : > { %v3235_v56 = vpop.f32.mrf.mxu0 }
 0xc58   : > { %v3271_v32 = vadd.f32 %v3235_v56, %v3118_v16  ;;  %v3138_v16 = vpop.f32.mrf.mxu1 }
 0xc59   : > { %v3025_v55 = vpop.f32.mrf.mxu2 }
 0xc5a   : > { %v3292_v6 = vadd.f32 %v5949_v41, %v3271_v32  ;;  %v3139_v32 = vadd.f32 %v3138_v16, %v3025_v55 }
 0xc5c   : > { %v3308_v21 = vmax.f32 %v3292_v6, 0.0 }
 0xc5e   : > { %4343 = vmatmul.msk.f32.gmra.mxu2 %vm1470_vm1, %v3308_v21 }
 0xc5f   : > { %v3238_v2 = vpop.f32.mrf.mxu0 }
 0xc60   : > { %v3272_v57 = vadd.f32 %v3238_v2, %v3121_v24  ;;  %v3141_v2 = vpop.f32.mrf.mxu1 }
 0xc61   : > { %v3028_v31 = vpop.f32.mrf.mxu2 }
 0xc62   : > { %v3293_v48 = vadd.f32 %v5949_v41, %v3272_v57  ;;  %v3142_v50 = vadd.f32 %v3141_v2, %v3028_v31 }
 0xc64   : > { %v3309_v45 = vmax.f32 %v3293_v48, 0.0  ;;  %v5987_v48 = vld [vmem:[%s6159_s15 + $0x1] ss:$0 sm:$0xff] }
 0xc66   : > { %4344 = vmatmul.msk.f32.gmra.mxu2 %vm1470_vm1, %v3309_v45 }
 0xc67   : > { %v3241_v25 = vpop.f32.mrf.mxu0 }
 0xc68   : > { %v3273_v14 = vadd.f32 %v3241_v25, %v3124_v59 }
 0xc69   : > { %v3031_v24 = vpop.f32.mrf.mxu2 }
 0xc6a   : > { %v3294_v4 = vadd.f32 %v5949_v41, %v3273_v14 }
 0xc6c   : > { %v3310_v54 = vmax.f32 %v3294_v4, 0.0 }
 0xc6e   : > { %4345 = vmatmul.msk.f32.gmra.mxu2 %vm1470_vm1, %v3310_v54  ;;  %v3144_v54 = vpop.f32.mrf.mxu1 }
 0xc6f   : > { %v3244_v10 = vpop.f32.mrf.mxu0 }
 0xc70   : > { %v3274_v7 = vadd.f32 %v3244_v10, %v3127_v0  ;;  %v3145_v0 = vadd.f32 %v3144_v54, %v3031_v24  ;;  %v3597_v24 = vld [vmem:[%s6162_s18 + $0x8] sm:$0xff] }
 0xc72   : > { %v3295_v62 = vadd.f32 %v5949_v41, %v3274_v7 }
 0xc74   : > { %v3311_v58 = vmax.f32 %v3295_v62, 0.0 }
 0xc76   : > { %4346 = vmatmul.msk.f32.gmra.mxu2 %vm1470_vm1, %v3311_v58 }
 0xc77   : > { %v3247_v61 = vpop.f32.mrf.mxu0 }
 0xc78   : > { %v3275_v22 = vadd.f32 %v3247_v61, %v3130_v53 }
 0xc7a   : > { %v3296_v23 = vadd.f32 %v5949_v41, %v3275_v22 }
 0xc7c   : > { %v3312_v46 = vmax.f32 %v3296_v23, 0.0 }
 0xc7e   : > { %4347 = vmatmul.msk.f32.gmra.mxu2 %vm1470_vm1, %v3312_v46 }
 0xc7f   : > { %v3250_v26 = vpop.f32.mrf.mxu0 }
 0xc80   : > { %v3276_v18 = vadd.f32 %v3250_v26, %v3133_v28 }
 0xc82   : > { %v3297_v13 = vadd.f32 %v5949_v41, %v3276_v18 }
 0xc84   : > { %v3313_v29 = vmax.f32 %v3297_v13, 0.0 }
 0xc86   : > { %4348 = vmatmul.msk.f32.gmra.mxu2 %vm1470_vm1, %v3313_v29 }
 0xc87   : > { %v3253_v49 = vpop.f32.mrf.mxu0 }
 0xc88   : > { %v3277_v34 = vadd.f32 %v3253_v49, %v3136_v44 }
 0xc8a   : > { %v3298_v42 = vadd.f32 %v5949_v41, %v3277_v34 }
 0xc8c   : > { %v3314_v56 = vmax.f32 %v3298_v42, 0.0 }
 0xc8e   : > { %4349 = vmatmul.msk.f32.gmra.mxu2 %vm1470_vm1, %v3314_v56  ;;  %v3599_v56 = vld [vmem:[%s6162_s18 + $0x18] sm:$0xff] }
 0xc8f   : > { %v3256_v6 = vpop.f32.mrf.mxu0  ;;  %3660 = vmatpush.msra.mxu3 %v3599_v56 }
 0xc90   : > { %v3278_v21 = vadd.f32 %v3256_v6, %v3139_v32  ;;  %v3598_v6 = vld [vmem:[%s6162_s18 + $0x10] sm:$0xff] }
 0xc91   : > { %3661 = vmatpush.msra.mxu3 %v3598_v6 }
 0xc92   : > { %v3299_v43 = vadd.f32 %v5949_v41, %v3278_v21 }
 0xc93   : > { %3662 = vmatpush.msra.mxu3 %v3597_v24 }
 0xc94   : > { %v3315_v57 = vmax.f32 %v3299_v43, 0.0  ;;  %v3596_v43 = vld [vmem:[%s6162_s18] sm:$0xff] }
 0xc95   : > { %3663 = vmatpush.msra.mxu3 %v3596_v43 }
 0xc96   : > { %4350 = vmatmul.msk.f32.gmra.mxu2 %vm1470_vm1, %v3315_v57 }
 0xc97   : > { %v3259_v45 = vpop.f32.mrf.mxu0 }
 0xc98   : > { %v3279_v59 = vadd.f32 %v3259_v45, %v3142_v50 }
 0xc99   : > { %v3393_v25 = vpop.f32.mrf.mxu2 }
 0xc9a   : > { %v3300_v14 = vadd.f32 %v5949_v41, %v3279_v59  ;;  %v3394_v40 = vadd.f32 %v5987_v48, %v3393_v25 }
 0xc9c   : > { %v3316_v4 = vmax.f32 %v3300_v14, 0.0  ;;  %v3441_v27 = vmax.f32 %v3394_v40, 0.0 }
 0xc9e   : > { %4351 = vmatmul.msk.f32.gmra.mxu2 %vm1470_vm1, %v3316_v4  ;;  %4354 = vmatmul.msk.f32.vlgmr.msrb.gmra.mxu1 %vm1470_vm1, %v3441_v27  ;;  %v6034_v27 = vld [vmem:[%s6161_s17 + $0x1] ss:$0 sm:$0xff] }
 0xc9f   : > { %v3262_v10 = vpop.f32.mrf.mxu0 }
 0xca0   : > { %v3280_v7 = vadd.f32 %v3262_v10, %v3145_v0 }
 0xca2   : > { %v3301_v62 = vadd.f32 %v5949_v41, %v3280_v7 }
 0xca4   : > { %v3317_v63 = vmax.f32 %v3301_v62, 0.0 }
 0xca6   : > { %4352 = vmatmul.msk.f32.gmra.mxu2 %vm1470_vm1, %v3317_v63 }
 0xcb9   : > { %v3396_v58 = vpop.f32.mrf.mxu2 }
 0xcba   : > { %v3397_v51 = vadd.f32 %v5987_v48, %v3396_v58 }
 0xcbc   : > { %v3442_v53 = vmax.f32 %v3397_v51, 0.0 }
 0xcbe   : > { %4355 = vmatmul.msk.f32.gmra.mxu1 %vm1470_vm1, %v3442_v53 }
 0xcc1   : > { %v3399_v61 = vpop.f32.mrf.mxu2 }
 0xcc2   : > { %v3400_v19 = vadd.f32 %v5987_v48, %v3399_v61 }
 0xcc4   : > { %v3443_v22 = vmax.f32 %v3400_v19, 0.0 }
 0xcc6   : > { %4356 = vmatmul.msk.f32.gmra.mxu1 %vm1470_vm1, %v3443_v22 }
 0xcc9   : > { %v3402_v38 = vpop.f32.mrf.mxu2 }
 0xcca   : > { %v3403_v23 = vadd.f32 %v5987_v48, %v3402_v38 }
 0xccc   : > { %v3444_v1 = vmax.f32 %v3403_v23, 0.0 }
 0xcce   : > { %4357 = vmatmul.msk.f32.gmra.mxu1 %vm1470_vm1, %v3444_v1 }
 0xcd1   : > { %v3405_v41 = vpop.f32.mrf.mxu2 }
 0xcd2   : > { %v3406_v46 = vadd.f32 %v5987_v48, %v3405_v41 }
 0xcd4   : > { %v3445_v3 = vmax.f32 %v3406_v46, 0.0 }
 0xcd6   : > { %4358 = vmatmul.msk.f32.gmra.mxu1 %vm1470_vm1, %v3445_v3 }
 0xcd9   : > { %v3408_v55 = vpop.f32.mrf.mxu2 }
 0xcda   : > { %v3409_v28 = vadd.f32 %v5987_v48, %v3408_v55 }
 0xcdc   : > { %v3446_v35 = vmax.f32 %v3409_v28, 0.0 }
 0xcde   : > { %4359 = vmatmul.msk.f32.gmra.mxu1 %vm1470_vm1, %v3446_v35 }
 0xce1   : > { %v3411_v26 = vpop.f32.mrf.mxu2 }
 0xce2   : > { %v3412_v18 = vadd.f32 %v5987_v48, %v3411_v26 }
 0xce4   : > { %v3447_v13 = vmax.f32 %v3412_v18, 0.0 }
 0xce6   : > { %4360 = vmatmul.msk.f32.gmra.mxu1 %vm1470_vm1, %v3447_v13 }
 0xce9   : > { %v3414_v29 = vpop.f32.mrf.mxu2 }
 0xcea   : > { %v3415_v44 = vadd.f32 %v5987_v48, %v3414_v29 }
 0xcec   : > { %v3448_v31 = vmax.f32 %v3415_v44, 0.0 }
 0xcee   : > { %4361 = vmatmul.msk.f32.gmra.mxu1 %vm1470_vm1, %v3448_v31 }
 0xcf1   : > { %v3417_v49 = vpop.f32.mrf.mxu2 }
 0xcf2   : > { %v3418_v34 = vadd.f32 %v5987_v48, %v3417_v49 }
 0xcf4   : > { %v3449_v16 = vmax.f32 %v3418_v34, 0.0 }
 0xcf6   : > { %4362 = vmatmul.msk.f32.gmra.mxu1 %vm1470_vm1, %v3449_v16 }
 0xcf9   : > { %v3420_v42 = vpop.f32.mrf.mxu2 }
 0xcfa   : > { %v3421_v32 = vadd.f32 %v5987_v48, %v3420_v42 }
 0xcfc   : > { %v3450_v21 = vmax.f32 %v3421_v32, 0.0 }
 0xcfe   : > { %4363 = vmatmul.msk.f32.gmra.mxu1 %vm1470_vm1, %v3450_v21 }
 0xd01   : > { %v3423_v2 = vpop.f32.mrf.mxu2 }
 0xd02   : > { %v3424_v57 = vadd.f32 %v5987_v48, %v3423_v2 }
 0xd04   : > { %v3451_v50 = vmax.f32 %v3424_v57, 0.0 }
 0xd06   : > { %4364 = vmatmul.msk.f32.gmra.mxu1 %vm1470_vm1, %v3451_v50  ;;  %v3714_v50 = vstv %s3713_s22  ;;  %s4639_s22 = scalar_lea.hbm %s6164_s20, 2 }
 0xd07   : > { %p4641_p4 = scmp.lt.s32.totalorder %s4639_s22, %s4635_s28 }
 0xd09   : > { %v3426_v45 = vpop.f32.mrf.mxu2  ;;  %p4642_p7 = por %p4641_p4, %p4640_p3 }
 0xd0a   : > { %v3427_v59 = vadd.f32 %v5987_v48, %v3426_v45 }
 0xd0b   : > { %p4643_p8 = pnand %p4642_p7, %p4638_p2 }
 0xd0c   : > { %v3452_v25 = vmax.f32 %v3427_v59, 0.0 }
 0xd0e   : > { %4365 = vmatmul.msk.f32.gmra.mxu1 %vm1470_vm1, %v3452_v25 }
 0xd11   : > { %v3429_v14 = vpop.f32.mrf.mxu2 }
 0xd12   : > { %v3430_v40 = vadd.f32 %v5987_v48, %v3429_v14 }
 0xd14   : > { %v3453_v4 = vmax.f32 %v3430_v40, 0.0 }
 0xd16   : > { %4366 = vmatmul.msk.f32.gmra.mxu1 %vm1470_vm1, %v3453_v4 }
 0xd19   : > { %v3432_v54 = vpop.f32.mrf.mxu2 }
 0xd1a   : > { %v3433_v0 = vadd.f32 %v5987_v48, %v3432_v54 }
 0xd1b   : > { %v3532_v10 = vpop.f32.mrf.mxu1 }
 0xd1c   : > { %v3454_v7 = vmax.f32 %v3433_v0, 0.0  ;;  %v3533_v62 = vadd.f32 %v6034_v27, %v3532_v10 }
 0xd1e   : > { %v3580_v63 = vadd.f32 %v3533_v62, %v5605_v33  ;;  %4367 = vmatmul.msk.f32.gmra.mxu1 %vm1470_vm1, %v3454_v7 }
 0xd20   : > { %4370 = vmatmul.msk.f32.vlgmr.msra.gmra.mxu3 %vm1470_vm1, %v3580_v63 }
 0xd21   : > { %v3435_v58 = vpop.f32.mrf.mxu2 }
 0xd22   : > { %v3436_v51 = vadd.f32 %v5987_v48, %v3435_v58 }
 0xd24   : > { %v3455_v53 = vmax.f32 %v3436_v51, 0.0 }
 0xd26   : > { %4368 = vmatmul.msk.f32.gmra.mxu1 %vm1470_vm1, %v3455_v53 }
 0xd29   : > { %v3438_v61 = vpop.f32.mrf.mxu2 }
 0xd2a   : > { %v3439_v19 = vadd.f32 %v5987_v48, %v3438_v61 }
 0xd2c   : > { %v3456_v22 = vmax.f32 %v3439_v19, 0.0 }
 0xd2e   : > { %4369 = vmatmul.msk.f32.gmra.mxu1 %vm1470_vm1, %v3456_v22 }
 0xd3b   : > { %v3535_v38 = vpop.f32.mrf.mxu1 }
 0xd3c   : > { %v3536_v23 = vadd.f32 %v6034_v27, %v3535_v38 }
 0xd3e   : > { %v3581_v33 = vadd.f32 %v3536_v23, %v5600_v12 }
 0xd40   : > { %4371 = vmatmul.msk.f32.gmra.mxu3 %vm1470_vm1, %v3581_v33 }
 0xd43   : > { %v3538_v1 = vpop.f32.mrf.mxu1 }
 0xd44   : > { %v3539_v41 = vadd.f32 %v6034_v27, %v3538_v1 }
 0xd46   : > { %v3582_v46 = vadd.f32 %v3539_v41, %v5595_v9 }
 0xd48   : > { %4372 = vmatmul.msk.f32.gmra.mxu3 %vm1470_vm1, %v3582_v46 }
 0xd4b   : > { %v3541_v3 = vpop.f32.mrf.mxu1 }
 0xd4c   : > { %v3542_v48 = vadd.f32 %v6034_v27, %v3541_v3 }
 0xd4e   : > { %v3583_v55 = vadd.f32 %v3542_v48, %v5589_v15 }
 0xd50   : > { %4373 = vmatmul.msk.f32.gmra.mxu3 %vm1470_vm1, %v3583_v55 }
 0xd53   : > { %v3544_v28 = vpop.f32.mrf.mxu1 }
 0xd54   : > { %v3545_v35 = vadd.f32 %v6034_v27, %v3544_v28 }
 0xd56   : > { %v3584_v12 = vadd.f32 %v3545_v35, %v5584_v8 }
 0xd58   : > { %4374 = vmatmul.msk.f32.gmra.mxu3 %vm1470_vm1, %v3584_v12 }
 0xd5b   : > { %v3547_v26 = vpop.f32.mrf.mxu1 }
 0xd5c   : > { %v3548_v18 = vadd.f32 %v6034_v27, %v3547_v26 }
 0xd5e   : > { %v3585_v9 = vadd.f32 %v3548_v18, %v5579_v39 }
 0xd60   : > { %4375 = vmatmul.msk.f32.gmra.mxu3 %vm1470_vm1, %v3585_v9 }
 0xd63   : > { %v3550_v13 = vpop.f32.mrf.mxu1 }
 0xd64   : > { %v3551_v29 = vadd.f32 %v6034_v27, %v3550_v13 }
 0xd66   : > { %v3586_v15 = vadd.f32 %v3551_v29, %v5574_v37 }
 0xd68   : > { %4376 = vmatmul.msk.f32.gmra.mxu3 %vm1470_vm1, %v3586_v15  ;;  %v3795_v15 = vlaneseq }
 0xd6b   : > { %v3553_v44 = vpop.f32.mrf.mxu1 }
 0xd6c   : > { %v3554_v31 = vadd.f32 %v6034_v27, %v3553_v44 }
 0xd6e   : > { %v3587_v8 = vadd.f32 %v3554_v31, %v5569_v52  ;;  %v6090_v31 = vand.u32 127, %v3795_v15 }
 0xd70   : > { %4377 = vmatmul.msk.f32.gmra.mxu3 %vm1470_vm1, %v3587_v8 }
 0xd73   : > { %v3556_v49 = vpop.f32.mrf.mxu1 }
 0xd74   : > { %v3557_v34 = vadd.f32 %v6034_v27, %v3556_v49 }
 0xd76   : > { %v3588_v39 = vadd.f32 %v3557_v34, %v5564_v30  ;;  %v3798_v34 = vadd.s32 4294967288, %v6090_v31 }
 0xd78   : > { %4378 = vmatmul.msk.f32.gmra.mxu3 %vm1470_vm1, %v3588_v39  ;;  %v3802_v39 = vadd.s32 4294967280, %v6090_v31 }
 0xd7b   : > { %v3559_v16 = vpop.f32.mrf.mxu1 }
 0xd7c   : > { %v3560_v42 = vadd.f32 %v6034_v27, %v3559_v16  ;;  %v3806_v16 = vadd.s32 4294967272, %v6090_v31 }
 0xd7e   : > { %v3589_v37 = vadd.f32 %v3560_v42, %v5559_v47 }
 0xd80   : > { %4379 = vmatmul.msk.f32.gmra.mxu3 %vm1470_vm1, %v3589_v37 }
 0xd83   : > { %v3562_v56 = vpop.f32.mrf.mxu1 }
 0xd84   : > { %v3563_v32 = vadd.f32 %v6034_v27, %v3562_v56 }
 0xd86   : > { %v3590_v52 = vadd.f32 %v3563_v32, %v5554_v20 }
 0xd88   : > { %4380 = vmatmul.msk.f32.gmra.mxu3 %vm1470_vm1, %v3590_v52 }
 0xd8b   : > { %v3565_v6 = vpop.f32.mrf.mxu1 }
 0xd8c   : > { %v3566_v21 = vadd.f32 %v6034_v27, %v3565_v6  ;;  %v3814_v6 = vadd.s32 4294967256, %v6090_v31 }
 0xd8e   : > { %v3591_v30 = vadd.f32 %v3566_v21, %v5549_v60 }
 0xd90   : > { %4381 = vmatmul.msk.f32.gmra.mxu3 %vm1470_vm1, %v3591_v30  ;;  %v3810_v30 = vadd.s32 4294967264, %v6090_v31 }
 0xd93   : > { %v3568_v24 = vpop.f32.mrf.mxu1 }
 0xd94   : > { %v3569_v43 = vadd.f32 %v6034_v27, %v3568_v24 }
 0xd96   : > { %v3592_v47 = vadd.f32 %v3569_v43, %v5542_v5  ;;  %v3818_v43 = vadd.s32 4294967248, %v6090_v31 }
 0xd98   : > { %4382 = vmatmul.msk.f32.gmra.mxu3 %vm1470_vm1, %v3592_v47 }
 0xd9b   : > { %v3571_v2 = vpop.f32.mrf.mxu1 }
 0xd9c   : > { %v3572_v20 = vadd.f32 %v6034_v27, %v3571_v2 }
 0xd9e   : > { %v3593_v57 = vadd.f32 %v3572_v20, %v5536_v11 }
 0xda0   : > { %4383 = vmatmul.msk.f32.gmra.mxu3 %vm1470_vm1, %v3593_v57 }
 0xda3   : > { %v3574_v45 = vpop.f32.mrf.mxu1  ;;  %v3665_v60 = vpop.f32.mrf.mxu3 }
 0xda4   : > { %v3575_v59 = vadd.f32 %v6034_v27, %v3574_v45  ;;  %v3715_v25 = vadd.f32 %v3714_v50, %v3665_v60 }
 0xda6   : > { %v3594_v14 = vadd.f32 %v3575_v59, %v5533_v17  ;;  %3748 = vperm.xlu1 %4483, %v3715_v25   ;;  %v3826_v59 = vadd.s32 4294967232, %v6090_v31  ;;  %v3822_v25 = vadd.s32 4294967240, %v6090_v31 }
 0xda8   : > { %4384 = vmatmul.msk.f32.gmra.mxu3 %vm1470_vm1, %v3594_v14  ;;  %v3830_v14 = vadd.s32 4294967224, %v6090_v31 }
 0xdab   : > { %v3577_v5 = vpop.f32.mrf.mxu1 }
 0xdac   : > { %v3578_v40 = vadd.f32 %v6034_v27, %v3577_v5 }
 0xdae   : > { %v3595_v4 = vadd.f32 %v3578_v40, %v5539_v36 }
 0xdb0   : > { %4385 = vmatmul.msk.f32.gmra.mxu3 %vm1470_vm1, %v3595_v4  ;;  %vm3856_vm1 = vcmask 1048512  }
 0xdc3   : > { %v3668_v11 = vpop.f32.mrf.mxu3 }
 0xdc4   : > { %v3716_v54 = vadd.f32 %v3714_v50, %v3668_v11 }
 0xdc6   : > { %3751 = vperm.xlu2 %4484, %v3716_v54  }
 0xdcb   : > { %v3671_v0 = vpop.f32.mrf.mxu3 }
 0xdcc   : > { %v3717_v10 = vadd.f32 %v3714_v50, %v3671_v0 }
 0xdce   : > { %3754 = vperm.xlu0 %4482, %v3717_v10  }
 0xdd3   : > { %v3674_v7 = vpop.f32.mrf.mxu3 }
 0xdd4   : > { %v3718_v62 = vadd.f32 %v3714_v50, %v3674_v7 }
 0xdd6   : > { %3757 = vperm.xlu1 %4483, %v3718_v62   ;;  %v3838_v62 = vadd.s32 4294967208, %v6090_v31 }
 0xddb   : > { %v3677_v17 = vpop.f32.mrf.mxu3 }
 0xddc   : > { %v3719_v63 = vadd.f32 %v3714_v50, %v3677_v17  ;;  %v3834_v17 = vadd.s32 4294967216, %v6090_v31 }
 0xdde   : > { %3760 = vperm.xlu2 %4484, %v3719_v63   ;;  %v3842_v63 = vadd.s32 4294967200, %v6090_v31 }
 0xde3   : > { %v3680_v58 = vpop.f32.mrf.mxu3 }
 0xde4   : > { %v3720_v51 = vadd.f32 %v3714_v50, %v3680_v58 }
 0xde6   : > { %3763 = vperm.xlu0 %4482, %v3720_v51  }
 0xdeb   : > { %v3683_v27 = vpop.f32.mrf.mxu3 }
 0xdec   : > { %v3721_v53 = vadd.f32 %v3714_v50, %v3683_v27 }
 0xdee   : > { %3766 = vperm.xlu1 %4483, %v3721_v53  }
 0xdf3   : > { %v3686_v36 = vpop.f32.mrf.mxu3 }
 0xdf4   : > { %v3722_v61 = vadd.f32 %v3714_v50, %v3686_v36 }
 0xdf6   : > { %3769 = vperm.xlu2 %4484, %v3722_v61  }
 0xdfb   : > { %v3689_v19 = vpop.f32.mrf.mxu3 }
 0xdfc   : > { %v3723_v22 = vadd.f32 %v3714_v50, %v3689_v19 }
 0xdfe   : > { %3772 = vperm.xlu0 %4482, %v3723_v22   ;;  %v3850_v22 = vadd.s32 4294967184, %v6090_v31 }
 0xe03   : > { %v3692_v38 = vpop.f32.mrf.mxu3 }
 0xe04   : > { %v3724_v23 = vadd.f32 %v3714_v50, %v3692_v38  ;;  %v3846_v38 = vadd.s32 4294967192, %v6090_v31 }
 0xe06   : > { %3775 = vperm.xlu1 %4483, %v3724_v23  }
 0xe0b   : > { %v3695_v33 = vpop.f32.mrf.mxu3 }
 0xe0c   : > { %v3725_v1 = vadd.f32 %v3714_v50, %v3695_v33 }
 0xe0e   : > { %3778 = vperm.xlu2 %4484, %v3725_v1  }
 0xe13   : > { %v3698_v41 = vpop.f32.mrf.mxu3 }
 0xe14   : > { %v3726_v46 = vadd.f32 %v3714_v50, %v3698_v41 }
 0xe16   : > { %3781 = vperm.xlu0 %4482, %v3726_v46   ;;  %v3854_v46 = vadd.s32 4294967176, %v6090_v31 }
 0xe18   : > { %v3749_v9 = vpop.permute.xlu1 %3748 }
 0xe19   : > { %v3797_v32 = vperm.slane %v3749_v9, %v6090_v31 }
 0xe1b   : > { %v3701_v3 = vpop.f32.mrf.mxu3 }
 0xe1c   : > { %v3727_v48 = vadd.f32 %v3714_v50, %v3701_v3 }
 0xe1e   : > { %3784 = vperm.xlu1 %4483, %v3727_v48  }
 0xe20   : > { %v3752_v29 = vpop.permute.xlu2 %3751 }
 0xe21   : > { %v3799_v37 = vperm.slane %v3752_v29, %v3798_v34 }
 0xe23   : > { %v3704_v55 = vpop.f32.mrf.mxu3  ;;  %v3801_v47 = vsel %vm3800_vm3, %v3799_v37, %v3797_v32 }
 0xe24   : > { %v3728_v28 = vadd.f32 %v3714_v50, %v3704_v55 }
 0xe26   : > { %3787 = vperm.xlu2 %4484, %v3728_v28  }
 0xe2b   : > { %v3707_v35 = vpop.f32.mrf.mxu3 }
 0xe2c   : > { %v3729_v12 = vadd.f32 %v3714_v50, %v3707_v35 }
 0xe2e   : > { %3790 = vperm.xlu0 %4482, %v3729_v12  }
 0xe33   : > { %v3710_v26 = vpop.f32.mrf.mxu3 }
 0xe34   : > { %v3730_v18 = vadd.f32 %v3714_v50, %v3710_v26 }
 0xe36   : > { %3793 = vperm.xlu1 %4483, %v3730_v18  }
 0xe38   : > { %v3761_v49 = vpop.permute.xlu2 %3760 }
 0xe39   : > { %v3811_v45 = vperm.slane %v3761_v49, %v3810_v30 }
 0xe40   : > { %v3755_v13 = vpop.permute.xlu0 %3754 }
 0xe41   : > { %v3803_v56 = vperm.slane %v3755_v13, %v3802_v39 }
 0xe43   : > { %v3805_v2 = vsel %vm3804_vm4, %v3803_v56, %v3801_v47 }
 0xe48   : > { %v3758_v44 = vpop.permute.xlu1 %3757 }
 0xe49   : > { %v3807_v52 = vperm.slane %v3758_v44, %v3806_v16 }
 0xe4b   : > { %v3809_v20 = vsel %vm3808_vm5, %v3807_v52, %v3805_v2 }
 0xe4c   : > { %v3813_v5 = vsel %vm3812_vm6, %v3811_v45, %v3809_v20 }
 0xe50   : > { %v3770_v24 = vpop.permute.xlu2 %3769 }
 0xe51   : > { %v3823_v10 = vperm.slane %v3770_v24, %v3822_v25 }
 0xe58   : > { %v3764_v8 = vpop.permute.xlu0 %3763 }
 0xe59   : > { %v3815_v57 = vperm.slane %v3764_v8, %v3814_v6 }
 0xe5b   : > { %v3817_v40 = vsel %vm3816_vm7, %v3815_v57, %v3813_v5 }
 0xe60   : > { %v3767_v42 = vpop.permute.xlu1 %3766 }
 0xe61   : > { %v3819_v60 = vperm.slane %v3767_v42, %v3818_v43 }
 0xe63   : > { %v3821_v11 = vsel %vm3820_vm8, %v3819_v60, %v3817_v40 }
 0xe64   : > { %v3825_v58 = vsel %vm3824_vm9, %v3823_v10, %v3821_v11 }
 0xe68   : > { %v3779_v54 = vpop.permute.xlu2 %3778 }
 0xe69   : > { %v3835_v61 = vperm.slane %v3779_v54, %v3834_v17 }
 0xe70   : > { %v3773_v21 = vpop.permute.xlu0 %3772 }
 0xe71   : > { %v3827_v0 = vperm.slane %v3773_v21, %v3826_v59 }
 0xe73   : > { %v3829_v27 = vsel %vm3828_vm10, %v3827_v0, %v3825_v58 }
 0xe78   : > { %v3776_v50 = vpop.permute.xlu1 %3775 }
 0xe79   : > { %v3831_v7 = vperm.slane %v3776_v50, %v3830_v14 }
 0xe7b   : > { %v3833_v53 = vsel %vm3832_vm11, %v3831_v7, %v3829_v27 }
 0xe7c   : > { %v3837_v1 = vsel %vm3836_vm12, %v3835_v61, %v3833_v53 }
 0xe80   : > { %v3788_v33 = vpop.permute.xlu2 %3787 }
 0xe81   : > { %v3847_v55 = vperm.slane %v3788_v33, %v3846_v38 }
 0xe88   : > { %v3782_v4 = vpop.permute.xlu0 %3781 }
 0xe89   : > { %v3839_v36 = vperm.slane %v3782_v4, %v3838_v62 }
 0xe8b   : > { %v3841_v41 = vsel %vm3840_vm13, %v3839_v36, %v3837_v1 }
 0xe90   : > { %v3785_v51 = vpop.permute.xlu1 %3784 }
 0xe91   : > { %v3843_v19 = vperm.slane %v3785_v51, %v3842_v63 }
 0xe93   : > { %v3845_v3 = vsel %vm3844_vm14, %v3843_v19, %v3841_v41 }
 0xe94   : > { %v3849_v35 = vsel %vm3848_vm15, %v3847_v55, %v3845_v3 }
 0xea0   : > { %v3791_v23 = vpop.permute.xlu0 %3790 }
 0xea1   : > { %v3851_v48 = vperm.slane %v3791_v23, %v3850_v22 }
 0xea3   : > { %v3853_v26 = vsel %vm3852_vm0, %v3851_v48, %v3849_v35 }
 0xea8   : > { %v3794_v28 = vpop.permute.xlu1 %3793 }
 0xea9   : > { %v3855_v12 = vperm.slane %v3794_v28, %v3854_v46 }
 0xeab   : > { %v3857_v18 = vsel %vm3856_vm1, %v3855_v12, %v3853_v26 }
 0xeac   : > { %3859 = vst [vmem:[%s714_s1] sm:$0x1] %v3857_v18 }
 0xead   : > { %4646 = shalt.err (!%p4643_p8)
}
 0xeae   : > { %4431 = dma.vmem_to_hbm [thread:$0]  (%p4839_p5), %s3872_s26, 16, %s3874_s2, %s3861_s19  }
 0xeaf PF: > { %p4443_p9 = scmp.ge.s32.totalorder %s4685_s25, 2  ;;  %s3885_s3 = sand.u32 1, %s4673_s23  }
 0xeb0   : > { %s3886_s1 = scalar_lea.sflag [#allocation5], %s3885_s3 }
 0xeb1   : > { %p4438_p10 = pnand %p4443_p9, %p4843_p6 }
 0xeb3   : > { %p4439_p11 = pneg %p4438_p10 }
 0xeb5   : > { %4668 = dma.done.wait (%p4439_p11), %s3886_s1, 16  }
 0xeb6   : > { %4670 = vsyncadd (%p4439_p11), %s3886_s1, 4294967280  ;;  %s6194_s25 = sld [smem:[#allocation10_spill]]  ;;  %s6197_s23 = smov %s4677_s24 }
 0xeb7   : > { %s6195_s27 = sld [smem:[#allocation9_spill]] }
 0xeb8   : > { %s6196_s2 = sld [smem:[#allocation11_spill]] }
 0xebc   : > { %p32_p12 = scmp.ge.s32.totalorder %s6194_s25, 4  }
 0xebd   : > { %s6198_s24 = smov %s6195_s27 }
 0xebe   :  { %34 = sbr.rel (!%p32_p12) target bundleno = 12 (0xc), region = 165 }
 0xec3   :  { %3891 = vsyncpa [#allocation4], 1 }
 0xec4   :  { %3893 = vsyncpa [#allocation4 + $0x1], 1 }
 0xec5   :  { %3894 = vsyncpa [#allocation5], 1 }
 0xec6   :  { %3896 = vsyncpa [#allocation5 + $0x1], 1 }

</bundles_post_ra>
